<compile_context>
chip_gen: v7x
topology: tpu7x:2x2x1
jax: 0.10.0
libtpu: 0.0.40
codegen_flags: <defaults>
</compile_context>

<pallas_src>
import functools
import math
from typing import NamedTuple, Tuple

import jax
import jax.numpy as jnp
import numpy as np
from jax.experimental import pallas as pl
from jax.experimental.pallas import tpu as pltpu


# ----------------------------- Pallas kernels ------------------------------

def _conv_relu_pool_kernel(x_ref, w_ref, b_ref, o_ref, *, pool_rows):
    """Fused conv (matmul on pre-gathered patches) + bias + ReLU + 2x2 maxpool.

    x_ref block: (1, 4*pool_rows, F) with rows ordered (dh, dw, ph, pw), so the
    2x2/stride-2 pool is a max over 4 contiguous, sublane-tile-aligned row
    groups.  Output channels are zero-padded to 128 -> lane-dense stores.
    """
    x = x_ref[0]                                                      # (4P, F) bf16
    y = jnp.dot(x, w_ref[...], preferred_element_type=jnp.float32)    # (4P, 128) f32
    y = jnp.maximum(y + b_ref[...], 0.0)
    g = pool_rows
    y = jnp.maximum(jnp.maximum(y[0:g], y[g:2 * g]),
                    jnp.maximum(y[2 * g:3 * g], y[3 * g:4 * g]))      # (P, 128)
    o_ref[0] = y.astype(o_ref.dtype)


def conv_relu_pool(x_rows, w, b, pool_rows):
    N, R, F = x_rows.shape
    C = w.shape[1]
    assert R == 4 * pool_rows
    return pl.pallas_call(
        functools.partial(_conv_relu_pool_kernel, pool_rows=pool_rows),
        out_shape=jax.ShapeDtypeStruct((N, pool_rows, C), jnp.bfloat16),
        grid=(N,),
        in_specs=[pl.BlockSpec((1, R, F), lambda n: (n, 0, 0)),
                  pl.BlockSpec((F, C), lambda n: (0, 0)),
                  pl.BlockSpec((1, C), lambda n: (0, 0))],
        out_specs=pl.BlockSpec((1, pool_rows, C), lambda n: (n, 0, 0)),
        compiler_params=pltpu.CompilerParams(dimension_semantics=("parallel",)),
    )(x_rows, w, b)


def _bag_head_kernel(x_ref, mask_ref, wfc_ref, bfc_ref, v_ref, vb_ref,
                     watt_ref, wb_ref, wh_ref, bh_ref, preds_ref, att_ref):
    """Per-bag fused tail: Linear(800->512pad)+ReLU (backbone FC + embedding
    ReLU), Ilse attention-MIL with masked softmax over the padded bag, and all
    classifier heads as one 128-wide lane-dense matmul."""
    x = x_ref[0]                                                      # (max_n, 2048) bf16
    h = jnp.dot(x, wfc_ref[...], preferred_element_type=jnp.float32) + bfc_ref[...]
    h = jnp.maximum(h, 0.0)                                           # (max_n, 512) f32
    hv = jnp.tanh(jnp.dot(h.astype(jnp.bfloat16), v_ref[...],
                          preferred_element_type=jnp.float32) + vb_ref[...])  # (max_n, 128)
    logits = jnp.sum(hv * watt_ref[...], axis=1, keepdims=True) + wb_ref[...]  # (max_n, 1)
    logits = logits + mask_ref[0]                                     # -1e9 on padded rows
    m = jnp.max(logits, axis=0, keepdims=True)
    e = jnp.exp(logits - m)
    att = e * pl.reciprocal(jnp.sum(e, axis=0, keepdims=True), approx=True)   # (max_n, 1)
    att_ref[0] = att
    pooled = jnp.sum(att * h, axis=0, keepdims=True)                  # (1, 512)
    preds = jnp.dot(pooled.astype(jnp.bfloat16), wh_ref[...],
                    preferred_element_type=jnp.float32) + bh_ref[...]          # (1, 128)
    preds_ref[0] = preds


def bag_attention_heads(flat_bags, mask_bags, wfc, bfc, V, vb, watt, wb, wh, bh):
    B, max_n, K = flat_bags.shape
    L = wfc.shape[1]          # 512 (padded backend embedding)
    D = V.shape[1]            # 128 (attention hidden)
    HN = wh.shape[1]          # 128 (padded concatenated head outputs)
    preds, att = pl.pallas_call(
        _bag_head_kernel,
        out_shape=(jax.ShapeDtypeStruct((B, 1, HN), jnp.float32),
                   jax.ShapeDtypeStruct((B, max_n, 1), jnp.float32)),
        grid=(B,),
        in_specs=[pl.BlockSpec((1, max_n, K), lambda b: (b, 0, 0)),
                  pl.BlockSpec((1, max_n, 1), lambda b: (b, 0, 0)),
                  pl.BlockSpec((K, L), lambda b: (0, 0)),
                  pl.BlockSpec((1, L), lambda b: (0, 0)),
                  pl.BlockSpec((L, D), lambda b: (0, 0)),
                  pl.BlockSpec((1, D), lambda b: (0, 0)),
                  pl.BlockSpec((1, D), lambda b: (0, 0)),
                  pl.BlockSpec((1, 1), lambda b: (0, 0)),
                  pl.BlockSpec((L, HN), lambda b: (0, 0)),
                  pl.BlockSpec((1, HN), lambda b: (0, 0))],
        out_specs=(pl.BlockSpec((1, 1, HN), lambda b: (b, 0, 0)),
                   pl.BlockSpec((1, max_n, 1), lambda b: (b, 0, 0))),
        compiler_params=pltpu.CompilerParams(dimension_semantics=("parallel",)),
    )(flat_bags, mask_bags, wfc, bfc, V, vb, watt, wb, wh, bh)
    return preds[:, 0, :], att[:, :, 0]


# ------------------------------ JAX glue -----------------------------------

def _im2col_pool_rows(x, kh, kw):
    """x: (N, H, W, C) channels-last -> (N, 4*PH*PW, kh*kw*C) patch matrix with
    rows ordered (dh, dw, ph, pw) so a later 2x2 maxpool is a max over the 4
    contiguous row groups.  Feature order (i, j, c) matches the reordered
    torch conv weight."""
    N, H, W, C = x.shape
    OH, OW = H - kh + 1, W - kw + 1
    PH, PW = OH // 2, OW // 2
    cols = [x[:, i:i + OH, j:j + OW, :] for i in range(kh) for j in range(kw)]
    p = jnp.stack(cols, axis=3)                                       # (N, OH, OW, kh*kw, C)
    p = p.reshape(N, PH, 2, PW, 2, kh * kw * C)
    p = p.transpose(0, 2, 4, 1, 3, 5)                                 # (N, dh, dw, PH, PW, F)
    return p.reshape(N, 4 * PH * PW, kh * kw * C)


def _pad_axis(x, axis, target):
    pad = [(0, 0)] * x.ndim
    pad[axis] = (0, target - x.shape[axis])
    return jnp.pad(x, pad)


def _prep_weights(params):
    """Reorder / zero-pad torch-layout weights into lane-dense matmul operands."""
    bf16 = jnp.bfloat16
    # Conv1: (20,1,5,5) -> (25, 128) with feature order (i*5+j), out channels padded.
    w1 = _pad_axis(params["conv1_w"].reshape(20, 25).T, 1, 128).astype(bf16)
    b1 = _pad_axis(params["conv1_b"], 0, 128).reshape(1, 128)
    # Conv2: (50,20,5,5) -> (5,5,128,128) -> (3200, 128); feature f = (i*5+j)*128 + c.
    w2 = _pad_axis(_pad_axis(params["conv2_w"].transpose(2, 3, 1, 0), 2, 128), 3, 128)
    w2 = w2.reshape(25 * 128, 128).astype(bf16)
    b2 = _pad_axis(params["conv2_b"], 0, 128).reshape(1, 128)
    # FC: torch flatten order (c,h,w) -> ours (h,w,c_pad128); out 500 -> 512.
    wfc = params["fc_w"].reshape(500, 50, 4, 4).transpose(2, 3, 1, 0)   # (h,w,c,o)
    wfc = _pad_axis(_pad_axis(wfc, 2, 128), 3, 512).reshape(2048, 512).astype(bf16)
    bfc = _pad_axis(params["fc_b"], 0, 512).reshape(1, 512)
    # Attention MIL (L=500 padded to 512, D=128, K=1).
    V = _pad_axis(params["attn_V_w"].T, 0, 512).astype(bf16)            # (512, 128)
    vb = params["attn_V_b"].reshape(1, 128)
    watt = params["attn_w_w"].reshape(1, 128)
    wb = params["attn_w_b"].reshape(1, 1)
    # Heads: concatenate every head's Linear(500, out) into one (512, 128) matmul.
    hw_list = [hw for hw, _ in params["heads"].values()]
    hb_list = [hb for _, hb in params["heads"].values()]
    Wcat = jnp.concatenate(hw_list, axis=0)                              # (tot, 500)
    tot = Wcat.shape[0]
    assert tot <= 128, "concatenated head outputs must fit one 128-lane tile"
    wh = _pad_axis(_pad_axis(Wcat.T, 0, 512), 1, 128).astype(bf16)       # (512, 128)
    bh = _pad_axis(jnp.concatenate(hb_list, axis=0), 0, 128).reshape(1, 128)
    return dict(w1=w1, b1=b1, w2=w2, b2=b2, wfc=wfc, bfc=bfc,
                V=V, vb=vb, watt=watt, wb=wb, wh=wh, bh=bh)


@functools.partial(jax.jit, static_argnums=(1,))
def multi_input_net_forward(img_rep, n_images_per_bag, params):
    """MultiInputNet.forward for x = (img_rep, n_images_per_bag).
    n_images_per_bag is a static Python tuple (mirrors torch's
    `.cpu().numpy()` -> tuple conversion)."""
    n_images_per_bag = tuple(int(n) for n in n_images_per_bag)
    N = img_rep.shape[0]
    w = _prep_weights(params)

    # ---- backbone (DefaultBackend): two fused conv+ReLU+maxpool kernels.
    x = img_rep.reshape(N, 28, 28, 1).astype(jnp.bfloat16)     # NCHW->NHWC (C=1: free)
    p1 = _im2col_pool_rows(x, 5, 5)                             # (N, 576, 25)
    f1 = conv_relu_pool(p1, w["w1"], w["b1"], pool_rows=144)    # (N, 144, 128) bf16
    p2 = _im2col_pool_rows(f1.reshape(N, 12, 12, 128), 5, 5)    # (N, 64, 3200)
    f2 = conv_relu_pool(p2, w["w2"], w["b2"], pool_rows=16)     # (N, 16, 128) bf16
    flat = f2.reshape(N, 16 * 128)                              # (N, 2048), (h,w,c) order

    # ---- split into zero-padded bags (static tuple -> static slicing).
    n_bags = len(n_images_per_bag)
    max_n = max(n_images_per_bag)
    bags, off = [], 0
    for n in n_images_per_bag:
        b = flat[off:off + n]
        if n < max_n:
            b = jnp.pad(b, ((0, max_n - n), (0, 0)))
        bags.append(b)
        off += n
    flat_bags = jnp.stack(bags)                                 # (B, max_n, 2048)
    mask_np = np.zeros((n_bags, max_n, 1), np.float32)
    for g, n in enumerate(n_images_per_bag):
        mask_np[g, n:, 0] = -1e9                                # additive softmax mask
    mask_bags = jnp.asarray(mask_np)

    # ---- fused FC+ReLU + attention pooling + all heads, one kernel over bags.
    preds_pad, att = bag_attention_heads(
        flat_bags, mask_bags, w["wfc"], w["bfc"], w["V"], w["vb"],
        w["watt"], w["wb"], w["wh"], w["bh"])

    head_preds, head_acts = {}, {}
    off = 0
    for name, (hw, hb) in params["heads"].items():
        od = hw.shape[0]
        p = preds_pad[:, off:off + od]                          # (n_bags, out_dim)
        head_preds[name] = p
        head_acts[name] = [p]      # MLPClassifier(return_act=True) layer_act list
        off += od
    att_list = [att[g:g + 1, :n] for g, n in enumerate(n_images_per_bag)]
    return {"head_preds": head_preds,
            "head_acts": head_acts,
            "attention_outputs": att_list}


# --------------------------- parameter setup -------------------------------

class AttSpec(NamedTuple):
    name: str
    target_type: str
    legal_values: Tuple[str, ...] = ()


def _torch_linear_init(key, fan_in, w_shape, b_shape):
    bound = 1.0 / math.sqrt(fan_in)
    kw, kb = jax.random.split(key)
    w = jax.random.uniform(kw, w_shape, jnp.float32, -bound, bound)
    b = jax.random.uniform(kb, b_shape, jnp.float32, -bound, bound)
    return w, b


def init_params(key, att_specs, backend_out_dim=500, attn_D=128):
    keys = jax.random.split(key, 5 + len(att_specs))
    conv1_w, conv1_b = _torch_linear_init(keys[0], 1 * 5 * 5, (20, 1, 5, 5), (20,))
    conv2_w, conv2_b = _torch_linear_init(keys[1], 20 * 5 * 5, (50, 20, 5, 5), (50,))
    fc_w, fc_b = _torch_linear_init(keys[2], 800, (backend_out_dim, 800), (backend_out_dim,))
    attn_V_w, attn_V_b = _torch_linear_init(keys[3], backend_out_dim,
                                            (attn_D, backend_out_dim), (attn_D,))
    attn_w_w, attn_w_b = _torch_linear_init(keys[4], attn_D, (1, attn_D), (1,))
    heads = {}
    for i, spec in enumerate(att_specs):
        out_dim = 1 if spec.target_type in ("regression", "binary") else len(spec.legal_values)
        hw, hb = _torch_linear_init(keys[5 + i], backend_out_dim,
                                    (out_dim, backend_out_dim), (out_dim,))
        heads[spec.name] = (hw, hb)
    return dict(conv1_w=conv1_w, conv1_b=conv1_b, conv2_w=conv2_w, conv2_b=conv2_b,
                fc_w=fc_w, fc_b=fc_b, attn_V_w=attn_V_w, attn_V_b=attn_V_b,
                attn_w_w=attn_w_w, attn_w_b=attn_w_b, heads=heads)


# ---------------------------------- main ------------------------------------

if __name__ == "__main__":
    key = jax.random.PRNGKey(0)
    pkey, xkey = jax.random.split(key)

    att_specs = [AttSpec("grade", "binary"),
                 AttSpec("subtype", "categorical", ("a", "b", "c"))]
    params = init_params(pkey, att_specs)

    n_images_per_bag = (2, 3)                       # 2 bags, 5 images total
    total_images = sum(n_images_per_bag)
    img_rep = jax.random.normal(xkey, (total_images, 1, 28, 28), jnp.float32)

    out = multi_input_net_forward(img_rep, n_images_per_bag, params)
    jax.block_until_ready(out)

    assert out["head_preds"]["grade"].shape == (2, 1)
    assert out["head_preds"]["subtype"].shape == (2, 3)
    assert out["attention_outputs"][0].shape == (1, 2)
    assert out["attention_outputs"][1].shape == (1, 3)
    assert all(jnp.isfinite(v).all() for v in out["head_preds"].values())
    print("KERNEL_OK")
</pallas_src>

<mosaic_0001>
module attributes {stable_mosaic.version = 11 : i64} {
  func.func @_conv_relu_pool_kernel(%arg0: i32, %arg1: memref<1x576x25xbf16, #tpu.memory_space<vmem>>, %arg2: memref<25x128xbf16, #tpu.memory_space<vmem>>, %arg3: memref<1x128xf32, #tpu.memory_space<vmem>>, %arg4: memref<1x144x128xbf16, #tpu.memory_space<vmem>>) attributes {dimension_semantics = [#tpu.dimension_semantics<parallel>], iteration_bounds = array<i64: 5>, scalar_prefetch = 0 : i64, scratch_operands = 0 : i64, tpu.core_type = #tpu.core_type<tc>, window_params = [{transform_indices = @transform_0, window_bounds = array<i64: 1, 576, 25>}, {pipeline_mode = #tpu.pipeline_mode<synchronous>, transform_indices = @transform_1, window_bounds = array<i64: 25, 128>}, {pipeline_mode = #tpu.pipeline_mode<synchronous>, transform_indices = @transform_2, window_bounds = array<i64: 1, 128>}, {transform_indices = @transform_3, window_bounds = array<i64: 1, 144, 128>}]} {
    %c0 = arith.constant 0 : index
    %c0_0 = arith.constant 0 : index
    %c0_1 = arith.constant 0 : index
    %0 = vector.load %arg1[%c0, %c0_0, %c0_1] : memref<1x576x25xbf16, #tpu.memory_space<vmem>>, vector<1x576x25xbf16>
    %1 = vector.shape_cast %0 : vector<1x576x25xbf16> to vector<576x25xbf16>
    %c0_2 = arith.constant 0 : index
    %c0_3 = arith.constant 0 : index
    %2 = vector.load %arg2[%c0_2, %c0_3] : memref<25x128xbf16, #tpu.memory_space<vmem>>, vector<25x128xbf16>
    %cst = arith.constant dense<0.000000e+00> : vector<576x128xf32>
    %3 = tpu.matmul %1, %2, %cst {dimension_numbers = #tpu.dot_dimension_numbers<[1], [0], [0], [1], [0, 0, 1, 1], [], []>} : vector<576x25xbf16>, vector<25x128xbf16>, vector<576x128xf32> -> vector<576x128xf32>
    %c0_4 = arith.constant 0 : index
    %c0_5 = arith.constant 0 : index
    %4 = vector.load %arg3[%c0_4, %c0_5] : memref<1x128xf32, #tpu.memory_space<vmem>>, vector<1x128xf32>
    %5 = vector.broadcast %4 : vector<1x128xf32> to vector<576x128xf32>
    %6 = arith.addf %3, %5 : vector<576x128xf32>
    %cst_6 = arith.constant 0.000000e+00 : f32
    %7 = vector.broadcast %cst_6 : f32 to vector<576x128xf32>
    %8 = arith.maximumf %6, %7 : vector<576x128xf32>
    %9 = vector.extract_strided_slice %8 {offsets = [0, 0], sizes = [144, 128], strides = [1, 1]} : vector<576x128xf32> to vector<144x128xf32>
    %10 = vector.extract_strided_slice %8 {offsets = [144, 0], sizes = [144, 128], strides = [1, 1]} : vector<576x128xf32> to vector<144x128xf32>
    %11 = arith.maximumf %9, %10 : vector<144x128xf32>
    %12 = vector.extract_strided_slice %8 {offsets = [288, 0], sizes = [144, 128], strides = [1, 1]} : vector<576x128xf32> to vector<144x128xf32>
    %13 = vector.extract_strided_slice %8 {offsets = [432, 0], sizes = [144, 128], strides = [1, 1]} : vector<576x128xf32> to vector<144x128xf32>
    %14 = arith.maximumf %12, %13 : vector<144x128xf32>
    %15 = arith.maximumf %11, %14 : vector<144x128xf32>
    %16 = arith.truncf %15 : vector<144x128xf32> to vector<144x128xbf16>
    %c0_7 = arith.constant 0 : index
    %c0_8 = arith.constant 0 : index
    %c0_9 = arith.constant 0 : index
    %17 = vector.load %arg4[%c0_7, %c0_8, %c0_9] : memref<1x144x128xbf16, #tpu.memory_space<vmem>>, vector<1x144x128xbf16>
    %18 = vector.shape_cast %17 : vector<1x144x128xbf16> to vector<144x128xbf16>
    %19 = vector.shape_cast %16 : vector<144x128xbf16> to vector<1x144x128xbf16>
    tpu.vector_store %arg4[%c0_7, %c0_8, %c0_9], %19 {strides = array<i32>} : memref<1x144x128xbf16, #tpu.memory_space<vmem>>, vector<1x144x128xbf16>,
    return
  }
  func.func @transform_0(%arg0: i32) -> (i32, i32, i32) {
    %c0_i32 = arith.constant 0 : i32
    %c0_i32_0 = arith.constant 0 : i32
    %c0_i32_1 = arith.constant 0 : i32
    return %arg0, %c0_i32, %c0_i32_0 : i32, i32, i32
  }
  func.func @transform_1(%arg0: i32) -> (i32, i32) {
    %c0_i32 = arith.constant 0 : i32
    %c0_i32_0 = arith.constant 0 : i32
    %c0_i32_1 = arith.constant 0 : i32
    return %c0_i32, %c0_i32_0 : i32, i32
  }
  func.func @transform_2(%arg0: i32) -> (i32, i32) {
    %c0_i32 = arith.constant 0 : i32
    %c0_i32_0 = arith.constant 0 : i32
    %c0_i32_1 = arith.constant 0 : i32
    return %c0_i32, %c0_i32_0 : i32, i32
  }
  func.func @transform_3(%arg0: i32) -> (i32, i32, i32) {
    %c0_i32 = arith.constant 0 : i32
    %c0_i32_0 = arith.constant 0 : i32
    %c0_i32_1 = arith.constant 0 : i32
    return %arg0, %c0_i32, %c0_i32_0 : i32, i32, i32
  }
}

module attributes {stable_mosaic.version = 11 : i64} {
  func.func @_conv_relu_pool_kernel(%arg0: i32, %arg1: memref<1x64x3200xbf16, #tpu.memory_space<vmem>>, %arg2: memref<3200x128xbf16, #tpu.memory_space<vmem>>, %arg3: memref<1x128xf32, #tpu.memory_space<vmem>>, %arg4: memref<1x16x128xbf16, #tpu.memory_space<vmem>>) attributes {dimension_semantics = [#tpu.dimension_semantics<parallel>], iteration_bounds = array<i64: 5>, scalar_prefetch = 0 : i64, scratch_operands = 0 : i64, tpu.core_type = #tpu.core_type<tc>, window_params = [{transform_indices = @transform_0, window_bounds = array<i64: 1, 64, 3200>}, {pipeline_mode = #tpu.pipeline_mode<synchronous>, transform_indices = @transform_1, window_bounds = array<i64: 3200, 128>}, {pipeline_mode = #tpu.pipeline_mode<synchronous>, transform_indices = @transform_2, window_bounds = array<i64: 1, 128>}, {transform_indices = @transform_3, window_bounds = array<i64: 1, 16, 128>}]} {
    %c0 = arith.constant 0 : index
    %c0_0 = arith.constant 0 : index
    %c0_1 = arith.constant 0 : index
    %0 = vector.load %arg1[%c0, %c0_0, %c0_1] : memref<1x64x3200xbf16, #tpu.memory_space<vmem>>, vector<1x64x3200xbf16>
    %1 = vector.shape_cast %0 : vector<1x64x3200xbf16> to vector<64x3200xbf16>
    %c0_2 = arith.constant 0 : index
    %c0_3 = arith.constant 0 : index
    %2 = vector.load %arg2[%c0_2, %c0_3] : memref<3200x128xbf16, #tpu.memory_space<vmem>>, vector<3200x128xbf16>
    %cst = arith.constant dense<0.000000e+00> : vector<64x128xf32>
    %3 = tpu.matmul %1, %2, %cst {dimension_numbers = #tpu.dot_dimension_numbers<[1], [0], [0], [1], [0, 0, 1, 1], [], []>} : vector<64x3200xbf16>, vector<3200x128xbf16>, vector<64x128xf32> -> vector<64x128xf32>
    %c0_4 = arith.constant 0 : index
    %c0_5 = arith.constant 0 : index
    %4 = vector.load %arg3[%c0_4, %c0_5] : memref<1x128xf32, #tpu.memory_space<vmem>>, vector<1x128xf32>
    %5 = vector.broadcast %4 : vector<1x128xf32> to vector<64x128xf32>
    %6 = arith.addf %3, %5 : vector<64x128xf32>
    %cst_6 = arith.constant 0.000000e+00 : f32
    %7 = vector.broadcast %cst_6 : f32 to vector<64x128xf32>
    %8 = arith.maximumf %6, %7 : vector<64x128xf32>
    %9 = vector.extract_strided_slice %8 {offsets = [0, 0], sizes = [16, 128], strides = [1, 1]} : vector<64x128xf32> to vector<16x128xf32>
    %10 = vector.extract_strided_slice %8 {offsets = [16, 0], sizes = [16, 128], strides = [1, 1]} : vector<64x128xf32> to vector<16x128xf32>
    %11 = arith.maximumf %9, %10 : vector<16x128xf32>
    %12 = vector.extract_strided_slice %8 {offsets = [32, 0], sizes = [16, 128], strides = [1, 1]} : vector<64x128xf32> to vector<16x128xf32>
    %13 = vector.extract_strided_slice %8 {offsets = [48, 0], sizes = [16, 128], strides = [1, 1]} : vector<64x128xf32> to vector<16x128xf32>
    %14 = arith.maximumf %12, %13 : vector<16x128xf32>
    %15 = arith.maximumf %11, %14 : vector<16x128xf32>
    %16 = arith.truncf %15 : vector<16x128xf32> to vector<16x128xbf16>
    %c0_7 = arith.constant 0 : index
    %c0_8 = arith.constant 0 : index
    %c0_9 = arith.constant 0 : index
    %17 = vector.load %arg4[%c0_7, %c0_8, %c0_9] : memref<1x16x128xbf16, #tpu.memory_space<vmem>>, vector<1x16x128xbf16>
    %18 = vector.shape_cast %17 : vector<1x16x128xbf16> to vector<16x128xbf16>
    %19 = vector.shape_cast %16 : vector<16x128xbf16> to vector<1x16x128xbf16>
    tpu.vector_store %arg4[%c0_7, %c0_8, %c0_9], %19 {strides = array<i32>} : memref<1x16x128xbf16, #tpu.memory_space<vmem>>, vector<1x16x128xbf16>,
    return
  }
  func.func @transform_0(%arg0: i32) -> (i32, i32, i32) {
    %c0_i32 = arith.constant 0 : i32
    %c0_i32_0 = arith.constant 0 : i32
    %c0_i32_1 = arith.constant 0 : i32
    return %arg0, %c0_i32, %c0_i32_0 : i32, i32, i32
  }
  func.func @transform_1(%arg0: i32) -> (i32, i32) {
    %c0_i32 = arith.constant 0 : i32
    %c0_i32_0 = arith.constant 0 : i32
    %c0_i32_1 = arith.constant 0 : i32
    return %c0_i32, %c0_i32_0 : i32, i32
  }
  func.func @transform_2(%arg0: i32) -> (i32, i32) {
    %c0_i32 = arith.constant 0 : i32
    %c0_i32_0 = arith.constant 0 : i32
    %c0_i32_1 = arith.constant 0 : i32
    return %c0_i32, %c0_i32_0 : i32, i32
  }
  func.func @transform_3(%arg0: i32) -> (i32, i32, i32) {
    %c0_i32 = arith.constant 0 : i32
    %c0_i32_0 = arith.constant 0 : i32
    %c0_i32_1 = arith.constant 0 : i32
    return %arg0, %c0_i32, %c0_i32_0 : i32, i32, i32
  }
}

module attributes {stable_mosaic.version = 11 : i64} {
  func.func @_bag_head_kernel(%arg0: i32, %arg1: memref<1x3x2048xbf16, #tpu.memory_space<vmem>>, %arg2: memref<1x3x1xf32, #tpu.memory_space<vmem>>, %arg3: memref<2048x512xbf16, #tpu.memory_space<vmem>>, %arg4: memref<1x512xf32, #tpu.memory_space<vmem>>, %arg5: memref<512x128xbf16, #tpu.memory_space<vmem>>, %arg6: memref<1x128xf32, #tpu.memory_space<vmem>>, %arg7: memref<1x128xf32, #tpu.memory_space<vmem>>, %arg8: memref<1x1xf32, #tpu.memory_space<vmem>>, %arg9: memref<512x128xbf16, #tpu.memory_space<vmem>>, %arg10: memref<1x128xf32, #tpu.memory_space<vmem>>, %arg11: memref<1x1x128xf32, #tpu.memory_space<vmem>>, %arg12: memref<1x3x1xf32, #tpu.memory_space<vmem>>) attributes {dimension_semantics = [#tpu.dimension_semantics<parallel>], iteration_bounds = array<i64: 2>, scalar_prefetch = 0 : i64, scratch_operands = 0 : i64, tpu.core_type = #tpu.core_type<tc>, window_params = [{transform_indices = @transform_0, window_bounds = array<i64: 1, 3, 2048>}, {transform_indices = @transform_1, window_bounds = array<i64: 1, 3, 1>}, {pipeline_mode = #tpu.pipeline_mode<synchronous>, transform_indices = @transform_2, window_bounds = array<i64: 2048, 512>}, {pipeline_mode = #tpu.pipeline_mode<synchronous>, transform_indices = @transform_3, window_bounds = array<i64: 1, 512>}, {pipeline_mode = #tpu.pipeline_mode<synchronous>, transform_indices = @transform_4, window_bounds = array<i64: 512, 128>}, {pipeline_mode = #tpu.pipeline_mode<synchronous>, transform_indices = @transform_5, window_bounds = array<i64: 1, 128>}, {pipeline_mode = #tpu.pipeline_mode<synchronous>, transform_indices = @transform_6, window_bounds = array<i64: 1, 128>}, {pipeline_mode = #tpu.pipeline_mode<synchronous>, transform_indices = @transform_7, window_bounds = array<i64: 1, 1>}, {pipeline_mode = #tpu.pipeline_mode<synchronous>, transform_indices = @transform_8, window_bounds = array<i64: 512, 128>}, {pipeline_mode = #tpu.pipeline_mode<synchronous>, transform_indices = @transform_9, window_bounds = array<i64: 1, 128>}, {transform_indices = @transform_10, window_bounds = array<i64: 1, 1, 128>}, {transform_indices = @transform_11, window_bounds = array<i64: 1, 3, 1>}]} {
    %c0 = arith.constant 0 : index
    %c0_0 = arith.constant 0 : index
    %c0_1 = arith.constant 0 : index
    %0 = vector.load %arg1[%c0, %c0_0, %c0_1] : memref<1x3x2048xbf16, #tpu.memory_space<vmem>>, vector<1x3x2048xbf16>
    %1 = vector.shape_cast %0 : vector<1x3x2048xbf16> to vector<3x2048xbf16>
    %c0_2 = arith.constant 0 : index
    %c0_3 = arith.constant 0 : index
    %2 = vector.load %arg3[%c0_2, %c0_3] : memref<2048x512xbf16, #tpu.memory_space<vmem>>, vector<2048x512xbf16>
    %cst = arith.constant dense<0.000000e+00> : vector<3x512xf32>
    %3 = tpu.matmul %1, %2, %cst {dimension_numbers = #tpu.dot_dimension_numbers<[1], [0], [0], [1], [0, 0, 1, 1], [], []>} : vector<3x2048xbf16>, vector<2048x512xbf16>, vector<3x512xf32> -> vector<3x512xf32>
    %c0_4 = arith.constant 0 : index
    %c0_5 = arith.constant 0 : index
    %4 = vector.load %arg4[%c0_4, %c0_5] : memref<1x512xf32, #tpu.memory_space<vmem>>, vector<1x512xf32>
    %5 = vector.broadcast %4 : vector<1x512xf32> to vector<3x512xf32>
    %6 = arith.addf %3, %5 : vector<3x512xf32>
    %cst_6 = arith.constant 0.000000e+00 : f32
    %7 = vector.broadcast %cst_6 : f32 to vector<3x512xf32>
    %8 = arith.maximumf %6, %7 : vector<3x512xf32>
    %9 = arith.truncf %8 : vector<3x512xf32> to vector<3x512xbf16>
    %c0_7 = arith.constant 0 : index
    %c0_8 = arith.constant 0 : index
    %10 = vector.load %arg5[%c0_7, %c0_8] : memref<512x128xbf16, #tpu.memory_space<vmem>>, vector<512x128xbf16>
    %cst_9 = arith.constant dense<0.000000e+00> : vector<3x128xf32>
    %11 = tpu.matmul %9, %10, %cst_9 {dimension_numbers = #tpu.dot_dimension_numbers<[1], [0], [0], [1], [0, 0, 1, 1], [], []>} : vector<3x512xbf16>, vector<512x128xbf16>, vector<3x128xf32> -> vector<3x128xf32>
    %c0_10 = arith.constant 0 : index
    %c0_11 = arith.constant 0 : index
    %12 = vector.load %arg6[%c0_10, %c0_11] : memref<1x128xf32, #tpu.memory_space<vmem>>, vector<1x128xf32>
    %13 = vector.broadcast %12 : vector<1x128xf32> to vector<3x128xf32>
    %14 = arith.addf %11, %13 : vector<3x128xf32>
    %15 = math.tanh %14 : vector<3x128xf32>
    %c0_12 = arith.constant 0 : index
    %c0_13 = arith.constant 0 : index
    %16 = vector.load %arg7[%c0_12, %c0_13] : memref<1x128xf32, #tpu.memory_space<vmem>>, vector<1x128xf32>
    %17 = vector.broadcast %16 : vector<1x128xf32> to vector<3x128xf32>
    %18 = arith.mulf %15, %17 : vector<3x128xf32>
    %cst_14 = arith.constant dense<0.000000e+00> : vector<3xf32>
    %19 = vector.multi_reduction <add>, %18, %cst_14 [1] : vector<3x128xf32> to vector<3xf32>
    %20 = vector.shape_cast %19 : vector<3xf32> to vector<3x1xf32>
    %c0_15 = arith.constant 0 : index
    %c0_16 = arith.constant 0 : index
    %21 = vector.load %arg8[%c0_15, %c0_16] : memref<1x1xf32, #tpu.memory_space<vmem>>, vector<1x1xf32>
    %22 = vector.broadcast %21 : vector<1x1xf32> to vector<3x1xf32>
    %23 = arith.addf %20, %22 : vector<3x1xf32>
    %c0_17 = arith.constant 0 : index
    %c0_18 = arith.constant 0 : index
    %c0_19 = arith.constant 0 : index
    %24 = vector.load %arg2[%c0_17, %c0_18, %c0_19] : memref<1x3x1xf32, #tpu.memory_space<vmem>>, vector<1x3x1xf32>
    %25 = vector.shape_cast %24 : vector<1x3x1xf32> to vector<3x1xf32>
    %26 = arith.addf %23, %25 : vector<3x1xf32>
    %cst_20 = arith.constant dense<0xFF800000> : vector<1xf32>
    %27 = vector.multi_reduction <maximumf>, %26, %cst_20 [0] : vector<3x1xf32> to vector<1xf32>
    %28 = vector.shape_cast %27 : vector<1xf32> to vector<1x1xf32>
    %29 = vector.broadcast %28 : vector<1x1xf32> to vector<3x1xf32>
    %30 = arith.subf %26, %29 : vector<3x1xf32>
    %31 = math.exp %30 : vector<3x1xf32>
    %cst_21 = arith.constant dense<0.000000e+00> : vector<1xf32>
    %32 = vector.multi_reduction <add>, %31, %cst_21 [0] : vector<3x1xf32> to vector<1xf32>
    %33 = vector.shape_cast %32 : vector<1xf32> to vector<1x1xf32>
    %34 = tpu.reciprocal %33 {approx = true} : vector<1x1xf32> -> vector<1x1xf32>
    %35 = vector.broadcast %34 : vector<1x1xf32> to vector<3x1xf32>
    %36 = arith.mulf %31, %35 : vector<3x1xf32>
    %c0_22 = arith.constant 0 : index
    %c0_23 = arith.constant 0 : index
    %c0_24 = arith.constant 0 : index
    %37 = vector.load %arg12[%c0_22, %c0_23, %c0_24] : memref<1x3x1xf32, #tpu.memory_space<vmem>>, vector<1x3x1xf32>
    %38 = vector.shape_cast %37 : vector<1x3x1xf32> to vector<3x1xf32>
    %39 = vector.shape_cast %36 : vector<3x1xf32> to vector<1x3x1xf32>
    tpu.vector_store %arg12[%c0_22, %c0_23, %c0_24], %39 {strides = array<i32>} : memref<1x3x1xf32, #tpu.memory_space<vmem>>, vector<1x3x1xf32>,
    %40 = vector.broadcast %36 : vector<3x1xf32> to vector<3x512xf32>
    %41 = arith.mulf %40, %8 : vector<3x512xf32>
    %cst_25 = arith.constant dense<0.000000e+00> : vector<512xf32>
    %42 = vector.multi_reduction <add>, %41, %cst_25 [0] : vector<3x512xf32> to vector<512xf32>
    %43 = vector.shape_cast %42 : vector<512xf32> to vector<1x512xf32>
    %44 = arith.truncf %43 : vector<1x512xf32> to vector<1x512xbf16>
    %c0_26 = arith.constant 0 : index
    %c0_27 = arith.constant 0 : index
    %45 = vector.load %arg9[%c0_26, %c0_27] : memref<512x128xbf16, #tpu.memory_space<vmem>>, vector<512x128xbf16>
    %cst_28 = arith.constant dense<0.000000e+00> : vector<1x128xf32>
    %46 = tpu.matmul %44, %45, %cst_28 {dimension_numbers = #tpu.dot_dimension_numbers<[1], [0], [0], [1], [0, 0, 1, 1], [], []>} : vector<1x512xbf16>, vector<512x128xbf16>, vector<1x128xf32> -> vector<1x128xf32>
    %c0_29 = arith.constant 0 : index
    %c0_30 = arith.constant 0 : index
    %47 = vector.load %arg10[%c0_29, %c0_30] : memref<1x128xf32, #tpu.memory_space<vmem>>, vector<1x128xf32>
    %48 = arith.addf %46, %47 : vector<1x128xf32>
    %c0_31 = arith.constant 0 : index
    %c0_32 = arith.constant 0 : index
    %c0_33 = arith.constant 0 : index
    %49 = vector.load %arg11[%c0_31, %c0_32, %c0_33] : memref<1x1x128xf32, #tpu.memory_space<vmem>>, vector<1x1x128xf32>
    %50 = vector.shape_cast %49 : vector<1x1x128xf32> to vector<1x128xf32>
    %51 = vector.shape_cast %48 : vector<1x128xf32> to vector<1x1x128xf32>
    tpu.vector_store %arg11[%c0_31, %c0_32, %c0_33], %51 {strides = array<i32>} : memref<1x1x128xf32, #tpu.memory_space<vmem>>, vector<1x1x128xf32>,
    return
  }
  func.func @transform_0(%arg0: i32) -> (i32, i32, i32) {
    %c0_i32 = arith.constant 0 : i32
    %c0_i32_0 = arith.constant 0 : i32
    %c0_i32_1 = arith.constant 0 : i32
    return %arg0, %c0_i32, %c0_i32_0 : i32, i32, i32
  }
  func.func @transform_1(%arg0: i32) -> (i32, i32, i32) {
    %c0_i32 = arith.constant 0 : i32
    %c0_i32_0 = arith.constant 0 : i32
    %c0_i32_1 = arith.constant 0 : i32
    return %arg0, %c0_i32, %c0_i32_0 : i32, i32, i32
  }
  func.func @transform_2(%arg0: i32) -> (i32, i32) {
    %c0_i32 = arith.constant 0 : i32
    %c0_i32_0 = arith.constant 0 : i32
    %c0_i32_1 = arith.constant 0 : i32
    return %c0_i32, %c0_i32_0 : i32, i32
  }
  func.func @transform_3(%arg0: i32) -> (i32, i32) {
    %c0_i32 = arith.constant 0 : i32
    %c0_i32_0 = arith.constant 0 : i32
    %c0_i32_1 = arith.constant 0 : i32
    return %c0_i32, %c0_i32_0 : i32, i32
  }
  func.func @transform_4(%arg0: i32) -> (i32, i32) {
    %c0_i32 = arith.constant 0 : i32
    %c0_i32_0 = arith.constant 0 : i32
    %c0_i32_1 = arith.constant 0 : i32
    return %c0_i32, %c0_i32_0 : i32, i32
  }
  func.func @transform_5(%arg0: i32) -> (i32, i32) {
    %c0_i32 = arith.constant 0 : i32
    %c0_i32_0 = arith.constant 0 : i32
    %c0_i32_1 = arith.constant 0 : i32
    return %c0_i32, %c0_i32_0 : i32, i32
  }
  func.func @transform_6(%arg0: i32) -> (i32, i32) {
    %c0_i32 = arith.constant 0 : i32
    %c0_i32_0 = arith.constant 0 : i32
    %c0_i32_1 = arith.constant 0 : i32
    return %c0_i32, %c0_i32_0 : i32, i32
  }
  func.func @transform_7(%arg0: i32) -> (i32, i32) {
    %c0_i32 = arith.constant 0 : i32
    %c0_i32_0 = arith.constant 0 : i32
    %c0_i32_1 = arith.constant 0 : i32
    return %c0_i32, %c0_i32_0 : i32, i32
  }
  func.func @transform_8(%arg0: i32) -> (i32, i32) {
    %c0_i32 = arith.constant 0 : i32
    %c0_i32_0 = arith.constant 0 : i32
    %c0_i32_1 = arith.constant 0 : i32
    return %c0_i32, %c0_i32_0 : i32, i32
  }
  func.func @transform_9(%arg0: i32) -> (i32, i32) {
    %c0_i32 = arith.constant 0 : i32
    %c0_i32_0 = arith.constant 0 : i32
    %c0_i32_1 = arith.constant 0 : i32
    return %c0_i32, %c0_i32_0 : i32, i32
  }
  func.func @transform_10(%arg0: i32) -> (i32, i32, i32) {
    %c0_i32 = arith.constant 0 : i32
    %c0_i32_0 = arith.constant 0 : i32
    %c0_i32_1 = arith.constant 0 : i32
    return %arg0, %c0_i32, %c0_i32_0 : i32, i32, i32
  }
  func.func @transform_11(%arg0: i32) -> (i32, i32, i32) {
    %c0_i32 = arith.constant 0 : i32
    %c0_i32_0 = arith.constant 0 : i32
    %c0_i32_1 = arith.constant 0 : i32
    return %arg0, %c0_i32, %c0_i32_0 : i32, i32, i32
  }
}

</mosaic_0001>

<bundles_post_ra>
// kernel: multi_input_net_forward.3
= control target key start
LH: loop header
LB: loop body
LE: loop exit
PB: predicated region body
PF: predicated region fallthrough
CT: control target
= control target key end

     0   :  { %s1523_s12 = smov 0   ;;  %s1901_s0 = inlined_call_operand.vmem [shape: bf16[5,576,25], index: 0, kind: input, shape index: {}]   ;;  %s1902_s1 = inlined_call_operand.vmem [shape: bf16[25,128], index: 1, kind: input, shape index: {}]   ;;  %s1903_s2 = inlined_call_operand.vmem [shape: f32[1,128], index: 2, kind: input, shape index: {}]   ;;  %s1904_s3 = inlined_call_operand.vmem [shape: bf16[5,144,128], index: 3, kind: output, shape index: {}]  }
   0x1 LB: > { %s1154_s13 = sadd.s32 4294967295, %s1500_s12   ;;  %p1158_p0 = scmp.ge.s32.totalorder %s1500_s12, 1  ;;  %s1500_s12 = sphi %s1523_s12, %s13_s12  }
   0x2   : > { %p137_p1 = scmp.lt.s32.totalorder %s1500_s12, 6 }
   0x4   : > { %p138_p2 = pnand %p1158_p0, %p137_p1 }
   0x5   : > { %v1456_v0 = vld [vmem:[%s1902_s1] sm:$0xff] (!%p138_p2)   ;;  %vm555_vm0 = vcmask (!%p138_p2), 1043456   ;;  %v1457_v1 = vld [vmem:[%s1902_s1 + $0x8] sm:$0x1f] (!%p138_p2)   ;;  %vm556_vm1 = vcmask (!%p138_p2), 1044480   ;;  %p161_p3 = scmp.lt.s32.totalorder (!%p138_p2), %s1154_s13, 4 }
   0x6   : > { %141 = sbr.rel (%p138_p2) target bundleno = 314 (0x13a), region = 32  ;;  %1365 = vmatprep.subr.bf16.mxu0 (!%p138_p2), %v1456_v0  ;;  %1441 = vmatprep.subr.bf16.mxu1 (!%p138_p2), %v1456_v0  ;;  %v1502_v2 = vmov (!%p138_p2), 65535   ;;  %vm446_vm2 = vcmask (!%p138_p2), 203776   ;;  %v1620_v61 = vld [vmem:[%s1903_s2] ss:$0 sm:$0xff] (!%p138_p2) }
   0x7   : > { %1366 = vmatpush3.bf16.msra.mxu0 (!%p138_p2), %v1456_v0  ;;  %1443 = vmatpush3.bf16.msra.mxu1 (!%p138_p2), %v1456_v0  ;;  %v557_v3 = vsel (!%p138_p2), %vm555_vm0, 4294967295, %v1502_v2 }
   0x8   : > { %v558_v4 = vsel (!%p138_p2), %vm556_vm1, %v557_v3, 0 }
   0x9   : > { %v560_v5 = vand.u32 (!%p138_p2), %v1457_v1, %v558_v4 }
   0xb   : > { %1367 = vmatprep.subr.bf16.mxu0 (!%p138_p2), %v560_v5  ;;  %1442 = vmatprep.subr.bf16.mxu1 (!%p138_p2), %v560_v5 }
   0xc   : > { %1368 = vmatpush3.bf16.msra.mxu0 (!%p138_p2), %v560_v5  ;;  %1444 = vmatpush3.bf16.msra.mxu1 (!%p138_p2), %v560_v5 }
   0xd   : > { %s1921_s13 = smov (!%p161_p3, %s1154_s13), 4 }
   0xe   : > { %s1445_s18 = smul.u32 288, %s1921_s13 }
   0xf   : > { %s1446_s24 = smul.u32 72, %s1921_s13 }
  0x10   : > { %s1543_s21 = scalar_lea.vmem %s1901_s0, %s1445_s18 }
  0x11   : > { %v1458_v6 = vld [vmem:[%s1543_s21] sm:$0xff]   ;;  %v1459_v7 = vld [vmem:[%s1543_s21 + $0x90] sm:$0xff]   ;;  %v1460_v8 = vld [vmem:[%s1543_s21 + $0x8] sm:$0xff]   ;;  %s1779_s27 = scalar_lea.vmem %s1904_s3, %s1446_s24 }
  0x12   : > { %1369 = vmatprep.mubr.msk.bf16.mxu0 %vm446_vm2, %v1458_v6  ;;  %1405 = vmatprep.mubr.msk.bf16.mxu1 %vm446_vm2, %v1459_v7  ;;  %v1461_v9 = vld [vmem:[%s1543_s21 + $0x98] sm:$0xff]   ;;  %v1462_v10 = vld [vmem:[%s1543_s21 + $0x10] sm:$0xff]   ;;  %v1463_v11 = vld [vmem:[%s1543_s21 + $0xa0] sm:$0xff]  }
  0x13   : > { %1370 = vmatmul.mubr.msk.bf16.vlgmr.msra.gmra.mrb[0].mxu0 %vm446_vm2, %v1460_v8  ;;  %1406 = vmatmul.mubr.msk.bf16.vlgmr.msra.gmra.mrb[0].mxu1 %vm446_vm2, %v1461_v9  ;;  %v1464_v12 = vld [vmem:[%s1543_s21 + $0x18] sm:$0xff]   ;;  %v1465_v13 = vld [vmem:[%s1543_s21 + $0xa8] sm:$0xff]   ;;  %v1466_v14 = vld [vmem:[%s1543_s21 + $0x20] sm:$0xff]  }
  0x14   : > { %1373 = vmatprep.mubr.msk.bf16.mxu0 %vm446_vm2, %v1462_v10  ;;  %1409 = vmatprep.mubr.msk.bf16.mxu1 %vm446_vm2, %v1463_v11  ;;  %v1467_v15 = vld [vmem:[%s1543_s21 + $0xb0] sm:$0xff]   ;;  %v1468_v16 = vld [vmem:[%s1543_s21 + $0x28] sm:$0xff]   ;;  %v1469_v17 = vld [vmem:[%s1543_s21 + $0xb8] sm:$0xff]  }
  0x15   : > { %v1470_v18 = vld [vmem:[%s1543_s21 + $0x30] sm:$0xff]   ;;  %v1471_v19 = vld [vmem:[%s1543_s21 + $0xc0] sm:$0xff]   ;;  %v1472_v20 = vld [vmem:[%s1543_s21 + $0x38] sm:$0xff]  }
  0x16   : > { %v1473_v21 = vld [vmem:[%s1543_s21 + $0xc8] sm:$0xff]   ;;  %v1474_v22 = vld [vmem:[%s1543_s21 + $0x40] sm:$0xff]   ;;  %v1475_v23 = vld [vmem:[%s1543_s21 + $0xd0] sm:$0xff]  }
  0x17   : > { %v1476_v24 = vld [vmem:[%s1543_s21 + $0x48] sm:$0xff]   ;;  %v1477_v25 = vld [vmem:[%s1543_s21 + $0xd8] sm:$0xff]   ;;  %v1478_v26 = vld [vmem:[%s1543_s21 + $0x50] sm:$0xff]  }
  0x18   : > { %v1479_v27 = vld [vmem:[%s1543_s21 + $0xe0] sm:$0xff]   ;;  %v1480_v28 = vld [vmem:[%s1543_s21 + $0x58] sm:$0xff]   ;;  %v1481_v29 = vld [vmem:[%s1543_s21 + $0xe8] sm:$0xff]  }
  0x19   : > { %v1482_v30 = vld [vmem:[%s1543_s21 + $0x60] sm:$0xff]   ;;  %v1483_v31 = vld [vmem:[%s1543_s21 + $0xf0] sm:$0xff]   ;;  %v1484_v32 = vld [vmem:[%s1543_s21 + $0x68] sm:$0xff]  }
  0x1a   : > { %v1485_v33 = vld [vmem:[%s1543_s21 + $0xf8] sm:$0xff]   ;;  %v1486_v34 = vld [vmem:[%s1543_s21 + $0x70] sm:$0xff]   ;;  %v1487_v35 = vld [vmem:[%s1543_s21 + $0x100] sm:$0xff]  }
  0x1b   : > { %1374 = vmatmul.mubr.msk.bf16.gmra.mrb[4].mxu0 %vm446_vm2, %v1464_v12  ;;  %1410 = vmatmul.mubr.msk.bf16.gmra.mrb[4].mxu1 %vm446_vm2, %v1465_v13  ;;  %v1488_v36 = vld [vmem:[%s1543_s21 + $0x78] sm:$0xff]   ;;  %v1489_v37 = vld [vmem:[%s1543_s21 + $0x108] sm:$0xff]   ;;  %v1490_v38 = vld [vmem:[%s1543_s21 + $0x80] sm:$0xff]  }
  0x1c   : > { %1377 = vmatprep.mubr.msk.bf16.mxu0 %vm446_vm2, %v1466_v14  ;;  %1413 = vmatprep.mubr.msk.bf16.mxu1 %vm446_vm2, %v1467_v15  ;;  %v1491_v39 = vld [vmem:[%s1543_s21 + $0x110] sm:$0xff]   ;;  %v1492_v40 = vld [vmem:[%s1543_s21 + $0x88] sm:$0xff]   ;;  %v1493_v41 = vld [vmem:[%s1543_s21 + $0x118] sm:$0xff]  }
  0x23   : > { %1378 = vmatmul.mubr.msk.bf16.gmra.mrb[8].mxu0 %vm446_vm2, %v1468_v16  ;;  %1414 = vmatmul.mubr.msk.bf16.gmra.mrb[8].mxu1 %vm446_vm2, %v1469_v17 }
  0x24   : > { %1381 = vmatprep.mubr.msk.bf16.mxu0 %vm446_vm2, %v1470_v18  ;;  %1417 = vmatprep.mubr.msk.bf16.mxu1 %vm446_vm2, %v1471_v19 }
  0x2b   : > { %1382 = vmatmul.mubr.msk.bf16.gmra.mrb[12].mxu0 %vm446_vm2, %v1472_v20  ;;  %1418 = vmatmul.mubr.msk.bf16.gmra.mrb[12].mxu1 %vm446_vm2, %v1473_v21 }
  0x2c   : > { %1385 = vmatprep.mubr.msk.bf16.mxu0 %vm446_vm2, %v1474_v22  ;;  %1421 = vmatprep.mubr.msk.bf16.mxu1 %vm446_vm2, %v1475_v23 }
  0x33   : > { %1386 = vmatmul.mubr.msk.bf16.gmra.mrb[16].mxu0 %vm446_vm2, %v1476_v24  ;;  %1422 = vmatmul.mubr.msk.bf16.gmra.mrb[16].mxu1 %vm446_vm2, %v1477_v25 }
  0x34   : > { %1389 = vmatprep.mubr.msk.bf16.mxu0 %vm446_vm2, %v1478_v26  ;;  %1425 = vmatprep.mubr.msk.bf16.mxu1 %vm446_vm2, %v1479_v27 }
  0x3b   : > { %1390 = vmatmul.mubr.msk.bf16.gmra.mrb[20].mxu0 %vm446_vm2, %v1480_v28  ;;  %1426 = vmatmul.mubr.msk.bf16.gmra.mrb[20].mxu1 %vm446_vm2, %v1481_v29 }
  0x3c   : > { %1393 = vmatprep.mubr.msk.bf16.mxu0 %vm446_vm2, %v1482_v30  ;;  %1429 = vmatprep.mubr.msk.bf16.mxu1 %vm446_vm2, %v1483_v31 }
  0x43   : > { %1394 = vmatmul.mubr.msk.bf16.gmra.mrb[24].mxu0 %vm446_vm2, %v1484_v32  ;;  %1430 = vmatmul.mubr.msk.bf16.gmra.mrb[24].mxu1 %vm446_vm2, %v1485_v33 }
  0x44   : > { %1397 = vmatprep.mubr.msk.bf16.mxu0 %vm446_vm2, %v1486_v34  ;;  %1433 = vmatprep.mubr.msk.bf16.mxu1 %vm446_vm2, %v1487_v35 }
  0x4b   : > { %1398 = vmatmul.mubr.msk.bf16.gmra.mrb[28].mxu0 %vm446_vm2, %v1488_v36  ;;  %1434 = vmatmul.mubr.msk.bf16.gmra.mrb[28].mxu1 %vm446_vm2, %v1489_v37 }
  0x4c   : > { %1401 = vmatprep.mubr.msk.bf16.mxu0 %vm446_vm2, %v1490_v38  ;;  %1437 = vmatprep.mubr.msk.bf16.mxu1 %vm446_vm2, %v1491_v39 }
  0x53   : > { %1402 = vmatmul.mubr.msk.bf16.gmra.mrb[32].mxu0 %vm446_vm2, %v1492_v40  ;;  %1438 = vmatmul.mubr.msk.bf16.gmra.mrb[32].mxu1 %vm446_vm2, %v1493_v41 }
  0xe6   : > { %v1371_v42 = vpop.f32.mrb[0].mxu0  ;;  %v1407_v43 = vpop.f32.mrb[0].mxu1 }
  0xe7   : > { %v596_v44 = vpop.f32.mrb[1].mxu0  ;;  %v740_v45 = vpop.f32.mrb[1].mxu1  ;;  %v1623_v3 = vadd.f32 %v1371_v42, %v1620_v61  ;;  %v1626_v4 = vadd.f32 %v1407_v43, %v1620_v61 }
  0xe8   : > { %v1372_v46 = vpop.f32.mrb[2].mxu0  ;;  %v1408_v47 = vpop.f32.mrb[2].mxu1  ;;  %v1629_v5 = vadd.f32 %v1620_v61, %v596_v44  ;;  %v1632_v6 = vadd.f32 %v1620_v61, %v740_v45 }
  0xe9   : > { %v599_v48 = vpop.f32.mrb[3].mxu0  ;;  %v743_v49 = vpop.f32.mrb[3].mxu1  ;;  %v1635_v7 = vadd.f32 %v1372_v46, %v1620_v61  ;;  %v885_v9 = vmax.f32 %v1623_v3, 0.0  ;;  %v921_v10 = vmax.f32 %v1626_v4, 0.0  ;;  %v1641_v12 = vadd.f32 %v1408_v47, %v1620_v61 }
  0xea   : > { %v883_v11 = vmax.f32 %v1629_v5, 0.0  ;;  %v919_v15 = vmax.f32 %v1632_v6, 0.0  ;;  %v1645_v16 = vadd.f32 %v1620_v61, %v599_v48  ;;  %v1648_v17 = vadd.f32 %v1620_v61, %v743_v49 }
  0xeb   : > { %v886_v27 = vmax.f32 %v1635_v7, 0.0  ;;  %v922_v32 = vmax.f32 %v1641_v12, 0.0 }
  0xec   : > { %v884_v36 = vmax.f32 %v1645_v16, 0.0  ;;  %v920_v37 = vmax.f32 %v1648_v17, 0.0 }
  0xee   : > { %v1375_v50 = vpop.f32.mrb[4].mxu0  ;;  %v1411_v51 = vpop.f32.mrb[4].mxu1 }
  0xef   : > { %v612_v52 = vpop.f32.mrb[5].mxu0  ;;  %v756_v53 = vpop.f32.mrb[5].mxu1  ;;  %v1651_v18 = vadd.f32 %v1375_v50, %v1620_v61  ;;  %v1656_v21 = vadd.f32 %v1411_v51, %v1620_v61 }
  0xf0   : > { %v1376_v54 = vpop.f32.mrb[6].mxu0  ;;  %v1412_v55 = vpop.f32.mrb[6].mxu1  ;;  %v1659_v22 = vadd.f32 %v1620_v61, %v612_v52  ;;  %v1662_v23 = vadd.f32 %v1620_v61, %v756_v53 }
  0xf1   : > { %v615_v56 = vpop.f32.mrb[7].mxu0  ;;  %v759_v57 = vpop.f32.mrb[7].mxu1  ;;  %v1665_v24 = vadd.f32 %v1376_v54, %v1620_v61  ;;  %v1671_v28 = vadd.f32 %v1412_v55, %v1620_v61 }
  0xf2   : > { %v1674_v29 = vadd.f32 %v1620_v61, %v615_v56  ;;  %v1677_v30 = vadd.f32 %v1620_v61, %v759_v57  ;;  %v887_v41 = vmax.f32 %v1659_v22, 0.0  ;;  %v923_v42 = vmax.f32 %v1662_v23, 0.0 }
  0xf4   : > { %v888_v45 = vmax.f32 %v1674_v29, 0.0  ;;  %v924_v46 = vmax.f32 %v1677_v30, 0.0 }
  0xf6   : > { %v1379_v58 = vpop.f32.mrb[8].mxu0  ;;  %v1415_v59 = vpop.f32.mrb[8].mxu1 }
  0xf7   : > { %v628_v60 = vpop.f32.mrb[9].mxu0  ;;  %v772_v62 = vpop.f32.mrb[9].mxu1  ;;  %v1683_v33 = vadd.f32 %v1379_v58, %v1620_v61  ;;  %v1686_v34 = vadd.f32 %v1415_v59, %v1620_v61 }
  0xf8   : > { %v1380_v63 = vpop.f32.mrb[10].mxu0  ;;  %v1416_v0 = vpop.f32.mrb[10].mxu1  ;;  %v1689_v35 = vadd.f32 %v1620_v61, %v628_v60  ;;  %v1695_v39 = vadd.f32 %v1620_v61, %v772_v62 }
  0xf9   : > { %v631_v1 = vpop.f32.mrb[11].mxu0  ;;  %v775_v2 = vpop.f32.mrb[11].mxu1  ;;  %v1705_v47 = vadd.f32 %v1380_v63, %v1620_v61  ;;  %v1715_v56 = vadd.f32 %v1416_v0, %v1620_v61 }
  0xfa   : > { %v891_v51 = vmax.f32 %v1689_v35, 0.0  ;;  %v927_v55 = vmax.f32 %v1695_v39, 0.0  ;;  %v1718_v57 = vadd.f32 %v1620_v61, %v631_v1  ;;  %v1724_v62 = vadd.f32 %v1620_v61, %v775_v2 }
  0xfc   : > { %v1907_v35 = vmax.f32 %v1718_v57, 0.0 }
  0xfe   : > { %v1383_v8 = vpop.f32.mrb[12].mxu0  ;;  %v1419_v13 = vpop.f32.mrb[12].mxu1 }
  0xff   : > { %v644_v14 = vpop.f32.mrb[13].mxu0  ;;  %v788_v19 = vpop.f32.mrb[13].mxu1  ;;  %v1727_v63 = vadd.f32 %v1383_v8, %v1620_v61  ;;  %v1734_v50 = vadd.f32 %v1419_v13, %v1620_v61 }
 0x100   : > { %v1653_v20 = vpop.f32.mrb[14].mxu0  ;;  %v1667_v25 = vpop.f32.mrb[14].mxu1  ;;  %v1740_v8 = vadd.f32 %v1620_v61, %v644_v14 }
 0x101   : > { %v647_v26 = vpop.f32.mrb[15].mxu0  ;;  %v1679_v31 = vpop.f32.mrb[15].mxu1 }
 0x102   : > { %v1754_v40 = vadd.f32 %v1620_v61, %v647_v26  ;;  %v1771_v5 = vadd.f32 %v1620_v61, %v1679_v31 }
 0x104   : > { %v932_v23 = vmax.f32 %v1771_v5, 0.0  ;;  %v1916_v5 = vmax.f32 %v1705_v47, 0.0 }
 0x106   : > { %v1387_v48 = vpop.f32.mrb[16].mxu0  ;;  %v1423_v53 = vpop.f32.mrb[16].mxu1 }
 0x107   : > { %v669_v52 = vadd.f32 %v1387_v48, %v1620_v61  ;;  %v1711_v54 = vpop.f32.mrb[17].mxu0  ;;  %v813_v58 = vadd.f32 %v1423_v53, %v1620_v61  ;;  %v1721_v59 = vpop.f32.mrb[17].mxu1 }
 0x108   : > { %v1388_v60 = vpop.f32.mrb[18].mxu0  ;;  %v1424_v48 = vpop.f32.mrb[18].mxu1 }
 0x109   : > { %v901_v16 = vmax.f32 %v669_v52, 0.0  ;;  %v672_v17 = vadd.f32 %v1388_v60, %v1620_v61  ;;  %v1730_v0 = vpop.f32.mrb[19].mxu0  ;;  %v937_v53 = vmax.f32 %v813_v58, 0.0  ;;  %v816_v49 = vadd.f32 %v1424_v48, %v1620_v61  ;;  %v1737_v2 = vpop.f32.mrb[19].mxu1 }
 0x10a   : > { %v1743_v52 = vadd.f32 %v1620_v61, %v788_v19  ;;  %v1835_v39 = vadd.f32 %v1620_v61, %v1730_v0  ;;  %v1909_v0 = vmax.f32 %v1665_v24, 0.0 }
 0x10b   : > { %v955_v60 = vmax.f32 %v883_v11, %v901_v16  ;;  %v902_v44 = vmax.f32 %v672_v17, 0.0  ;;  %v973_v58 = vmax.f32 %v919_v15, %v937_v53  ;;  %v938_v48 = vmax.f32 %v816_v49, 0.0 }
 0x10c   : > { %v1760_v11 = vadd.f32 %v1653_v20, %v1620_v61  ;;  %v1766_v53 = vadd.f32 %v1667_v25, %v1620_v61 }
 0x10d   : > { %v956_v19 = vmax.f32 %v884_v36, %v902_v44  ;;  %v991_v16 = vmax.f32 %v955_v60, %v973_v58  ;;  %v974_v17 = vmax.f32 %v920_v37, %v938_v48 }
 0x10e   : > { %v1391_v6 = vpop.f32.mrb[20].mxu0  ;;  %v1427_v36 = vpop.f32.mrb[20].mxu1 }
 0x10f   : > { %v685_v26 = vadd.f32 %v1391_v6, %v1620_v61  ;;  %v676_v44 = vpop.f32.mrb[21].mxu0  ;;  %v992_v20 = vmax.f32 %v956_v19, %v974_v17  ;;  %v829_v37 = vadd.f32 %v1427_v36, %v1620_v61  ;;  %v820_v58 = vpop.f32.mrb[21].mxu1 }
 0x110   : > { %v677_v60 = vadd.f32 %v1620_v61, %v676_v44  ;;  %v1392_v48 = vpop.f32.mrb[22].mxu0  ;;  %v821_v6 = vadd.f32 %v1620_v61, %v820_v58  ;;  %v1428_v19 = vpop.f32.mrb[22].mxu1 }
 0x111   : > { %v905_v25 = vmax.f32 %v685_v26, 0.0  ;;  %v688_v31 = vadd.f32 %v1392_v48, %v1620_v61  ;;  %v679_v17 = vpop.f32.mrb[23].mxu0  ;;  %v1277_v36 = vpack.c.bf16 %v992_v20, %v991_v16  ;;  %v941_v1 = vmax.f32 %v829_v37, 0.0  ;;  %v823_v15 = vpop.f32.mrb[23].mxu1 }
 0x112   : > { %v903_v44 = vmax.f32 %v677_v60, 0.0  ;;  %v832_v49 = vadd.f32 %v1428_v19, %v1620_v61  ;;  %v939_v43 = vmax.f32 %v821_v6, 0.0  ;;  %v680_v38 = vadd.f32 %v1620_v61, %v679_v17 }
 0x113   : > { %v959_v14 = vmax.f32 %v887_v41, %v905_v25  ;;  %v906_v13 = vmax.f32 %v688_v31, 0.0  ;;  %1278 = vst [vmem:[%s1779_s27] sm:$0xff] %v1277_v36   ;;  %v977_v26 = vmax.f32 %v923_v42, %v941_v1  ;;  %v824_v20 = vadd.f32 %v1620_v61, %v823_v15 }
 0x114   : > { %v957_v58 = vmax.f32 %v885_v9, %v903_v44  ;;  %v942_v16 = vmax.f32 %v832_v49, 0.0  ;;  %v1795_v37 = vadd.f32 %v1620_v61, %v1711_v54  ;;  %v975_v22 = vmax.f32 %v921_v10, %v939_v43 }
 0x115   : > { %v960_v41 = vmax.f32 %v888_v45, %v906_v13  ;;  %v904_v60 = vmax.f32 %v680_v38, 0.0  ;;  %v995_v42 = vmax.f32 %v959_v14, %v977_v26  ;;  %v940_v9 = vmax.f32 %v824_v20, 0.0 }
 0x116   : > { %v978_v3 = vmax.f32 %v924_v46, %v942_v16  ;;  %v1395_v1 = vpop.f32.mrb[24].mxu0  ;;  %v1806_v15 = vadd.f32 %v1620_v61, %v1721_v59  ;;  %v993_v54 = vmax.f32 %v957_v58, %v975_v22  ;;  %v1431_v29 = vpop.f32.mrb[24].mxu1  ;;  %v899_v59 = vmax.f32 %v1795_v37, 0.0 }
 0x117   : > { %v958_v4 = vmax.f32 %v886_v27, %v904_v60  ;;  %v701_v10 = vadd.f32 %v1395_v1, %v1620_v61  ;;  %v692_v38 = vpop.f32.mrb[25].mxu0  ;;  %v976_v45 = vmax.f32 %v922_v32, %v940_v9  ;;  %v845_v30 = vadd.f32 %v1431_v29, %v1620_v61  ;;  %v836_v13 = vpop.f32.mrb[25].mxu1 }
 0x118   : > { %v996_v43 = vmax.f32 %v960_v41, %v978_v3  ;;  %v693_v46 = vadd.f32 %v1620_v61, %v692_v38  ;;  %v1396_v14 = vpop.f32.mrb[26].mxu0  ;;  %v837_v7 = vadd.f32 %v1620_v61, %v836_v13  ;;  %v1432_v48 = vpop.f32.mrb[26].mxu1  ;;  %v1905_v20 = vmax.f32 %v1651_v18, 0.0 }
 0x119   : > { %v909_v49 = vmax.f32 %v701_v10, 0.0  ;;  %v704_v27 = vadd.f32 %v1396_v14, %v1620_v61  ;;  %v695_v25 = vpop.f32.mrb[27].mxu0  ;;  %v994_v31 = vmax.f32 %v958_v4, %v976_v45  ;;  %v945_v12 = vmax.f32 %v845_v30, 0.0  ;;  %v839_v19 = vpop.f32.mrb[27].mxu1 }
 0x11a   : > { %v1287_v6 = vpack.c.bf16 %v996_v43, %v995_v42  ;;  %v907_v32 = vmax.f32 %v693_v46, 0.0  ;;  %v943_v36 = vmax.f32 %v837_v7, 0.0  ;;  %v848_v26 = vadd.f32 %v1432_v48, %v1620_v61 }
 0x11b   : > { %v963_v17 = vmax.f32 %v891_v51, %v909_v49  ;;  %v910_v44 = vmax.f32 %v704_v27, 0.0  ;;  %v1282_v58 = vpack.c.bf16 %v994_v31, %v993_v54  ;;  %v981_v16 = vmax.f32 %v927_v55, %v945_v12 }
 0x11c   : > { %1320 = vst [vmem:[%s1779_s27 + $0x10] sm:$0xff] %v1287_v6   ;;  %v961_v22 = vmax.f32 %v1905_v20, %v907_v32  ;;  %v696_v41 = vadd.f32 %v1620_v61, %v695_v25  ;;  %v1906_v60 = vmax.f32 %v1656_v21, 0.0  ;;  %v946_v3 = vmax.f32 %v848_v26, 0.0 }
 0x11d   : > { %v964_v51 = vmax.f32 %v1907_v35, %v910_v44  ;;  %v840_v9 = vadd.f32 %v1620_v61, %v839_v19  ;;  %v935_v1 = vmax.f32 %v1806_v15, 0.0  ;;  %1319 = vst [vmem:[%s1779_s27 + $0x8] sm:$0xff] %v1282_v58   ;;  %v999_v18 = vmax.f32 %v963_v17, %v981_v16 }
 0x11e   : > { %v979_v42 = vmax.f32 %v1906_v60, %v943_v36  ;;  %v908_v55 = vmax.f32 %v696_v41, 0.0  ;;  %v1399_v54 = vpop.f32.mrb[28].mxu0  ;;  %v1908_v21 = vmax.f32 %v1724_v62, 0.0  ;;  %v1435_v38 = vpop.f32.mrb[28].mxu1  ;;  %v1843_v45 = vadd.f32 %v1620_v61, %v1737_v2 }
 0x11f   : > { %v944_v29 = vmax.f32 %v840_v9, 0.0  ;;  %v717_v57 = vadd.f32 %v1399_v54, %v1620_v61  ;;  %v708_v43 = vpop.f32.mrb[29].mxu0  ;;  %v861_v46 = vadd.f32 %v1435_v38, %v1620_v61  ;;  %v852_v14 = vpop.f32.mrb[29].mxu1  ;;  %v1910_v7 = vmax.f32 %v1671_v28, 0.0 }
 0x120   : > { %v997_v4 = vmax.f32 %v961_v22, %v979_v42  ;;  %v982_v10 = vmax.f32 %v1908_v21, %v946_v3  ;;  %v962_v30 = vmax.f32 %v1909_v0, %v908_v55  ;;  %v709_v13 = vadd.f32 %v1620_v61, %v708_v43  ;;  %v1400_v49 = vpop.f32.mrb[30].mxu0  ;;  %v1436_v6 = vpop.f32.mrb[30].mxu1 }
 0x121   : > { %v980_v27 = vmax.f32 %v1910_v7, %v944_v29  ;;  %v913_v48 = vmax.f32 %v717_v57, 0.0  ;;  %v853_v25 = vadd.f32 %v1620_v61, %v852_v14  ;;  %v711_v2 = vpop.f32.mrb[31].mxu0  ;;  %v949_v31 = vmax.f32 %v861_v46, 0.0  ;;  %v855_v19 = vpop.f32.mrb[31].mxu1 }
 0x122   : > { %v1000_v62 = vmax.f32 %v964_v51, %v982_v10  ;;  %v911_v12 = vmax.f32 %v709_v13, 0.0  ;;  %v720_v24 = vadd.f32 %v1400_v49, %v1620_v61  ;;  %v864_v32 = vadd.f32 %v1436_v6, %v1620_v61 }
 0x123   : > { %v998_v36 = vmax.f32 %v962_v30, %v980_v27  ;;  %v1911_v44 = vmax.f32 %v1740_v8, 0.0  ;;  %v947_v28 = vmax.f32 %v853_v25, 0.0  ;;  %v1912_v58 = vmax.f32 %v1743_v52, 0.0 }
 0x124   : > { %v1297_v17 = vpack.c.bf16 %v1000_v62, %v999_v18  ;;  %v1913_v20 = vmax.f32 %v1683_v33, 0.0  ;;  %v914_v41 = vmax.f32 %v720_v24, 0.0  ;;  %v950_v60 = vmax.f32 %v864_v32, 0.0 }
 0x125   : > { %v967_v26 = vmax.f32 %v1911_v44, %v913_v48  ;;  %v985_v16 = vmax.f32 %v1912_v58, %v949_v31  ;;  %v1292_v42 = vpack.c.bf16 %v998_v36, %v997_v4  ;;  %v1914_v35 = vmax.f32 %v1686_v34, 0.0 }
 0x126   : > { %v965_v22 = vmax.f32 %v1913_v20, %v911_v12  ;;  %1322 = vst [vmem:[%s1779_s27 + $0x20] sm:$0xff] %v1297_v17   ;;  %v712_v3 = vadd.f32 %v1620_v61, %v711_v2  ;;  %v856_v8 = vadd.f32 %v1620_v61, %v855_v19  ;;  %v900_v9 = vmax.f32 %v1835_v39, 0.0  ;;  %v1403_v54 = vpop.f32.mrb[32].mxu0  ;;  %v1439_v29 = vpop.f32.mrb[32].mxu1 }
 0x127   : > { %v983_v51 = vmax.f32 %v1914_v35, %v947_v28  ;;  %v1003_v18 = vmax.f32 %v967_v26, %v985_v16  ;;  %v1915_v52 = vmax.f32 %v1754_v40, 0.0  ;;  %v986_v33 = vmax.f32 %v932_v23, %v950_v60  ;;  %1321 = vst [vmem:[%s1779_s27 + $0x18] sm:$0xff] %v1292_v42   ;;  %v724_v57 = vpop.f32.mrb[33].mxu0  ;;  %v868_v0 = vpop.f32.mrb[33].mxu1 }
 0x128   : > { %v912_v4 = vmax.f32 %v712_v3, 0.0  ;;  %v948_v10 = vmax.f32 %v856_v8, 0.0  ;;  %v733_v34 = vadd.f32 %v1403_v54, %v1620_v61  ;;  %v936_v38 = vmax.f32 %v1843_v45, 0.0  ;;  %v1404_v30 = vpop.f32.mrb[34].mxu0  ;;  %v1440_v62 = vpop.f32.mrb[34].mxu1 }
 0x129   : > { %v968_v55 = vmax.f32 %v1915_v52, %v914_v41  ;;  %v1001_v21 = vmax.f32 %v965_v22, %v983_v51  ;;  %v877_v39 = vadd.f32 %v1439_v29, %v1620_v61  ;;  %v725_v40 = vadd.f32 %v1620_v61, %v724_v57  ;;  %v727_v7 = vpop.f32.mrb[35].mxu0  ;;  %v871_v6 = vpop.f32.mrb[35].mxu1 }
 0x12a   : > { %v966_v23 = vmax.f32 %v1916_v5, %v912_v4  ;;  %v1917_v46 = vmax.f32 %v1715_v56, 0.0  ;;  %v917_v14 = vmax.f32 %v733_v34, 0.0  ;;  %v869_v49 = vadd.f32 %v1620_v61, %v868_v0 }
 0x12b   : > { %v1004_v43 = vmax.f32 %v968_v55, %v986_v33  ;;  %v953_v27 = vmax.f32 %v877_v39, 0.0  ;;  %v915_v48 = vmax.f32 %v725_v40, 0.0  ;;  %v736_v25 = vadd.f32 %v1404_v30, %v1620_v61 }
 0x12c   : > { %v984_v13 = vmax.f32 %v1917_v46, %v948_v10  ;;  %v971_v47 = vmax.f32 %v899_v59, %v917_v14  ;;  %v951_v31 = vmax.f32 %v869_v49, 0.0  ;;  %v880_v56 = vadd.f32 %v1440_v62, %v1620_v61 }
 0x12d   : > { %v1307_v45 = vpack.c.bf16 %v1004_v43, %v1003_v18  ;;  %v989_v12 = vmax.f32 %v935_v1, %v953_v27  ;;  %v1918_v24 = vmax.f32 %v1727_v63, 0.0  ;;  %v918_v19 = vmax.f32 %v736_v25, 0.0 }
 0x12e   : > { %v1002_v2 = vmax.f32 %v966_v23, %v984_v13  ;;  %v728_v17 = vadd.f32 %v1620_v61, %v727_v7  ;;  %v1919_v44 = vmax.f32 %v1734_v50, 0.0  ;;  %v954_v37 = vmax.f32 %v880_v56, 0.0 }
 0x12f   : > { %1324 = vst [vmem:[%s1779_s27 + $0x30] sm:$0xff] %v1307_v45   ;;  %v969_v32 = vmax.f32 %v1918_v24, %v915_v48  ;;  %v872_v59 = vadd.f32 %v1620_v61, %v871_v6  ;;  %v898_v28 = vmax.f32 %v1760_v11, 0.0  ;;  %v1007_v58 = vmax.f32 %v971_v47, %v989_v12 }
 0x130   : > { %v1302_v36 = vpack.c.bf16 %v1002_v2, %v1001_v21  ;;  %v987_v26 = vmax.f32 %v1919_v44, %v951_v31  ;;  %v972_v15 = vmax.f32 %v900_v9, %v918_v19  ;;  %v916_v1 = vmax.f32 %v728_v17, 0.0 }
 0x131   : > { %v934_v63 = vmax.f32 %v1766_v53, 0.0  ;;  %v990_v20 = vmax.f32 %v936_v38, %v954_v37  ;;  %v952_v22 = vmax.f32 %v872_v59, 0.0 }
 0x132   : > { %1323 = vst [vmem:[%s1779_s27 + $0x28] sm:$0xff] %v1302_v36   ;;  %v1005_v16 = vmax.f32 %v969_v32, %v987_v26  ;;  %v970_v41 = vmax.f32 %v898_v28, %v916_v1 }
 0x133   : > { %v1008_v60 = vmax.f32 %v972_v15, %v990_v20  ;;  %v988_v50 = vmax.f32 %v934_v63, %v952_v22 }
 0x135   : > { %v1317_v42 = vpack.c.bf16 %v1008_v60, %v1007_v58  ;;  %v1006_v35 = vmax.f32 %v970_v41, %v988_v50 }
 0x137   : > { %1326 = vst [vmem:[%s1779_s27 + $0x40] sm:$0xff] %v1317_v42   ;;  %v1312_v51 = vpack.c.bf16 %v1006_v35, %v1005_v16 }
 0x139   : > { %1325 = vst [vmem:[%s1779_s27 + $0x38] sm:$0xff] %v1312_v51  }
 0x13a PF: > { %s13_s12 = sadd.s32 1, %s1500_s12  }
 0x13b   : > { %p10_p4 = scmp.ge.s32.totalorder %s13_s12, 7  }
 0x13d   :  { %12 = sbr.rel (!%p10_p4) target bundleno = 1 (0x1), region = 62 }

// kernel: multi_input_net_forward.4
= control target key start
LH: loop header
LB: loop body
LE: loop exit
PB: predicated region body
PF: predicated region fallthrough
CT: control target
= control target key end

     0   :  { %s4549_s12 = smov 0   ;;  %s5349_s0 = inlined_call_operand.vmem [shape: bf16[5,64,3200], index: 0, kind: input, shape index: {}]   ;;  %s5350_s1 = inlined_call_operand.vmem [shape: bf16[3200,128], index: 1, kind: input, shape index: {}]   ;;  %s5351_s2 = inlined_call_operand.vmem [shape: f32[1,128], index: 2, kind: input, shape index: {}]   ;;  %s5352_s3 = inlined_call_operand.vmem [shape: bf16[5,16,128], index: 3, kind: output, shape index: {}]  }
   0x1 LB: > { %s3311_s13 = sadd.s32 4294967295, %s4527_s12   ;;  %p3315_p0 = scmp.ge.s32.totalorder %s4527_s12, 1  ;;  %s4527_s12 = sphi %s4549_s12, %s13_s12  }
   0x2   : > { %p137_p1 = scmp.lt.s32.totalorder %s4527_s12, 6 }
   0x4   : > { %p138_p2 = pnand %p3315_p0, %p137_p1 }
   0x5   : > { %v4173_v0 = vld [vmem:[%s5350_s1 + $0x40] sm:$0xff] (!%p138_p2)   ;;  %v4177_v4 = vld [vmem:[%s5350_s1 + $0x48] sm:$0xff] (!%p138_p2)   ;;  %v4181_v8 = vld [vmem:[%s5350_s1 + $0x50] sm:$0xff] (!%p138_p2)   ;;  %p161_p3 = scmp.lt.s32.totalorder (!%p138_p2), %s3311_s13, 4 }
   0x6   : > { %141 = sbr.rel (%p138_p2) target bundleno = 481 (0x1e1), region = 32  ;;  %v4174_v1 = vld [vmem:[%s5350_s1 + $0xc0] sm:$0xff] (!%p138_p2)   ;;  %3632 = vmatprep.subr.bf16.mxu0 (!%p138_p2), %v4173_v0  ;;  %v4178_v5 = vld [vmem:[%s5350_s1 + $0xc8] sm:$0xff] (!%p138_p2)   ;;  %v4182_v9 = vld [vmem:[%s5350_s1 + $0xd0] sm:$0xff] (!%p138_p2)  }
   0x7   : > { %v4175_v2 = vld [vmem:[%s5350_s1] sm:$0xff] (!%p138_p2)   ;;  %3672 = vmatprep.subr.bf16.mxu1 (!%p138_p2), %v4174_v1  ;;  %v4179_v6 = vld [vmem:[%s5350_s1 + $0x8] sm:$0xff] (!%p138_p2)   ;;  %v4183_v10 = vld [vmem:[%s5350_s1 + $0x10] sm:$0xff] (!%p138_p2)  }
   0x8   : > { %v4176_v3 = vld [vmem:[%s5350_s1 + $0x80] sm:$0xff] (!%p138_p2)   ;;  %3633 = vmatpush3.bf16.msra.mxu0 (!%p138_p2), %v4175_v2  ;;  %v4180_v7 = vld [vmem:[%s5350_s1 + $0x88] sm:$0xff] (!%p138_p2)   ;;  %v4184_v11 = vld [vmem:[%s5350_s1 + $0x90] sm:$0xff] (!%p138_p2)  }
   0x9   : > { %3673 = vmatpush3.bf16.msra.mxu1 (!%p138_p2), %v4176_v3  ;;  %3634 = vmatprep.subr.bf16.mxu0 (!%p138_p2), %v4177_v4  ;;  %v4185_v12 = vld [vmem:[%s5350_s1 + $0x58] sm:$0xff] (!%p138_p2)   ;;  %v4189_v16 = vld [vmem:[%s5350_s1 + $0x60] sm:$0xff] (!%p138_p2)   ;;  %v4193_v20 = vld [vmem:[%s5350_s1 + $0x68] sm:$0xff] (!%p138_p2)  }
   0xa   : > { %3674 = vmatprep.subr.bf16.mxu1 (!%p138_p2), %v4178_v5  ;;  %v4186_v13 = vld [vmem:[%s5350_s1 + $0xd8] sm:$0xff] (!%p138_p2)   ;;  %v4190_v17 = vld [vmem:[%s5350_s1 + $0xe0] sm:$0xff] (!%p138_p2)   ;;  %v4194_v21 = vld [vmem:[%s5350_s1 + $0xe8] sm:$0xff] (!%p138_p2)  }
   0xb   : > { %v4187_v14 = vld [vmem:[%s5350_s1 + $0x18] sm:$0xff] (!%p138_p2)   ;;  %v4191_v18 = vld [vmem:[%s5350_s1 + $0x20] sm:$0xff] (!%p138_p2)   ;;  %v4195_v22 = vld [vmem:[%s5350_s1 + $0x28] sm:$0xff] (!%p138_p2)  }
   0xc   : > { %3635 = vmatpush3.bf16.msra.mxu0 (!%p138_p2), %v4179_v6  ;;  %v4188_v15 = vld [vmem:[%s5350_s1 + $0x98] sm:$0xff] (!%p138_p2)   ;;  %v4192_v19 = vld [vmem:[%s5350_s1 + $0xa0] sm:$0xff] (!%p138_p2)   ;;  %v4196_v23 = vld [vmem:[%s5350_s1 + $0xa8] sm:$0xff] (!%p138_p2)  }
   0xd   : > { %3675 = vmatpush3.bf16.msra.mxu1 %v4180_v7  ;;  %3636 = vmatprep.subr.bf16.mxu0 %v4181_v8  ;;  %s5354_s13 = smov (!%p161_p3, %s3311_s13), 4  ;;  %v4197_v24 = vld [vmem:[%s5350_s1 + $0x70] sm:$0xff]   ;;  %v4201_v28 = vld [vmem:[%s5350_s1 + $0x78] sm:$0xff]   ;;  %v4211_v36 = vld [vmem:[%s5350_s1 + $0x140] sm:$0xff]  }
   0xe   : > { %3676 = vmatprep.subr.bf16.mxu1 %v4182_v9  ;;  %v4198_v25 = vld [vmem:[%s5350_s1 + $0xf0] sm:$0xff]   ;;  %s4164_s16 = smul.u32 800, %s5354_s13  ;;  %v4202_v29 = vld [vmem:[%s5350_s1 + $0xf8] sm:$0xff]   ;;  %v4212_v37 = vld [vmem:[%s5350_s1 + $0x1c0] sm:$0xff]  }
   0xf   : > { %v4199_v26 = vld [vmem:[%s5350_s1 + $0x30] sm:$0xff]   ;;  %v4203_v30 = vld [vmem:[%s5350_s1 + $0x38] sm:$0xff]   ;;  %v4213_v38 = vld [vmem:[%s5350_s1 + $0x100] sm:$0xff]  }
  0x10   : > { %3637 = vmatpush3.bf16.msra.mxu0 %v4183_v10  ;;  %v4200_v27 = vld [vmem:[%s5350_s1 + $0xb0] sm:$0xff]   ;;  %s4657_s27 = scalar_lea.vmem %s5349_s0, %s4164_s16  ;;  %v4204_v31 = vld [vmem:[%s5350_s1 + $0xb8] sm:$0xff]   ;;  %v4214_v39 = vld [vmem:[%s5350_s1 + $0x180] sm:$0xff]  }
  0x11   : > { %3677 = vmatpush3.bf16.msra.mxu1 %v4184_v11  ;;  %3638 = vmatprep.subr.bf16.mxu0 %v4185_v12  ;;  %v4205_v32 = vld [vmem:[%s4657_s27] ss:$100 sps:$4 sm:$0xff]   ;;  %v4208_v34 = vld [vmem:[%s4657_s27 + $0x8] ss:$100 sps:$4 sm:$0xff]   ;;  %v4221_v45 = vld [vmem:[%s4657_s27 + $0xd4] ss:$100 sps:$4 sm:$0xff]  }
  0x12   : > { %3678 = vmatprep.subr.bf16.mxu1 %v4186_v13  ;;  %v4207_v33 = vld [vmem:[%s4657_s27 + $0x4] ss:$100 sps:$4 sm:$0xff]   ;;  %v4210_v35 = vld [vmem:[%s4657_s27 + $0xc] ss:$100 sps:$4 sm:$0xff]   ;;  %v4229_v52 = vld [vmem:[%s5350_s1 + $0x158] sm:$0xff]  }
  0x13   : > { %2419 = vmatprep.mubr.bf16.mxu0 %v4207_v33  ;;  %2484 = vmatprep.mubr.bf16.mxu1 %v4210_v35  ;;  %v4215_v40 = vld [vmem:[%s5350_s1 + $0x148] sm:$0xff]   ;;  %v4224_v47 = vld [vmem:[%s4657_s27 + $0xd0] ss:$100 sps:$4 sm:$0xff]   ;;  %v4230_v53 = vld [vmem:[%s5350_s1 + $0x1d8] sm:$0xff]  }
  0x14   : > { %3639 = vmatpush3.bf16.msra.mxu0 %v4187_v14  ;;  %v4216_v41 = vld [vmem:[%s5350_s1 + $0x1c8] sm:$0xff]   ;;  %v4225_v48 = vld [vmem:[%s5350_s1 + $0x150] sm:$0xff]   ;;  %v4231_v54 = vld [vmem:[%s5350_s1 + $0x118] sm:$0xff]  }
  0x15   : > { %3679 = vmatpush3.bf16.msra.mxu1 %v4188_v15  ;;  %3640 = vmatprep.subr.bf16.mxu0 %v4189_v16  ;;  %v4217_v42 = vld [vmem:[%s5350_s1 + $0x108] sm:$0xff]   ;;  %v4226_v49 = vld [vmem:[%s5350_s1 + $0x1d0] sm:$0xff]   ;;  %v4232_v55 = vld [vmem:[%s5350_s1 + $0x198] sm:$0xff]  }
  0x16   : > { %3680 = vmatprep.subr.bf16.mxu1 %v4190_v17  ;;  %v4218_v43 = vld [vmem:[%s5350_s1 + $0x188] sm:$0xff]   ;;  %v4227_v50 = vld [vmem:[%s5350_s1 + $0x110] sm:$0xff]   ;;  %v4235_v57 = vld [vmem:[%s4657_s27 + $0x19c] ss:$100 sps:$4 sm:$0xff]  }
  0x17   : > { %v4219_v44 = vld [vmem:[%s4657_s27 + $0xcc] ss:$100 sps:$4 sm:$0xff]   ;;  %v4233_v56 = vld [vmem:[%s4657_s27 + $0x194] ss:$100 sps:$4 sm:$0xff]   ;;  %v4239_v60 = vld [vmem:[%s5350_s1 + $0x160] sm:$0xff]  }
  0x18   : > { %3641 = vmatpush3.bf16.msra.mxu0 %v4191_v18  ;;  %v4223_v46 = vld [vmem:[%s4657_s27 + $0xc8] ss:$100 sps:$4 sm:$0xff]   ;;  %v4228_v51 = vld [vmem:[%s5350_s1 + $0x190] sm:$0xff]   ;;  %v4238_v59 = vld [vmem:[%s4657_s27 + $0x198] ss:$100 sps:$4 sm:$0xff]  }
  0x19   : > { %3681 = vmatpush3.bf16.msra.mxu1 %v4192_v19  ;;  %3642 = vmatprep.subr.bf16.mxu0 %v4193_v20  ;;  %v4237_v58 = vld [vmem:[%s4657_s27 + $0x190] ss:$100 sps:$4 sm:$0xff]   ;;  %v4240_v61 = vld [vmem:[%s5350_s1 + $0x1e0] sm:$0xff]   ;;  %v4243_v0 = vld [vmem:[%s5350_s1 + $0x168] sm:$0xff]  }
  0x1a   : > { %3682 = vmatprep.subr.bf16.mxu1 %v4194_v21  ;;  %v4241_v62 = vld [vmem:[%s5350_s1 + $0x120] sm:$0xff]   ;;  %v4244_v1 = vld [vmem:[%s5350_s1 + $0x1e8] sm:$0xff]   ;;  %v4251_v6 = vld [vmem:[%s4657_s27 + $0x258] ss:$100 sps:$4 sm:$0xff]  }
  0x1b   : > { %v4242_v63 = vld [vmem:[%s5350_s1 + $0x1a0] sm:$0xff]   ;;  %v4245_v2 = vld [vmem:[%s5350_s1 + $0x128] sm:$0xff]   ;;  %v4253_v8 = vld [vmem:[%s5350_s1 + $0x170] sm:$0xff]  }
  0x1c   : > { %3643 = vmatpush3.bf16.msra.mxu0 %v4195_v22  ;;  %v4246_v3 = vld [vmem:[%s5350_s1 + $0x1a8] sm:$0xff]   ;;  %v4247_v4 = vld [vmem:[%s4657_s27 + $0x25c] ss:$100 sps:$4 sm:$0xff]   ;;  %v4254_v9 = vld [vmem:[%s5350_s1 + $0x1f0] sm:$0xff]  }
  0x1d   : > { %3683 = vmatpush3.bf16.msra.mxu1 %v4196_v23  ;;  %3644 = vmatprep.subr.bf16.mxu0 %v4197_v24  ;;  %v4249_v5 = vld [vmem:[%s4657_s27 + $0x264] ss:$100 sps:$4 sm:$0xff]   ;;  %v4255_v10 = vld [vmem:[%s5350_s1 + $0x130] sm:$0xff]   ;;  %v4257_v12 = vld [vmem:[%s5350_s1 + $0x178] sm:$0xff]  }
  0x1e   : > { %3684 = vmatprep.subr.bf16.mxu1 %v4198_v25  ;;  %v4252_v7 = vld [vmem:[%s4657_s27 + $0x260] ss:$100 sps:$4 sm:$0xff]   ;;  %v4256_v11 = vld [vmem:[%s5350_s1 + $0x1b0] sm:$0xff]   ;;  %v4258_v13 = vld [vmem:[%s5350_s1 + $0x1f8] sm:$0xff]  }
  0x1f   : > { %v4259_v14 = vld [vmem:[%s5350_s1 + $0x138] sm:$0xff]   ;;  %v4261_v16 = vld [vmem:[%s4657_s27 + $0x10] ss:$100 sps:$4 sm:$0xff]   ;;  %v4267_v20 = vld [vmem:[%s5350_s1 + $0x240] sm:$0xff]  }
  0x20   : > { %3645 = vmatpush3.bf16.msra.mxu0 %v4199_v26  ;;  %v4260_v15 = vld [vmem:[%s5350_s1 + $0x1b8] sm:$0xff]   ;;  %v4268_v21 = vld [vmem:[%s5350_s1 + $0x2c0] sm:$0xff]   ;;  %v4271_v24 = vld [vmem:[%s5350_s1 + $0x248] sm:$0xff]  }
  0x21   : > { %3685 = vmatpush3.bf16.msra.mxu1 %v4200_v27  ;;  %3646 = vmatprep.subr.bf16.mxu0 %v4201_v28  ;;  %v4263_v17 = vld [vmem:[%s4657_s27 + $0x14] ss:$100 sps:$4 sm:$0xff]   ;;  %v4266_v19 = vld [vmem:[%s4657_s27 + $0x1c] ss:$100 sps:$4 sm:$0xff]   ;;  %v4272_v25 = vld [vmem:[%s5350_s1 + $0x2c8] sm:$0xff]  }
  0x22   : > { %3686 = vmatprep.subr.bf16.mxu1 %v4202_v29  ;;  %v4264_v18 = vld [vmem:[%s4657_s27 + $0x18] ss:$100 sps:$4 sm:$0xff]   ;;  %v4269_v22 = vld [vmem:[%s5350_s1 + $0x200] sm:$0xff]   ;;  %v4273_v26 = vld [vmem:[%s5350_s1 + $0x208] sm:$0xff]  }
  0x23   : > { %v4270_v23 = vld [vmem:[%s5350_s1 + $0x280] sm:$0xff]   ;;  %v4274_v27 = vld [vmem:[%s5350_s1 + $0x288] sm:$0xff]   ;;  %v4282_v33 = vld [vmem:[%s5350_s1 + $0x2d0] sm:$0xff]  }
  0x24   : > { %3647 = vmatpush3.bf16.msra.mxu0 %v4203_v30  ;;  %v4275_v28 = vld [vmem:[%s4657_s27 + $0xdc] ss:$100 sps:$4 sm:$0xff]   ;;  %v4277_v29 = vld [vmem:[%s4657_s27 + $0xe4] ss:$100 sps:$4 sm:$0xff]   ;;  %v4284_v35 = vld [vmem:[%s5350_s1 + $0x290] sm:$0xff]  }
  0x25   : > { %3687 = vmatpush3.bf16.msra.mxu1 %v4204_v31  ;;  %3712 = vmatprep.subr.bf16.mxu0 %v4211_v36  ;;  %v4279_v30 = vld [vmem:[%s4657_s27 + $0xd8] ss:$100 sps:$4 sm:$0xff]   ;;  %v4280_v31 = vld [vmem:[%s4657_s27 + $0xe0] ss:$100 sps:$4 sm:$0xff]  }
  0x26   : > { %3752 = vmatprep.subr.bf16.mxu1 %v4212_v37  ;;  %v4285_v36 = vld [vmem:[%s5350_s1 + $0x258] sm:$0xff]  }
  0x27   : > { %2420 = vmatmul.mubr.bf16.vlgmr.msra.gmra.mrb[0].mxu0 %v4205_v32  ;;  %v4281_v32 = vld [vmem:[%s5350_s1 + $0x250] sm:$0xff]   ;;  %v4286_v37 = vld [vmem:[%s5350_s1 + $0x2d8] sm:$0xff]  }
  0x28   : > { %2485 = vmatmul.mubr.bf16.vlgmr.msra.gmra.mrb[0].mxu1 %v4208_v34  ;;  %3713 = vmatpush3.bf16.msra.mxu0 %v4213_v38  ;;  %v4283_v34 = vld [vmem:[%s5350_s1 + $0x210] sm:$0xff]   ;;  %v4287_v38 = vld [vmem:[%s5350_s1 + $0x218] sm:$0xff]  }
  0x29   : > { %3753 = vmatpush3.bf16.msra.mxu1 %v4214_v39  ;;  %3714 = vmatprep.subr.bf16.mxu0 %v4215_v40  ;;  %v4288_v39 = vld [vmem:[%s5350_s1 + $0x298] sm:$0xff]   ;;  %v4289_v40 = vld [vmem:[%s4657_s27 + $0x1a4] ss:$100 sps:$4 sm:$0xff]  }
  0x2a   : > { %3754 = vmatprep.subr.bf16.mxu1 %v4216_v41  ;;  %2427 = vmatprep.mubr.bf16.mxu0 %v4219_v44  ;;  %v4291_v41 = vld [vmem:[%s4657_s27 + $0x1ac] ss:$100 sps:$4 sm:$0xff]   ;;  %v4295_v44 = vld [vmem:[%s5350_s1 + $0x260] sm:$0xff]  }
  0x2b   : > { %2492 = vmatprep.mubr.bf16.mxu1 %v4221_v45  ;;  %v4296_v45 = vld [vmem:[%s5350_s1 + $0x2e0] sm:$0xff]  }
  0x2c   : > { %3715 = vmatpush3.bf16.msra.mxu0 %v4217_v42  ;;  %v4293_v42 = vld [vmem:[%s4657_s27 + $0x1a0] ss:$100 sps:$4 sm:$0xff]  }
  0x2d   : > { %3755 = vmatpush3.bf16.msra.mxu1 %v4218_v43  ;;  %3716 = vmatprep.subr.bf16.mxu0 %v4225_v48  ;;  %v4294_v43 = vld [vmem:[%s4657_s27 + $0x1a8] ss:$100 sps:$4 sm:$0xff]  }
  0x2e   : > { %3756 = vmatprep.subr.bf16.mxu1 %v4226_v49  ;;  %v4299_v48 = vld [vmem:[%s5350_s1 + $0x268] sm:$0xff]  }
  0x2f   : > { %2428 = vmatmul.mubr.bf16.gmra.mrb[4].mxu0 %v4223_v46  ;;  %v4297_v46 = vld [vmem:[%s5350_s1 + $0x220] sm:$0xff]   ;;  %v4300_v49 = vld [vmem:[%s5350_s1 + $0x2e8] sm:$0xff]  }
  0x30   : > { %2493 = vmatmul.mubr.bf16.gmra.mrb[4].mxu1 %v4224_v47  ;;  %3717 = vmatpush3.bf16.msra.mxu0 %v4227_v50  ;;  %v4298_v47 = vld [vmem:[%s5350_s1 + $0x2a0] sm:$0xff]   ;;  %v4301_v50 = vld [vmem:[%s5350_s1 + $0x228] sm:$0xff]  }
  0x31   : > { %3757 = vmatpush3.bf16.msra.mxu1 %v4228_v51  ;;  %3718 = vmatprep.subr.bf16.mxu0 %v4229_v52  ;;  %v4302_v51 = vld [vmem:[%s5350_s1 + $0x2a8] sm:$0xff]  }
  0x32   : > { %3758 = vmatprep.subr.bf16.mxu1 %v4230_v53  ;;  %2435 = vmatprep.mubr.bf16.mxu0 %v4233_v56  ;;  %v4303_v52 = vld [vmem:[%s4657_s27 + $0x26c] ss:$100 sps:$4 sm:$0xff]   ;;  %v4305_v53 = vld [vmem:[%s4657_s27 + $0x274] ss:$100 sps:$4 sm:$0xff]  }
  0x33   : > { %2500 = vmatprep.mubr.bf16.mxu1 %v4235_v57  ;;  %v4309_v56 = vld [vmem:[%s5350_s1 + $0x270] sm:$0xff]  }
  0x34   : > { %3719 = vmatpush3.bf16.msra.mxu0 %v4231_v54  ;;  %v4307_v54 = vld [vmem:[%s4657_s27 + $0x268] ss:$100 sps:$4 sm:$0xff]   ;;  %v4310_v57 = vld [vmem:[%s5350_s1 + $0x2f0] sm:$0xff]  }
  0x35   : > { %3759 = vmatpush3.bf16.msra.mxu1 %v4232_v55  ;;  %3720 = vmatprep.subr.bf16.mxu0 %v4239_v60  ;;  %v4308_v55 = vld [vmem:[%s4657_s27 + $0x270] ss:$100 sps:$4 sm:$0xff]   ;;  %v4313_v60 = vld [vmem:[%s5350_s1 + $0x278] sm:$0xff]  }
  0x36   : > { %3760 = vmatprep.subr.bf16.mxu1 %v4240_v61  ;;  %v4314_v61 = vld [vmem:[%s5350_s1 + $0x2f8] sm:$0xff]  }
  0x37   : > { %2436 = vmatmul.mubr.bf16.gmra.mrb[8].mxu0 %v4237_v58  ;;  %v4311_v58 = vld [vmem:[%s5350_s1 + $0x230] sm:$0xff]  }
  0x38   : > { %2501 = vmatmul.mubr.bf16.gmra.mrb[8].mxu1 %v4238_v59  ;;  %3721 = vmatpush3.bf16.msra.mxu0 %v4241_v62  ;;  %v4312_v59 = vld [vmem:[%s5350_s1 + $0x2b0] sm:$0xff]   ;;  %v4315_v62 = vld [vmem:[%s5350_s1 + $0x238] sm:$0xff]  }
  0x39   : > { %3761 = vmatpush3.bf16.msra.mxu1 %v4242_v63  ;;  %3722 = vmatprep.subr.bf16.mxu0 %v4243_v0  ;;  %v4316_v63 = vld [vmem:[%s5350_s1 + $0x2b8] sm:$0xff]   ;;  %v4317_v0 = vld [vmem:[%s4657_s27 + $0x20] ss:$100 sps:$4 sm:$0xff]  }
  0x3a   : > { %3762 = vmatprep.subr.bf16.mxu1 %v4244_v1  ;;  %2443 = vmatprep.mubr.bf16.mxu0 %v4247_v4  ;;  %v4319_v1 = vld [vmem:[%s4657_s27 + $0x24] ss:$100 sps:$4 sm:$0xff]  }
  0x3b   : > { %2508 = vmatprep.mubr.bf16.mxu1 %v4249_v5  ;;  %v4323_v4 = vld [vmem:[%s5350_s1 + $0x340] sm:$0xff]  }
  0x3c   : > { %3723 = vmatpush3.bf16.msra.mxu0 %v4245_v2  ;;  %v4320_v2 = vld [vmem:[%s4657_s27 + $0x28] ss:$100 sps:$4 sm:$0xff]   ;;  %v4324_v5 = vld [vmem:[%s5350_s1 + $0x3c0] sm:$0xff]  }
  0x3d   : > { %3763 = vmatpush3.bf16.msra.mxu1 %v4246_v3  ;;  %3724 = vmatprep.subr.bf16.mxu0 %v4253_v8  ;;  %v4322_v3 = vld [vmem:[%s4657_s27 + $0x2c] ss:$100 sps:$4 sm:$0xff]  }
  0x3e   : > { %3764 = vmatprep.subr.bf16.mxu1 %v4254_v9  ;;  %v4327_v8 = vld [vmem:[%s5350_s1 + $0x348] sm:$0xff]  }
  0x3f   : > { %2444 = vmatmul.mubr.bf16.gmra.mrb[12].mxu0 %v4251_v6  ;;  %v4325_v6 = vld [vmem:[%s5350_s1 + $0x300] sm:$0xff]   ;;  %v4328_v9 = vld [vmem:[%s5350_s1 + $0x3c8] sm:$0xff]  }
  0x40   : > { %2509 = vmatmul.mubr.bf16.gmra.mrb[12].mxu1 %v4252_v7  ;;  %3725 = vmatpush3.bf16.msra.mxu0 %v4255_v10  ;;  %v4326_v7 = vld [vmem:[%s5350_s1 + $0x380] sm:$0xff]   ;;  %v4329_v10 = vld [vmem:[%s5350_s1 + $0x308] sm:$0xff]  }
  0x41   : > { %3765 = vmatpush3.bf16.msra.mxu1 %v4256_v11  ;;  %3726 = vmatprep.subr.bf16.mxu0 %v4257_v12  ;;  %v4330_v11 = vld [vmem:[%s5350_s1 + $0x388] sm:$0xff]  }
  0x42   : > { %3766 = vmatprep.subr.bf16.mxu1 %v4258_v13  ;;  %2549 = vmatprep.mubr.bf16.mxu0 %v4263_v17  ;;  %v4331_v12 = vld [vmem:[%s4657_s27 + $0xec] ss:$100 sps:$4 sm:$0xff]   ;;  %v4333_v13 = vld [vmem:[%s4657_s27 + $0xf4] ss:$100 sps:$4 sm:$0xff]  }
  0x43   : > { %2614 = vmatprep.mubr.bf16.mxu1 %v4266_v19  ;;  %v4338_v17 = vld [vmem:[%s5350_s1 + $0x3d0] sm:$0xff]  }
  0x44   : > { %3727 = vmatpush3.bf16.msra.mxu0 %v4259_v14  ;;  %v4335_v14 = vld [vmem:[%s4657_s27 + $0xe8] ss:$100 sps:$4 sm:$0xff]   ;;  %v4340_v19 = vld [vmem:[%s5350_s1 + $0x390] sm:$0xff]  }
  0x45   : > { %3767 = vmatpush3.bf16.msra.mxu1 %v4260_v15  ;;  %3792 = vmatprep.subr.bf16.mxu0 %v4267_v20  ;;  %v4336_v15 = vld [vmem:[%s4657_s27 + $0xf0] ss:$100 sps:$4 sm:$0xff]   ;;  %v4341_v20 = vld [vmem:[%s5350_s1 + $0x358] sm:$0xff]  }
  0x46   : > { %3832 = vmatprep.subr.bf16.mxu1 %v4268_v21  ;;  %v4342_v21 = vld [vmem:[%s5350_s1 + $0x3d8] sm:$0xff]  }
  0x47   : > { %2550 = vmatmul.mubr.bf16.vlgmr.msra.gmra.mrb[16].mxu0 %v4261_v16  ;;  %v4337_v16 = vld [vmem:[%s5350_s1 + $0x350] sm:$0xff]  }
  0x48   : > { %2615 = vmatmul.mubr.bf16.vlgmr.msra.gmra.mrb[16].mxu1 %v4264_v18  ;;  %3793 = vmatpush3.bf16.msra.mxu0 %v4269_v22  ;;  %v4339_v18 = vld [vmem:[%s5350_s1 + $0x310] sm:$0xff]   ;;  %v4343_v22 = vld [vmem:[%s5350_s1 + $0x318] sm:$0xff]  }
  0x49   : > { %3833 = vmatpush3.bf16.msra.mxu1 %v4270_v23  ;;  %3794 = vmatprep.subr.bf16.mxu0 %v4271_v24  ;;  %v4344_v23 = vld [vmem:[%s5350_s1 + $0x398] sm:$0xff]  }
  0x4a   : > { %3834 = vmatprep.subr.bf16.mxu1 %v4272_v25  ;;  %2557 = vmatprep.mubr.bf16.mxu0 %v4275_v28  ;;  %v4345_v24 = vld [vmem:[%s4657_s27 + $0x1b4] ss:$100 sps:$4 sm:$0xff]   ;;  %v4347_v25 = vld [vmem:[%s4657_s27 + $0x1bc] ss:$100 sps:$4 sm:$0xff]  }
  0x4b   : > { %2622 = vmatprep.mubr.bf16.mxu1 %v4277_v29  ;;  %v4351_v28 = vld [vmem:[%s5350_s1 + $0x360] sm:$0xff]  }
  0x4c   : > { %3795 = vmatpush3.bf16.msra.mxu0 %v4273_v26  ;;  %v4349_v26 = vld [vmem:[%s4657_s27 + $0x1b0] ss:$100 sps:$4 sm:$0xff]   ;;  %v4352_v29 = vld [vmem:[%s5350_s1 + $0x3e0] sm:$0xff]  }
  0x4d   : > { %3835 = vmatpush3.bf16.msra.mxu1 %v4274_v27  ;;  %3796 = vmatprep.subr.bf16.mxu0 %v4281_v32  ;;  %v4350_v27 = vld [vmem:[%s4657_s27 + $0x1b8] ss:$100 sps:$4 sm:$0xff]   ;;  %v4355_v32 = vld [vmem:[%s5350_s1 + $0x368] sm:$0xff]  }
  0x4e   : > { %3836 = vmatprep.subr.bf16.mxu1 %v4282_v33  ;;  %v4356_v33 = vld [vmem:[%s5350_s1 + $0x3e8] sm:$0xff]  }
  0x4f   : > { %2558 = vmatmul.mubr.bf16.gmra.mrb[20].mxu0 %v4279_v30  ;;  %v4353_v30 = vld [vmem:[%s5350_s1 + $0x320] sm:$0xff]  }
  0x50   : > { %2623 = vmatmul.mubr.bf16.gmra.mrb[20].mxu1 %v4280_v31  ;;  %3797 = vmatpush3.bf16.msra.mxu0 %v4283_v34  ;;  %v4354_v31 = vld [vmem:[%s5350_s1 + $0x3a0] sm:$0xff]   ;;  %v4357_v34 = vld [vmem:[%s5350_s1 + $0x328] sm:$0xff]  }
  0x51   : > { %3837 = vmatpush3.bf16.msra.mxu1 %v4284_v35  ;;  %3798 = vmatprep.subr.bf16.mxu0 %v4285_v36  ;;  %v4358_v35 = vld [vmem:[%s5350_s1 + $0x3a8] sm:$0xff]   ;;  %v4359_v36 = vld [vmem:[%s4657_s27 + $0x27c] ss:$100 sps:$4 sm:$0xff]  }
  0x52   : > { %3838 = vmatprep.subr.bf16.mxu1 %v4286_v37  ;;  %2565 = vmatprep.mubr.bf16.mxu0 %v4289_v40  ;;  %v4361_v37 = vld [vmem:[%s4657_s27 + $0x284] ss:$100 sps:$4 sm:$0xff]   ;;  %v4365_v40 = vld [vmem:[%s5350_s1 + $0x370] sm:$0xff]  }
  0x53   : > { %2630 = vmatprep.mubr.bf16.mxu1 %v4291_v41  ;;  %v4366_v41 = vld [vmem:[%s5350_s1 + $0x3f0] sm:$0xff]  }
  0x54   : > { %3799 = vmatpush3.bf16.msra.mxu0 %v4287_v38  ;;  %v4363_v38 = vld [vmem:[%s4657_s27 + $0x278] ss:$100 sps:$4 sm:$0xff]  }
  0x55   : > { %3839 = vmatpush3.bf16.msra.mxu1 %v4288_v39  ;;  %3800 = vmatprep.subr.bf16.mxu0 %v4295_v44  ;;  %v4364_v39 = vld [vmem:[%s4657_s27 + $0x280] ss:$100 sps:$4 sm:$0xff]   ;;  %v4369_v44 = vld [vmem:[%s5350_s1 + $0x378] sm:$0xff]  }
  0x56   : > { %3840 = vmatprep.subr.bf16.mxu1 %v4296_v45  ;;  %v4370_v45 = vld [vmem:[%s5350_s1 + $0x3f8] sm:$0xff]  }
  0x57   : > { %2566 = vmatmul.mubr.bf16.gmra.mrb[24].mxu0 %v4293_v42  ;;  %v4367_v42 = vld [vmem:[%s5350_s1 + $0x330] sm:$0xff]  }
  0x58   : > { %2631 = vmatmul.mubr.bf16.gmra.mrb[24].mxu1 %v4294_v43  ;;  %3801 = vmatpush3.bf16.msra.mxu0 %v4297_v46  ;;  %v4368_v43 = vld [vmem:[%s5350_s1 + $0x3b0] sm:$0xff]   ;;  %v4371_v46 = vld [vmem:[%s5350_s1 + $0x338] sm:$0xff]  }
  0x59   : > { %3841 = vmatpush3.bf16.msra.mxu1 %v4298_v47  ;;  %3802 = vmatprep.subr.bf16.mxu0 %v4299_v48  ;;  %v4372_v47 = vld [vmem:[%s5350_s1 + $0x3b8] sm:$0xff]   ;;  %v4373_v48 = vld [vmem:[%s4657_s27 + $0x30] ss:$100 sps:$4 sm:$0xff]  }
  0x5a   : > { %3842 = vmatprep.subr.bf16.mxu1 %v4300_v49  ;;  %2573 = vmatprep.mubr.bf16.mxu0 %v4303_v52  ;;  %v4375_v49 = vld [vmem:[%s4657_s27 + $0x34] ss:$100 sps:$4 sm:$0xff]   ;;  %v4379_v52 = vld [vmem:[%s5350_s1 + $0x440] sm:$0xff]  }
  0x5b   : > { %2638 = vmatprep.mubr.bf16.mxu1 %v4305_v53  ;;  %v4380_v53 = vld [vmem:[%s5350_s1 + $0x4c0] sm:$0xff]  }
  0x5c   : > { %3803 = vmatpush3.bf16.msra.mxu0 %v4301_v50  ;;  %v4376_v50 = vld [vmem:[%s4657_s27 + $0x38] ss:$100 sps:$4 sm:$0xff]  }
  0x5d   : > { %3843 = vmatpush3.bf16.msra.mxu1 %v4302_v51  ;;  %3804 = vmatprep.subr.bf16.mxu0 %v4309_v56  ;;  %v4378_v51 = vld [vmem:[%s4657_s27 + $0x3c] ss:$100 sps:$4 sm:$0xff]   ;;  %v4383_v56 = vld [vmem:[%s5350_s1 + $0x448] sm:$0xff]  }
  0x5e   : > { %3844 = vmatprep.subr.bf16.mxu1 %v4310_v57  ;;  %v4384_v57 = vld [vmem:[%s5350_s1 + $0x4c8] sm:$0xff]  }
  0x5f   : > { %2574 = vmatmul.mubr.bf16.gmra.mrb[28].mxu0 %v4307_v54  ;;  %v4381_v54 = vld [vmem:[%s5350_s1 + $0x400] sm:$0xff]  }
  0x60   : > { %2639 = vmatmul.mubr.bf16.gmra.mrb[28].mxu1 %v4308_v55  ;;  %3805 = vmatpush3.bf16.msra.mxu0 %v4311_v58  ;;  %v4382_v55 = vld [vmem:[%s5350_s1 + $0x480] sm:$0xff]   ;;  %v4385_v58 = vld [vmem:[%s5350_s1 + $0x408] sm:$0xff]  }
  0x61   : > { %3845 = vmatpush3.bf16.msra.mxu1 %v4312_v59  ;;  %3806 = vmatprep.subr.bf16.mxu0 %v4313_v60  ;;  %v4386_v59 = vld [vmem:[%s5350_s1 + $0x488] sm:$0xff]   ;;  %v4387_v60 = vld [vmem:[%s4657_s27 + $0xfc] ss:$100 sps:$4 sm:$0xff]  }
  0x62   : > { %3846 = vmatprep.subr.bf16.mxu1 %v4314_v61  ;;  %2679 = vmatprep.mubr.bf16.mxu0 %v4319_v1  ;;  %v4389_v61 = vld [vmem:[%s4657_s27 + $0x104] ss:$100 sps:$4 sm:$0xff]   ;;  %v4394_v1 = vld [vmem:[%s5350_s1 + $0x4d0] sm:$0xff]  }
  0x63   : > { %2744 = vmatprep.mubr.bf16.mxu1 %v4322_v3  ;;  %v4396_v3 = vld [vmem:[%s5350_s1 + $0x490] sm:$0xff]  }
  0x64   : > { %3807 = vmatpush3.bf16.msra.mxu0 %v4315_v62  ;;  %v4391_v62 = vld [vmem:[%s4657_s27 + $0xf8] ss:$100 sps:$4 sm:$0xff]  }
  0x65   : > { %3847 = vmatpush3.bf16.msra.mxu1 %v4316_v63  ;;  %3872 = vmatprep.subr.bf16.mxu0 %v4323_v4  ;;  %v4392_v63 = vld [vmem:[%s4657_s27 + $0x100] ss:$100 sps:$4 sm:$0xff]   ;;  %v4397_v4 = vld [vmem:[%s5350_s1 + $0x458] sm:$0xff]  }
  0x66   : > { %3912 = vmatprep.subr.bf16.mxu1 %v4324_v5  ;;  %v4398_v5 = vld [vmem:[%s5350_s1 + $0x4d8] sm:$0xff]  }
  0x67   : > { %2680 = vmatmul.mubr.bf16.vlgmr.msra.gmra.mrb[32].mxu0 %v4317_v0  ;;  %v4393_v0 = vld [vmem:[%s5350_s1 + $0x450] sm:$0xff]  }
  0x68   : > { %2745 = vmatmul.mubr.bf16.vlgmr.msra.gmra.mrb[32].mxu1 %v4320_v2  ;;  %3873 = vmatpush3.bf16.msra.mxu0 %v4325_v6  ;;  %v4395_v2 = vld [vmem:[%s5350_s1 + $0x410] sm:$0xff]   ;;  %v4399_v6 = vld [vmem:[%s5350_s1 + $0x418] sm:$0xff]  }
  0x69   : > { %3913 = vmatpush3.bf16.msra.mxu1 %v4326_v7  ;;  %3874 = vmatprep.subr.bf16.mxu0 %v4327_v8  ;;  %v4400_v7 = vld [vmem:[%s5350_s1 + $0x498] sm:$0xff]   ;;  %v4401_v8 = vld [vmem:[%s4657_s27 + $0x1c4] ss:$100 sps:$4 sm:$0xff]  }
  0x6a   : > { %3914 = vmatprep.subr.bf16.mxu1 %v4328_v9  ;;  %2687 = vmatprep.mubr.bf16.mxu0 %v4331_v12  ;;  %v4403_v9 = vld [vmem:[%s4657_s27 + $0x1cc] ss:$100 sps:$4 sm:$0xff]   ;;  %v4407_v12 = vld [vmem:[%s5350_s1 + $0x460] sm:$0xff]  }
  0x6b   : > { %2752 = vmatprep.mubr.bf16.mxu1 %v4333_v13  ;;  %v4408_v13 = vld [vmem:[%s5350_s1 + $0x4e0] sm:$0xff]  }
  0x6c   : > { %3875 = vmatpush3.bf16.msra.mxu0 %v4329_v10  ;;  %v4405_v10 = vld [vmem:[%s4657_s27 + $0x1c0] ss:$100 sps:$4 sm:$0xff]  }
  0x6d   : > { %3915 = vmatpush3.bf16.msra.mxu1 %v4330_v11  ;;  %3876 = vmatprep.subr.bf16.mxu0 %v4337_v16  ;;  %v4406_v11 = vld [vmem:[%s4657_s27 + $0x1c8] ss:$100 sps:$4 sm:$0xff]  }
  0x6e   : > { %3916 = vmatprep.subr.bf16.mxu1 %v4338_v17  ;;  %v4411_v16 = vld [vmem:[%s5350_s1 + $0x468] sm:$0xff]  }
  0x6f   : > { %2688 = vmatmul.mubr.bf16.gmra.mrb[36].mxu0 %v4335_v14  ;;  %v4409_v14 = vld [vmem:[%s5350_s1 + $0x420] sm:$0xff]   ;;  %v4412_v17 = vld [vmem:[%s5350_s1 + $0x4e8] sm:$0xff]  }
  0x70   : > { %2753 = vmatmul.mubr.bf16.gmra.mrb[36].mxu1 %v4336_v15  ;;  %3877 = vmatpush3.bf16.msra.mxu0 %v4339_v18  ;;  %v4410_v15 = vld [vmem:[%s5350_s1 + $0x4a0] sm:$0xff]   ;;  %v4413_v18 = vld [vmem:[%s5350_s1 + $0x428] sm:$0xff]  }
  0x71   : > { %3917 = vmatpush3.bf16.msra.mxu1 %v4340_v19  ;;  %3878 = vmatprep.subr.bf16.mxu0 %v4341_v20  ;;  %v4414_v19 = vld [vmem:[%s5350_s1 + $0x4a8] sm:$0xff]  }
  0x72   : > { %3918 = vmatprep.subr.bf16.mxu1 %v4342_v21  ;;  %2695 = vmatprep.mubr.bf16.mxu0 %v4345_v24  ;;  %v4415_v20 = vld [vmem:[%s4657_s27 + $0x28c] ss:$100 sps:$4 sm:$0xff]   ;;  %v4417_v21 = vld [vmem:[%s4657_s27 + $0x294] ss:$100 sps:$4 sm:$0xff]  }
  0x73   : > { %2760 = vmatprep.mubr.bf16.mxu1 %v4347_v25  ;;  %v4421_v24 = vld [vmem:[%s5350_s1 + $0x470] sm:$0xff]  }
  0x74   : > { %3879 = vmatpush3.bf16.msra.mxu0 %v4343_v22  ;;  %v4419_v22 = vld [vmem:[%s4657_s27 + $0x288] ss:$100 sps:$4 sm:$0xff]   ;;  %v4422_v25 = vld [vmem:[%s5350_s1 + $0x4f0] sm:$0xff]  }
  0x75   : > { %3919 = vmatpush3.bf16.msra.mxu1 %v4344_v23  ;;  %3880 = vmatprep.subr.bf16.mxu0 %v4351_v28  ;;  %v4420_v23 = vld [vmem:[%s4657_s27 + $0x290] ss:$100 sps:$4 sm:$0xff]   ;;  %v4425_v28 = vld [vmem:[%s5350_s1 + $0x478] sm:$0xff]  }
  0x76   : > { %3920 = vmatprep.subr.bf16.mxu1 %v4352_v29  ;;  %v4426_v29 = vld [vmem:[%s5350_s1 + $0x4f8] sm:$0xff]  }
  0x77   : > { %2696 = vmatmul.mubr.bf16.gmra.mrb[40].mxu0 %v4349_v26  ;;  %v4423_v26 = vld [vmem:[%s5350_s1 + $0x430] sm:$0xff]  }
  0x78   : > { %2761 = vmatmul.mubr.bf16.gmra.mrb[40].mxu1 %v4350_v27  ;;  %3881 = vmatpush3.bf16.msra.mxu0 %v4353_v30  ;;  %v4424_v27 = vld [vmem:[%s5350_s1 + $0x4b0] sm:$0xff]   ;;  %v4427_v30 = vld [vmem:[%s5350_s1 + $0x438] sm:$0xff]  }
  0x79   : > { %3921 = vmatpush3.bf16.msra.mxu1 %v4354_v31  ;;  %3882 = vmatprep.subr.bf16.mxu0 %v4355_v32  ;;  %v4428_v31 = vld [vmem:[%s5350_s1 + $0x4b8] sm:$0xff]   ;;  %v4429_v32 = vld [vmem:[%s4657_s27 + $0x40] ss:$100 sps:$4 sm:$0xff]  }
  0x7a   : > { %3922 = vmatprep.subr.bf16.mxu1 %v4356_v33  ;;  %2703 = vmatprep.mubr.bf16.mxu0 %v4359_v36  ;;  %v4431_v33 = vld [vmem:[%s4657_s27 + $0x44] ss:$100 sps:$4 sm:$0xff]  }
  0x7b   : > { %2768 = vmatprep.mubr.bf16.mxu1 %v4361_v37  ;;  %v4435_v36 = vld [vmem:[%s5350_s1 + $0x540] sm:$0xff]  }
  0x7c   : > { %3883 = vmatpush3.bf16.msra.mxu0 %v4357_v34  ;;  %v4432_v34 = vld [vmem:[%s4657_s27 + $0x48] ss:$100 sps:$4 sm:$0xff]   ;;  %v4436_v37 = vld [vmem:[%s5350_s1 + $0x5c0] sm:$0xff]  }
  0x7d   : > { %3923 = vmatpush3.bf16.msra.mxu1 %v4358_v35  ;;  %3884 = vmatprep.subr.bf16.mxu0 %v4365_v40  ;;  %v4434_v35 = vld [vmem:[%s4657_s27 + $0x4c] ss:$100 sps:$4 sm:$0xff]  }
  0x7e   : > { %3924 = vmatprep.subr.bf16.mxu1 %v4366_v41  ;;  %v4439_v40 = vld [vmem:[%s5350_s1 + $0x548] sm:$0xff]  }
  0x7f   : > { %2704 = vmatmul.mubr.bf16.gmra.mrb[44].mxu0 %v4363_v38  ;;  %v4437_v38 = vld [vmem:[%s5350_s1 + $0x500] sm:$0xff]   ;;  %v4440_v41 = vld [vmem:[%s5350_s1 + $0x5c8] sm:$0xff]  }
  0x80   : > { %2769 = vmatmul.mubr.bf16.gmra.mrb[44].mxu1 %v4364_v39  ;;  %3885 = vmatpush3.bf16.msra.mxu0 %v4367_v42  ;;  %v4438_v39 = vld [vmem:[%s5350_s1 + $0x580] sm:$0xff]   ;;  %v4441_v42 = vld [vmem:[%s5350_s1 + $0x508] sm:$0xff]  }
  0x81   : > { %3925 = vmatpush3.bf16.msra.mxu1 %v4368_v43  ;;  %3886 = vmatprep.subr.bf16.mxu0 %v4369_v44  ;;  %v4442_v43 = vld [vmem:[%s5350_s1 + $0x588] sm:$0xff]  }
  0x82   : > { %3926 = vmatprep.subr.bf16.mxu1 %v4370_v45  ;;  %2809 = vmatprep.mubr.bf16.mxu0 %v4375_v49  ;;  %v4443_v44 = vld [vmem:[%s4657_s27 + $0x10c] ss:$100 sps:$4 sm:$0xff]   ;;  %v4445_v45 = vld [vmem:[%s4657_s27 + $0x114] ss:$100 sps:$4 sm:$0xff]  }
  0x83   : > { %2874 = vmatprep.mubr.bf16.mxu1 %v4378_v51  ;;  %v4450_v49 = vld [vmem:[%s5350_s1 + $0x5d0] sm:$0xff]  }
  0x84   : > { %3887 = vmatpush3.bf16.msra.mxu0 %v4371_v46  ;;  %v4447_v46 = vld [vmem:[%s4657_s27 + $0x108] ss:$100 sps:$4 sm:$0xff]   ;;  %v4452_v51 = vld [vmem:[%s5350_s1 + $0x590] sm:$0xff]  }
  0x85   : > { %3927 = vmatpush3.bf16.msra.mxu1 %v4372_v47  ;;  %3952 = vmatprep.subr.bf16.mxu0 %v4379_v52  ;;  %v4448_v47 = vld [vmem:[%s4657_s27 + $0x110] ss:$100 sps:$4 sm:$0xff]   ;;  %v4453_v52 = vld [vmem:[%s5350_s1 + $0x558] sm:$0xff]  }
  0x86   : > { %3992 = vmatprep.subr.bf16.mxu1 %v4380_v53  ;;  %v4454_v53 = vld [vmem:[%s5350_s1 + $0x5d8] sm:$0xff]  }
  0x87   : > { %2810 = vmatmul.mubr.bf16.vlgmr.msra.gmra.mrb[48].mxu0 %v4373_v48  ;;  %v4449_v48 = vld [vmem:[%s5350_s1 + $0x550] sm:$0xff]  }
  0x88   : > { %2875 = vmatmul.mubr.bf16.vlgmr.msra.gmra.mrb[48].mxu1 %v4376_v50  ;;  %3953 = vmatpush3.bf16.msra.mxu0 %v4381_v54  ;;  %v4451_v50 = vld [vmem:[%s5350_s1 + $0x510] sm:$0xff]   ;;  %v4455_v54 = vld [vmem:[%s5350_s1 + $0x518] sm:$0xff]  }
  0x89   : > { %3993 = vmatpush3.bf16.msra.mxu1 %v4382_v55  ;;  %3954 = vmatprep.subr.bf16.mxu0 %v4383_v56  ;;  %v4456_v55 = vld [vmem:[%s5350_s1 + $0x598] sm:$0xff]  }
  0x8a   : > { %3994 = vmatprep.subr.bf16.mxu1 %v4384_v57  ;;  %2817 = vmatprep.mubr.bf16.mxu0 %v4387_v60  ;;  %v4457_v56 = vld [vmem:[%s4657_s27 + $0x1d4] ss:$100 sps:$4 sm:$0xff]   ;;  %v4459_v57 = vld [vmem:[%s4657_s27 + $0x1dc] ss:$100 sps:$4 sm:$0xff]  }
  0x8b   : > { %2882 = vmatprep.mubr.bf16.mxu1 %v4389_v61  ;;  %v4463_v60 = vld [vmem:[%s5350_s1 + $0x560] sm:$0xff]  }
  0x8c   : > { %3955 = vmatpush3.bf16.msra.mxu0 %v4385_v58  ;;  %v4461_v58 = vld [vmem:[%s4657_s27 + $0x1d0] ss:$100 sps:$4 sm:$0xff]   ;;  %v4464_v61 = vld [vmem:[%s5350_s1 + $0x5e0] sm:$0xff]  }
  0x8d   : > { %3995 = vmatpush3.bf16.msra.mxu1 %v4386_v59  ;;  %3956 = vmatprep.subr.bf16.mxu0 %v4393_v0  ;;  %v4462_v59 = vld [vmem:[%s4657_s27 + $0x1d8] ss:$100 sps:$4 sm:$0xff]   ;;  %v4467_v0 = vld [vmem:[%s5350_s1 + $0x568] sm:$0xff]  }
  0x8e   : > { %3996 = vmatprep.subr.bf16.mxu1 %v4394_v1  ;;  %v4468_v1 = vld [vmem:[%s5350_s1 + $0x5e8] sm:$0xff]  }
  0x8f   : > { %2818 = vmatmul.mubr.bf16.gmra.mrb[52].mxu0 %v4391_v62  ;;  %v4465_v62 = vld [vmem:[%s5350_s1 + $0x520] sm:$0xff]  }
  0x90   : > { %2883 = vmatmul.mubr.bf16.gmra.mrb[52].mxu1 %v4392_v63  ;;  %3957 = vmatpush3.bf16.msra.mxu0 %v4395_v2  ;;  %v4466_v63 = vld [vmem:[%s5350_s1 + $0x5a0] sm:$0xff]   ;;  %v4469_v2 = vld [vmem:[%s5350_s1 + $0x528] sm:$0xff]  }
  0x91   : > { %3997 = vmatpush3.bf16.msra.mxu1 %v4396_v3  ;;  %3958 = vmatprep.subr.bf16.mxu0 %v4397_v4  ;;  %v4470_v3 = vld [vmem:[%s5350_s1 + $0x5a8] sm:$0xff]   ;;  %v4471_v4 = vld [vmem:[%s4657_s27 + $0x29c] ss:$100 sps:$4 sm:$0xff]  }
  0x92   : > { %3998 = vmatprep.subr.bf16.mxu1 %v4398_v5  ;;  %2825 = vmatprep.mubr.bf16.mxu0 %v4401_v8  ;;  %v4473_v5 = vld [vmem:[%s4657_s27 + $0x2a4] ss:$100 sps:$4 sm:$0xff]   ;;  %v4477_v8 = vld [vmem:[%s5350_s1 + $0x570] sm:$0xff]  }
  0x93   : > { %2890 = vmatprep.mubr.bf16.mxu1 %v4403_v9  ;;  %v4478_v9 = vld [vmem:[%s5350_s1 + $0x5f0] sm:$0xff]  }
  0x94   : > { %3959 = vmatpush3.bf16.msra.mxu0 %v4399_v6  ;;  %v4475_v6 = vld [vmem:[%s4657_s27 + $0x298] ss:$100 sps:$4 sm:$0xff]  }
  0x95   : > { %3999 = vmatpush3.bf16.msra.mxu1 %v4400_v7  ;;  %3960 = vmatprep.subr.bf16.mxu0 %v4407_v12  ;;  %v4476_v7 = vld [vmem:[%s4657_s27 + $0x2a0] ss:$100 sps:$4 sm:$0xff]   ;;  %v4481_v12 = vld [vmem:[%s5350_s1 + $0x578] sm:$0xff]  }
  0x96   : > { %4000 = vmatprep.subr.bf16.mxu1 %v4408_v13  ;;  %v4482_v13 = vld [vmem:[%s5350_s1 + $0x5f8] sm:$0xff]  }
  0x97   : > { %2826 = vmatmul.mubr.bf16.gmra.mrb[56].mxu0 %v4405_v10  ;;  %v4479_v10 = vld [vmem:[%s5350_s1 + $0x530] sm:$0xff]  }
  0x98   : > { %2891 = vmatmul.mubr.bf16.gmra.mrb[56].mxu1 %v4406_v11  ;;  %3961 = vmatpush3.bf16.msra.mxu0 %v4409_v14  ;;  %v4480_v11 = vld [vmem:[%s5350_s1 + $0x5b0] sm:$0xff]   ;;  %v4483_v14 = vld [vmem:[%s5350_s1 + $0x538] sm:$0xff]  }
  0x99   : > { %4001 = vmatpush3.bf16.msra.mxu1 %v4410_v15  ;;  %3962 = vmatprep.subr.bf16.mxu0 %v4411_v16  ;;  %v4484_v15 = vld [vmem:[%s5350_s1 + $0x5b8] sm:$0xff]   ;;  %v4485_v16 = vld [vmem:[%s4657_s27 + $0x50] ss:$100 sps:$4 sm:$0xff]  }
  0x9a   : > { %4002 = vmatprep.subr.bf16.mxu1 %v4412_v17  ;;  %2833 = vmatprep.mubr.bf16.mxu0 %v4415_v20  ;;  %v4487_v17 = vld [vmem:[%s4657_s27 + $0x54] ss:$100 sps:$4 sm:$0xff]  }
  0x9b   : > { %2898 = vmatprep.mubr.bf16.mxu1 %v4417_v21  ;;  %v4491_v21 = vld [vmem:[%s5350_s1 + $0x600] sm:$0xff]  }
  0x9c   : > { %3963 = vmatpush3.bf16.msra.mxu0 %v4413_v18  ;;  %v4488_v18 = vld [vmem:[%s4657_s27 + $0x58] ss:$100 sps:$4 sm:$0xff]  }
  0x9d   : > { %4003 = vmatpush3.bf16.msra.mxu1 %v4414_v19  ;;  %3964 = vmatprep.subr.bf16.mxu0 %v4421_v24  ;;  %v4490_v19 = vld [vmem:[%s4657_s27 + $0x5c] ss:$100 sps:$4 sm:$0xff]  }
  0x9e   : > { %4004 = vmatprep.subr.bf16.mxu1 %v4422_v25  ;;  %v4493_v25 = vld [vmem:[%s4657_s27 + $0x11c] ss:$100 sps:$4 sm:$0xff]  }
  0x9f   : > { %2834 = vmatmul.mubr.bf16.gmra.mrb[60].mxu0 %v4419_v22 }
  0xa0   : > { %2899 = vmatmul.mubr.bf16.gmra.mrb[60].mxu1 %v4420_v23  ;;  %3965 = vmatpush3.bf16.msra.mxu0 %v4423_v26  ;;  %v4492_v23 = vld [vmem:[%s5350_s1 + $0x608] sm:$0xff]  }
  0xa1   : > { %4005 = vmatpush3.bf16.msra.mxu1 %v4424_v27  ;;  %3966 = vmatprep.subr.bf16.mxu0 %v4425_v28 }
  0xa2   : > { %4006 = vmatprep.subr.bf16.mxu1 %v4426_v29  ;;  %2939 = vmatprep.mubr.bf16.mxu0 %v4431_v33  ;;  %v4495_v29 = vld [vmem:[%s4657_s27 + $0x124] ss:$100 sps:$4 sm:$0xff]   ;;  %v4497_v33 = vld [vmem:[%s4657_s27 + $0x118] ss:$100 sps:$4 sm:$0xff]  }
  0xa3   : > { %3004 = vmatprep.mubr.bf16.mxu1 %v4434_v35  ;;  %v4499_v35 = vld [vmem:[%s5350_s1 + $0x610] sm:$0xff]  }
  0xa4   : > { %3967 = vmatpush3.bf16.msra.mxu0 %v4427_v30 }
  0xa5   : > { %4007 = vmatpush3.bf16.msra.mxu1 %v4428_v31  ;;  %4032 = vmatprep.subr.bf16.mxu0 %v4435_v36 }
  0xa6   : > { %4072 = vmatprep.subr.bf16.mxu1 %v4436_v37  ;;  %v4498_v37 = vld [vmem:[%s4657_s27 + $0x120] ss:$100 sps:$4 sm:$0xff]  }
  0xa7   : > { %2940 = vmatmul.mubr.bf16.vlgmr.msra.gmra.mrb[64].mxu0 %v4429_v32 }
  0xa8   : > { %3005 = vmatmul.mubr.bf16.vlgmr.msra.gmra.mrb[64].mxu1 %v4432_v34  ;;  %4033 = vmatpush3.bf16.msra.mxu0 %v4437_v38 }
  0xa9   : > { %4073 = vmatpush3.bf16.msra.mxu1 %v4438_v39  ;;  %4034 = vmatprep.subr.bf16.mxu0 %v4439_v40  ;;  %v4501_v39 = vld [vmem:[%s4657_s27 + $0x1e4] ss:$100 sps:$4 sm:$0xff]   ;;  %v4500_v40 = vld [vmem:[%s5350_s1 + $0x618] sm:$0xff]  }
  0xaa   : > { %4074 = vmatprep.subr.bf16.mxu1 %v4440_v41  ;;  %2947 = vmatprep.mubr.bf16.mxu0 %v4443_v44  ;;  %v4503_v41 = vld [vmem:[%s4657_s27 + $0x1ec] ss:$100 sps:$4 sm:$0xff]  }
  0xab   : > { %3012 = vmatprep.mubr.bf16.mxu1 %v4445_v45 }
  0xac   : > { %4035 = vmatpush3.bf16.msra.mxu0 %v4441_v42 }
  0xad   : > { %4075 = vmatpush3.bf16.msra.mxu1 %v4442_v43  ;;  %4036 = vmatprep.subr.bf16.mxu0 %v4449_v48  ;;  %v4505_v43 = vld [vmem:[%s4657_s27 + $0x1e0] ss:$100 sps:$4 sm:$0xff]  }
  0xae   : > { %4076 = vmatprep.subr.bf16.mxu1 %v4450_v49 }
  0xaf   : > { %2948 = vmatmul.mubr.bf16.gmra.mrb[68].mxu0 %v4447_v46  ;;  %v4507_v46 = vld [vmem:[%s5350_s1 + $0x620] sm:$0xff]  }
  0xb0   : > { %3013 = vmatmul.mubr.bf16.gmra.mrb[68].mxu1 %v4448_v47  ;;  %4037 = vmatpush3.bf16.msra.mxu0 %v4451_v50  ;;  %v4506_v50 = vld [vmem:[%s4657_s27 + $0x1e8] ss:$100 sps:$4 sm:$0xff]  }
  0xb1   : > { %4077 = vmatpush3.bf16.msra.mxu1 %v4452_v51  ;;  %4038 = vmatprep.subr.bf16.mxu0 %v4453_v52  ;;  %v4509_v51 = vld [vmem:[%s4657_s27 + $0x2ac] ss:$100 sps:$4 sm:$0xff]   ;;  %v4511_v52 = vld [vmem:[%s4657_s27 + $0x2b4] ss:$100 sps:$4 sm:$0xff]  }
  0xb2   : > { %4078 = vmatprep.subr.bf16.mxu1 %v4454_v53  ;;  %2955 = vmatprep.mubr.bf16.mxu0 %v4457_v56  ;;  %v4508_v56 = vld [vmem:[%s5350_s1 + $0x628] sm:$0xff]  }
  0xb3   : > { %3020 = vmatprep.mubr.bf16.mxu1 %v4459_v57 }
  0xb4   : > { %4039 = vmatpush3.bf16.msra.mxu0 %v4455_v54 }
  0xb5   : > { %4079 = vmatpush3.bf16.msra.mxu1 %v4456_v55  ;;  %4040 = vmatprep.subr.bf16.mxu0 %v4463_v60 }
  0xb6   : > { %4080 = vmatprep.subr.bf16.mxu1 %v4464_v61 }
  0xb7   : > { %2956 = vmatmul.mubr.bf16.gmra.mrb[72].mxu0 %v4461_v58  ;;  %v4515_v58 = vld [vmem:[%s5350_s1 + $0x630] sm:$0xff]  }
  0xb8   : > { %3021 = vmatmul.mubr.bf16.gmra.mrb[72].mxu1 %v4462_v59  ;;  %4041 = vmatpush3.bf16.msra.mxu0 %v4465_v62  ;;  %v5269_v59 = vld [vmem:[%s5351_s2] ss:$0 sm:$0xff]  ;;  %v4513_v62 = vld [vmem:[%s4657_s27 + $0x2a8] ss:$100 sps:$4 sm:$0xff]  }
  0xb9   : > { %4081 = vmatpush3.bf16.msra.mxu1 %v4466_v63  ;;  %4042 = vmatprep.subr.bf16.mxu0 %v4467_v0 }
  0xba   : > { %4082 = vmatprep.subr.bf16.mxu1 %v4468_v1  ;;  %2963 = vmatprep.mubr.bf16.mxu0 %v4471_v4 }
  0xbb   : > { %3028 = vmatprep.mubr.bf16.mxu1 %v4473_v5  ;;  %v4514_v5 = vld [vmem:[%s4657_s27 + $0x2b0] ss:$100 sps:$4 sm:$0xff]  }
  0xbc   : > { %4043 = vmatpush3.bf16.msra.mxu0 %v4469_v2 }
  0xbd   : > { %4083 = vmatpush3.bf16.msra.mxu1 %v4470_v3  ;;  %4044 = vmatprep.subr.bf16.mxu0 %v4477_v8 }
  0xbe   : > { %4084 = vmatprep.subr.bf16.mxu1 %v4478_v9 }
  0xbf   : > { %2964 = vmatmul.mubr.bf16.gmra.mrb[76].mxu0 %v4475_v6  ;;  %v4517_v6 = vld [vmem:[%s4657_s27 + $0x60] ss:$100 sps:$4 sm:$0xff]  }
  0xc0   : > { %3029 = vmatmul.mubr.bf16.gmra.mrb[76].mxu1 %v4476_v7  ;;  %4045 = vmatpush3.bf16.msra.mxu0 %v4479_v10 }
  0xc1   : > { %4085 = vmatpush3.bf16.msra.mxu1 %v4480_v11  ;;  %4046 = vmatprep.subr.bf16.mxu0 %v4481_v12  ;;  %v4518_v11 = vld [vmem:[%s4657_s27 + $0x1f0] ss:$100 sps:$4 sm:$0xff]  }
  0xc2   : > { %4086 = vmatprep.subr.bf16.mxu1 %v4482_v13  ;;  %3069 = vmatprep.mubr.bf16.mxu0 %v4487_v17 }
  0xc3   : > { %3134 = vmatprep.mubr.bf16.mxu1 %v4490_v19 }
  0xc4   : > { %4047 = vmatpush3.bf16.msra.mxu0 %v4483_v14 }
  0xc5   : > { %4087 = vmatpush3.bf16.msra.mxu1 %v4484_v15  ;;  %4124 = vmatprep.subr.bf16.mxu0 %v4491_v21 }
  0xc6   : > { %4148 = vmatprep.subr.bf16.mxu1 %v4491_v21 }
  0xc7   : > { %3070 = vmatmul.mubr.bf16.vlgmr.msra.gmra.mrb[80].mxu0 %v4485_v16 }
  0xc8   : > { %3135 = vmatmul.mubr.bf16.vlgmr.msra.gmra.mrb[80].mxu1 %v4488_v18  ;;  %4125 = vmatpush3.bf16.msra.mxu0 %v4491_v21  ;;  %v4516_v18 = vld [vmem:[%s5350_s1 + $0x638] sm:$0xff]  }
  0xc9   : > { %4156 = vmatpush3.bf16.msra.mxu1 %v4491_v21  ;;  %4126 = vmatprep.subr.bf16.mxu0 %v4492_v23 }
  0xca   : > { %4149 = vmatprep.subr.bf16.mxu1 %v4492_v23  ;;  %3077 = vmatprep.mubr.bf16.mxu0 %v4493_v25 }
  0xcb   : > { %3142 = vmatprep.mubr.bf16.mxu1 %v4495_v29 }
  0xcc   : > { %4127 = vmatpush3.bf16.msra.mxu0 %v4492_v23 }
  0xcd   : > { %4157 = vmatpush3.bf16.msra.mxu1 %v4492_v23  ;;  %4128 = vmatprep.subr.bf16.mxu0 %v4499_v35 }
  0xce   : > { %4150 = vmatprep.subr.bf16.mxu1 %v4499_v35 }
  0xcf   : > { %3078 = vmatmul.mubr.bf16.gmra.mrb[84].mxu0 %v4497_v33 }
  0xd0   : > { %3143 = vmatmul.mubr.bf16.gmra.mrb[84].mxu1 %v4498_v37  ;;  %3085 = vmatprep.mubr.bf16.mxu0 %v4501_v39 }
  0xd1   : > { %4129 = vmatpush3.bf16.msra.mxu0 %v4499_v35  ;;  %3150 = vmatprep.mubr.bf16.mxu1 %v4503_v41 }
  0xd2   : > { %4158 = vmatpush3.bf16.msra.mxu1 %v4499_v35  ;;  %4130 = vmatprep.subr.bf16.mxu0 %v4500_v40 }
  0xd3   : > { %4151 = vmatprep.subr.bf16.mxu1 %v4500_v40 }
  0xd5   : > { %4131 = vmatpush3.bf16.msra.mxu0 %v4500_v40 }
  0xd6   : > { %4159 = vmatpush3.bf16.msra.mxu1 %v4500_v40  ;;  %4132 = vmatprep.subr.bf16.mxu0 %v4507_v46 }
  0xd7   : > { %3086 = vmatmul.mubr.bf16.gmra.mrb[88].mxu0 %v4505_v43  ;;  %4152 = vmatprep.subr.bf16.mxu1 %v4507_v46 }
  0xd8   : > { %3151 = vmatmul.mubr.bf16.gmra.mrb[88].mxu1 %v4506_v50  ;;  %3093 = vmatprep.mubr.bf16.mxu0 %v4509_v51 }
  0xd9   : > { %4133 = vmatpush3.bf16.msra.mxu0 %v4507_v46  ;;  %3158 = vmatprep.mubr.bf16.mxu1 %v4511_v52 }
  0xda   : > { %4160 = vmatpush3.bf16.msra.mxu1 %v4507_v46  ;;  %4134 = vmatprep.subr.bf16.mxu0 %v4508_v56 }
  0xdb   : > { %4153 = vmatprep.subr.bf16.mxu1 %v4508_v56 }
  0xdd   : > { %4135 = vmatpush3.bf16.msra.mxu0 %v4508_v56 }
  0xde   : > { %4161 = vmatpush3.bf16.msra.mxu1 %v4508_v56  ;;  %4136 = vmatprep.subr.bf16.mxu0 %v4515_v58 }
  0xdf   : > { %3094 = vmatmul.mubr.bf16.gmra.mrb[92].mxu0 %v4513_v62  ;;  %4154 = vmatprep.subr.bf16.mxu1 %v4515_v58 }
  0xe0   : > { %3159 = vmatmul.mubr.bf16.gmra.mrb[92].mxu1 %v4514_v5  ;;  %4140 = vmatprep.mubr.bf16.mxu0 %v4517_v6 }
  0xe1   : > { %4137 = vmatpush3.bf16.msra.mxu0 %v4515_v58  ;;  %4144 = vmatprep.mubr.bf16.mxu1 %v4518_v11 }
  0xe2   : > { %4162 = vmatpush3.bf16.msra.mxu1 %v4515_v58  ;;  %4138 = vmatprep.subr.bf16.mxu0 %v4516_v18 }
  0xe3   : > { %4155 = vmatprep.subr.bf16.mxu1 %v4516_v18 }
  0xe5   : > { %4139 = vmatpush3.bf16.msra.mxu0 %v4516_v18 }
  0xe6   : > { %4163 = vmatpush3.bf16.msra.mxu1 %v4516_v18 }
  0xfa   : > { %v3648_v20 = vpop.f32.mrb[0].mxu0 }
  0xfb   : > { %v3688_v22 = vpop.f32.mrb[0].mxu1  ;;  %v3649_v24 = vpop.f32.mrb[1].mxu0 }
  0xfc   : > { %v5236_v26 = vadd.f32 %v3649_v24, %v3648_v20  ;;  %v3689_v27 = vpop.f32.mrb[1].mxu1  ;;  %v3651_v28 = vpop.f32.mrb[2].mxu0 }
  0xfd   : > { %v5239_v30 = vadd.f32 %v3689_v27, %v3688_v22  ;;  %v3691_v31 = vpop.f32.mrb[2].mxu1  ;;  %v3652_v32 = vpop.f32.mrb[3].mxu0  ;;  %v4519_v27 = vld [vmem:[%s4657_s27 + $0x128] ss:$100 sps:$4 sm:$0xff]  }
  0xfe   : > { %v3653_v34 = vadd.f32 %v3652_v32, %v3651_v28  ;;  %v3692_v36 = vpop.f32.mrb[3].mxu1  ;;  %v2422_v63 = vadd.f32 %v5236_v26, %v5269_v59  ;;  %v4520_v28 = vld [vmem:[%s4657_s27 + $0x2b8] ss:$100 sps:$4 sm:$0xff]   ;;  %4141 = vmatmul.mubr.bf16.vlgmr.msra.gmra.mrb[96].mxu0 %v4519_v27  ;;  %s3624_s27 = sshll.u32 %s5354_s13, 3 }
  0xff   : > { %v5246_v38 = vadd.f32 %v3692_v36, %v3691_v31  ;;  %4145 = vmatmul.mubr.bf16.vlgmr.msra.gmra.mrb[96].mxu1 %v4520_v28  ;;  %s170_s9 = scalar_lea.vmem %s5352_s3, %s3624_s27 }
 0x100   : > { %v2425_v0 = vadd.f32 %v3653_v34, %v5269_v59  ;;  %v2487_v12 = vadd.f32 %v5239_v30, %v2422_v63 }
 0x102   : > { %v3654_v42 = vpop.f32.mrb[4].mxu0  ;;  %v2490_v13 = vadd.f32 %v5246_v38, %v2425_v0 }
 0x103   : > { %v3694_v44 = vpop.f32.mrb[4].mxu1  ;;  %v3655_v45 = vpop.f32.mrb[5].mxu0 }
 0x104   : > { %v3656_v47 = vadd.f32 %v3655_v45, %v3654_v42  ;;  %v3695_v48 = vpop.f32.mrb[5].mxu1  ;;  %v3657_v49 = vpop.f32.mrb[6].mxu0 }
 0x105   : > { %v3696_v53 = vadd.f32 %v3695_v48, %v3694_v44  ;;  %v3697_v54 = vpop.f32.mrb[6].mxu1  ;;  %v3658_v55 = vpop.f32.mrb[7].mxu0 }
 0x106   : > { %v3659_v57 = vadd.f32 %v3658_v55, %v3657_v49  ;;  %v3698_v60 = vpop.f32.mrb[7].mxu1  ;;  %v2430_v1 = vadd.f32 %v3656_v47, %v5269_v59 }
 0x107   : > { %v3699_v7 = vadd.f32 %v3698_v60, %v3697_v54 }
 0x108   : > { %v2433_v2 = vadd.f32 %v3659_v57, %v5269_v59  ;;  %v5282_v14 = vadd.f32 %v3696_v53, %v2430_v1 }
 0x10a   : > { %v3660_v61 = vpop.f32.mrb[8].mxu0  ;;  %v5287_v19 = vadd.f32 %v3699_v7, %v2433_v2 }
 0x10b   : > { %v3700_v3 = vpop.f32.mrb[8].mxu1  ;;  %v3661_v4 = vpop.f32.mrb[9].mxu0 }
 0x10c   : > { %v3662_v8 = vadd.f32 %v3661_v4, %v3660_v61  ;;  %v3701_v9 = vpop.f32.mrb[9].mxu1  ;;  %v3663_v10 = vpop.f32.mrb[10].mxu0 }
 0x10d   : > { %v3702_v15 = vadd.f32 %v3701_v9, %v3700_v3  ;;  %v3703_v16 = vpop.f32.mrb[10].mxu1  ;;  %v3664_v17 = vpop.f32.mrb[11].mxu0 }
 0x10e   : > { %v2438_v20 = vadd.f32 %v3662_v8, %v5269_v59  ;;  %v3665_v21 = vadd.f32 %v3664_v17, %v3663_v10  ;;  %v3704_v22 = vpop.f32.mrb[11].mxu1 }
 0x10f   : > { %v3705_v23 = vadd.f32 %v3704_v22, %v3703_v16 }
 0x110   : > { %v5290_v24 = vadd.f32 %v3702_v15, %v2438_v20  ;;  %v2441_v25 = vadd.f32 %v3665_v21, %v5269_v59 }
 0x112   : > { %v5293_v26 = vadd.f32 %v3705_v23, %v2441_v25  ;;  %v3666_v29 = vpop.f32.mrb[12].mxu0 }
 0x113   : > { %v3706_v30 = vpop.f32.mrb[12].mxu1  ;;  %v3667_v31 = vpop.f32.mrb[13].mxu0 }
 0x114   : > { %v3707_v32 = vpop.f32.mrb[13].mxu1  ;;  %v3668_v33 = vadd.f32 %v3667_v31, %v3666_v29  ;;  %v3669_v35 = vpop.f32.mrb[14].mxu0 }
 0x115   : > { %v3708_v34 = vadd.f32 %v3707_v32, %v3706_v30  ;;  %v3709_v36 = vpop.f32.mrb[14].mxu1  ;;  %v3670_v37 = vpop.f32.mrb[15].mxu0 }
 0x116   : > { %v3710_v38 = vpop.f32.mrb[15].mxu1  ;;  %v2446_v39 = vadd.f32 %v3668_v33, %v5269_v59  ;;  %v3671_v40 = vadd.f32 %v3670_v37, %v3669_v35 }
 0x117   : > { %v3711_v41 = vadd.f32 %v3710_v38, %v3709_v36 }
 0x118   : > { %v2511_v42 = vadd.f32 %v3708_v34, %v2446_v39  ;;  %v2449_v43 = vadd.f32 %v3671_v40, %v5269_v59 }
 0x11a   : > { %v5299_v44 = vadd.f32 %v3711_v41, %v2449_v43  ;;  %v3728_v45 = vpop.f32.mrb[16].mxu0 }
 0x11b   : > { %v3729_v46 = vpop.f32.mrb[17].mxu0  ;;  %v3768_v47 = vpop.f32.mrb[16].mxu1 }
 0x11c   : > { %v3730_v48 = vadd.f32 %v3729_v46, %v3728_v45  ;;  %v3731_v49 = vpop.f32.mrb[18].mxu0  ;;  %v3769_v50 = vpop.f32.mrb[17].mxu1 }
 0x11d   : > { %v3732_v51 = vpop.f32.mrb[19].mxu0  ;;  %v3770_v53 = vadd.f32 %v3769_v50, %v3768_v47  ;;  %v3771_v54 = vpop.f32.mrb[18].mxu1 }
 0x11e   : > { %v2552_v52 = vadd.f32 %v3730_v48, %v2487_v12  ;;  %v3733_v55 = vadd.f32 %v3732_v51, %v3731_v49  ;;  %v3772_v56 = vpop.f32.mrb[19].mxu1 }
 0x11f   : > { %v3773_v60 = vadd.f32 %v3772_v56, %v3771_v54 }
 0x120   : > { %v2617_v57 = vadd.f32 %v3770_v53, %v2552_v52  ;;  %v2555_v58 = vadd.f32 %v3733_v55, %v2490_v13 }
 0x122   : > { %v5301_v61 = vadd.f32 %v3773_v60, %v2555_v58  ;;  %v3734_v59 = vpop.f32.mrb[20].mxu0 }
 0x123   : > { %v3774_v62 = vpop.f32.mrb[20].mxu1  ;;  %v3735_v63 = vpop.f32.mrb[21].mxu0 }
 0x124   : > { %v3736_v0 = vadd.f32 %v3735_v63, %v3734_v59  ;;  %v3775_v1 = vpop.f32.mrb[21].mxu1  ;;  %v3737_v2 = vpop.f32.mrb[22].mxu0 }
 0x125   : > { %v3776_v3 = vadd.f32 %v3775_v1, %v3774_v62  ;;  %v3777_v4 = vpop.f32.mrb[22].mxu1  ;;  %v3738_v5 = vpop.f32.mrb[23].mxu0 }
 0x126   : > { %v2560_v6 = vadd.f32 %v3736_v0, %v5282_v14  ;;  %v3739_v7 = vadd.f32 %v3738_v5, %v3737_v2  ;;  %v3778_v8 = vpop.f32.mrb[23].mxu1 }
 0x127   : > { %v3779_v9 = vadd.f32 %v3778_v8, %v3777_v4 }
 0x128   : > { %v2625_v10 = vadd.f32 %v3776_v3, %v2560_v6  ;;  %v2563_v11 = vadd.f32 %v3739_v7, %v5287_v19 }
 0x12a   : > { %v5305_v12 = vadd.f32 %v3779_v9, %v2563_v11  ;;  %v3740_v13 = vpop.f32.mrb[24].mxu0 }
 0x12b   : > { %v3780_v15 = vpop.f32.mrb[24].mxu1  ;;  %v3741_v16 = vpop.f32.mrb[25].mxu0 }
 0x12c   : > { %v3781_v17 = vpop.f32.mrb[25].mxu1  ;;  %v3742_v18 = vadd.f32 %v3741_v16, %v3740_v13  ;;  %v3743_v21 = vpop.f32.mrb[26].mxu0 }
 0x12d   : > { %v3782_v20 = vadd.f32 %v3781_v17, %v3780_v15  ;;  %v3783_v22 = vpop.f32.mrb[26].mxu1  ;;  %v3744_v23 = vpop.f32.mrb[27].mxu0 }
 0x12e   : > { %v3784_v25 = vpop.f32.mrb[27].mxu1  ;;  %v2568_v14 = vadd.f32 %v3742_v18, %v5290_v24  ;;  %v3745_v27 = vadd.f32 %v3744_v23, %v3743_v21 }
 0x12f   : > { %v3785_v28 = vadd.f32 %v3784_v25, %v3783_v22 }
 0x130   : > { %v2633_v29 = vadd.f32 %v3782_v20, %v2568_v14  ;;  %v2571_v30 = vadd.f32 %v3745_v27, %v5293_v26 }
 0x132   : > { %v5309_v19 = vadd.f32 %v3785_v28, %v2571_v30  ;;  %v3746_v31 = vpop.f32.mrb[28].mxu0 }
 0x133   : > { %v3786_v32 = vpop.f32.mrb[28].mxu1  ;;  %v3747_v33 = vpop.f32.mrb[29].mxu0 }
 0x134   : > { %v3748_v34 = vadd.f32 %v3747_v33, %v3746_v31  ;;  %v3787_v35 = vpop.f32.mrb[29].mxu1  ;;  %v3749_v36 = vpop.f32.mrb[30].mxu0 }
 0x135   : > { %v3788_v37 = vadd.f32 %v3787_v35, %v3786_v32  ;;  %v3789_v38 = vpop.f32.mrb[30].mxu1  ;;  %v3750_v39 = vpop.f32.mrb[31].mxu0 }
 0x136   : > { %v2576_v40 = vadd.f32 %v3748_v34, %v2511_v42  ;;  %v3751_v41 = vadd.f32 %v3750_v39, %v3749_v36  ;;  %v3790_v43 = vpop.f32.mrb[31].mxu1 }
 0x137   : > { %v3791_v24 = vadd.f32 %v3790_v43, %v3789_v38 }
 0x138   : > { %v2641_v45 = vadd.f32 %v3788_v37, %v2576_v40  ;;  %v2579_v46 = vadd.f32 %v3751_v41, %v5299_v44 }
 0x13a   : > { %v5312_v47 = vadd.f32 %v3791_v24, %v2579_v46  ;;  %v3808_v26 = vpop.f32.mrb[32].mxu0 }
 0x13b   : > { %v3848_v48 = vpop.f32.mrb[32].mxu1  ;;  %v3809_v49 = vpop.f32.mrb[33].mxu0 }
 0x13c   : > { %v3810_v50 = vadd.f32 %v3809_v49, %v3808_v26  ;;  %v3849_v51 = vpop.f32.mrb[33].mxu1  ;;  %v3811_v52 = vpop.f32.mrb[34].mxu0 }
 0x13d   : > { %v3850_v53 = vadd.f32 %v3849_v51, %v3848_v48  ;;  %v3851_v54 = vpop.f32.mrb[34].mxu1  ;;  %v3812_v55 = vpop.f32.mrb[35].mxu0 }
 0x13e   : > { %v2682_v56 = vadd.f32 %v3810_v50, %v2617_v57  ;;  %v3813_v58 = vadd.f32 %v3812_v55, %v3811_v52  ;;  %v3852_v42 = vpop.f32.mrb[35].mxu1 }
 0x13f   : > { %v3853_v60 = vadd.f32 %v3852_v42, %v3851_v54 }
 0x140   : > { %v2747_v59 = vadd.f32 %v3850_v53, %v2682_v56  ;;  %v2685_v62 = vadd.f32 %v3813_v58, %v5301_v61 }
 0x142   : > { %v5315_v63 = vadd.f32 %v3853_v60, %v2685_v62  ;;  %v3814_v44 = vpop.f32.mrb[36].mxu0 }
 0x143   : > { %v3854_v0 = vpop.f32.mrb[36].mxu1  ;;  %v3815_v1 = vpop.f32.mrb[37].mxu0 }
 0x144   : > { %v3855_v2 = vpop.f32.mrb[37].mxu1  ;;  %v3816_v3 = vadd.f32 %v3815_v1, %v3814_v44  ;;  %v3817_v5 = vpop.f32.mrb[38].mxu0 }
 0x145   : > { %v3856_v4 = vadd.f32 %v3855_v2, %v3854_v0  ;;  %v3857_v6 = vpop.f32.mrb[38].mxu1  ;;  %v3818_v7 = vpop.f32.mrb[39].mxu0 }
 0x146   : > { %v3858_v8 = vpop.f32.mrb[39].mxu1  ;;  %v2690_v9 = vadd.f32 %v3816_v3, %v2625_v10  ;;  %v3819_v57 = vadd.f32 %v3818_v7, %v3817_v5 }
 0x147   : > { %v3859_v11 = vadd.f32 %v3858_v8, %v3857_v6 }
 0x148   : > { %v2755_v13 = vadd.f32 %v3856_v4, %v2690_v9  ;;  %v2693_v15 = vadd.f32 %v3819_v57, %v5305_v12 }
 0x14a   : > { %v5318_v16 = vadd.f32 %v3859_v11, %v2693_v15  ;;  %v3820_v61 = vpop.f32.mrb[40].mxu0 }
 0x14b   : > { %v3860_v17 = vpop.f32.mrb[40].mxu1  ;;  %v3821_v18 = vpop.f32.mrb[41].mxu0 }
 0x14c   : > { %v3822_v20 = vadd.f32 %v3821_v18, %v3820_v61  ;;  %v3861_v21 = vpop.f32.mrb[41].mxu1  ;;  %v3823_v22 = vpop.f32.mrb[42].mxu0 }
 0x14d   : > { %v3862_v23 = vadd.f32 %v3861_v21, %v3860_v17  ;;  %v3863_v25 = vpop.f32.mrb[42].mxu1  ;;  %v3824_v14 = vpop.f32.mrb[43].mxu0 }
 0x14e   : > { %v2698_v27 = vadd.f32 %v3822_v20, %v2633_v29  ;;  %v3825_v28 = vadd.f32 %v3824_v14, %v3823_v22  ;;  %v3864_v30 = vpop.f32.mrb[43].mxu1 }
 0x14f   : > { %v3865_v10 = vadd.f32 %v3864_v30, %v3863_v25 }
 0x150   : > { %v2763_v31 = vadd.f32 %v3862_v23, %v2698_v27  ;;  %v2701_v32 = vadd.f32 %v3825_v28, %v5309_v19 }
 0x152   : > { %v5321_v33 = vadd.f32 %v3865_v10, %v2701_v32  ;;  %v3826_v12 = vpop.f32.mrb[44].mxu0 }
 0x153   : > { %v3866_v34 = vpop.f32.mrb[44].mxu1  ;;  %v3827_v35 = vpop.f32.mrb[45].mxu0 }
 0x154   : > { %v3828_v36 = vadd.f32 %v3827_v35, %v3826_v12  ;;  %v3867_v37 = vpop.f32.mrb[45].mxu1  ;;  %v3829_v38 = vpop.f32.mrb[46].mxu0 }
 0x155   : > { %v3868_v39 = vadd.f32 %v3867_v37, %v3866_v34  ;;  %v3869_v40 = vpop.f32.mrb[46].mxu1  ;;  %v3830_v41 = vpop.f32.mrb[47].mxu0 }
 0x156   : > { %v2706_v43 = vadd.f32 %v3828_v36, %v2641_v45  ;;  %v3831_v24 = vadd.f32 %v3830_v41, %v3829_v38  ;;  %v3870_v29 = vpop.f32.mrb[47].mxu1 }
 0x157   : > { %v3871_v46 = vadd.f32 %v3870_v29, %v3869_v40 }
 0x158   : > { %v2771_v26 = vadd.f32 %v3868_v39, %v2706_v43  ;;  %v2709_v48 = vadd.f32 %v3831_v24, %v5312_v47 }
 0x15a   : > { %v5324_v49 = vadd.f32 %v3871_v46, %v2709_v48  ;;  %v3888_v19 = vpop.f32.mrb[48].mxu0 }
 0x15b   : > { %v3928_v50 = vpop.f32.mrb[48].mxu1  ;;  %v3889_v51 = vpop.f32.mrb[49].mxu0 }
 0x15c   : > { %v3890_v52 = vadd.f32 %v3889_v51, %v3888_v19  ;;  %v3929_v53 = vpop.f32.mrb[49].mxu1  ;;  %v3891_v54 = vpop.f32.mrb[50].mxu0 }
 0x15d   : > { %v3930_v55 = vadd.f32 %v3929_v53, %v3928_v50  ;;  %v3931_v56 = vpop.f32.mrb[50].mxu1  ;;  %v3892_v58 = vpop.f32.mrb[51].mxu0 }
 0x15e   : > { %v2812_v42 = vadd.f32 %v3890_v52, %v2747_v59  ;;  %v3893_v60 = vadd.f32 %v3892_v58, %v3891_v54  ;;  %v3932_v45 = vpop.f32.mrb[51].mxu1 }
 0x15f   : > { %v3933_v62 = vadd.f32 %v3932_v45, %v3931_v56 }
 0x160   : > { %v2877_v44 = vadd.f32 %v3930_v55, %v2812_v42  ;;  %v2815_v0 = vadd.f32 %v3893_v60, %v5315_v63 }
 0x162   : > { %v2880_v1 = vadd.f32 %v3933_v62, %v2815_v0  ;;  %v3894_v47 = vpop.f32.mrb[52].mxu0 }
 0x163   : > { %v3934_v2 = vpop.f32.mrb[52].mxu1  ;;  %v3895_v3 = vpop.f32.mrb[53].mxu0 }
 0x164   : > { %v3896_v4 = vadd.f32 %v3895_v3, %v3894_v47  ;;  %v3935_v5 = vpop.f32.mrb[53].mxu1  ;;  %v3897_v6 = vpop.f32.mrb[54].mxu0 }
 0x165   : > { %v3936_v7 = vadd.f32 %v3935_v5, %v3934_v2  ;;  %v3937_v8 = vpop.f32.mrb[54].mxu1  ;;  %v3898_v9 = vpop.f32.mrb[55].mxu0 }
 0x166   : > { %v2820_v57 = vadd.f32 %v3896_v4, %v2755_v13  ;;  %v3899_v11 = vadd.f32 %v3898_v9, %v3897_v6  ;;  %v3938_v15 = vpop.f32.mrb[55].mxu1 }
 0x167   : > { %v3939_v59 = vadd.f32 %v3938_v15, %v3937_v8 }
 0x168   : > { %v2885_v61 = vadd.f32 %v3936_v7, %v2820_v57  ;;  %v2823_v17 = vadd.f32 %v3899_v11, %v5318_v16 }
 0x16a   : > { %v5328_v18 = vadd.f32 %v3939_v59, %v2823_v17  ;;  %v3900_v63 = vpop.f32.mrb[56].mxu0 }
 0x16b   : > { %v3940_v20 = vpop.f32.mrb[56].mxu1  ;;  %v3901_v21 = vpop.f32.mrb[57].mxu0 }
 0x16c   : > { %v3902_v22 = vadd.f32 %v3901_v21, %v3900_v63  ;;  %v3941_v23 = vpop.f32.mrb[57].mxu1  ;;  %v3903_v25 = vpop.f32.mrb[58].mxu0 }
 0x16d   : > { %v3942_v14 = vadd.f32 %v3941_v23, %v3940_v20  ;;  %v3943_v27 = vpop.f32.mrb[58].mxu1  ;;  %v3904_v28 = vpop.f32.mrb[59].mxu0 }
 0x16e   : > { %v2828_v30 = vadd.f32 %v3902_v22, %v2763_v31  ;;  %v3905_v10 = vadd.f32 %v3904_v28, %v3903_v25  ;;  %v3944_v13 = vpop.f32.mrb[59].mxu1 }
 0x16f   : > { %v3945_v32 = vadd.f32 %v3944_v13, %v3943_v27 }
 0x170   : > { %v2893_v12 = vadd.f32 %v3942_v14, %v2828_v30  ;;  %v2831_v34 = vadd.f32 %v3905_v10, %v5321_v33 }
 0x172   : > { %v5331_v35 = vadd.f32 %v3945_v32, %v2831_v34  ;;  %v3906_v16 = vpop.f32.mrb[60].mxu0 }
 0x173   : > { %v3946_v36 = vpop.f32.mrb[60].mxu1  ;;  %v3907_v37 = vpop.f32.mrb[61].mxu0 }
 0x174   : > { %v3947_v38 = vpop.f32.mrb[61].mxu1  ;;  %v3908_v39 = vadd.f32 %v3907_v37, %v3906_v16  ;;  %v3909_v41 = vpop.f32.mrb[62].mxu0 }
 0x175   : > { %v3948_v40 = vadd.f32 %v3947_v38, %v3946_v36  ;;  %v3949_v43 = vpop.f32.mrb[62].mxu1  ;;  %v3910_v24 = vpop.f32.mrb[63].mxu0 }
 0x176   : > { %v3950_v29 = vpop.f32.mrb[63].mxu1  ;;  %v2836_v46 = vadd.f32 %v3908_v39, %v2771_v26  ;;  %v3911_v31 = vadd.f32 %v3910_v24, %v3909_v41 }
 0x177   : > { %v3951_v48 = vadd.f32 %v3950_v29, %v3949_v43 }
 0x178   : > { %v2901_v19 = vadd.f32 %v3948_v40, %v2836_v46  ;;  %v2839_v50 = vadd.f32 %v3911_v31, %v5324_v49 }
 0x17a   : > { %v5334_v51 = vadd.f32 %v3951_v48, %v2839_v50  ;;  %v3968_v33 = vpop.f32.mrb[64].mxu0 }
 0x17b   : > { %v3969_v52 = vpop.f32.mrb[65].mxu0  ;;  %v4008_v53 = vpop.f32.mrb[64].mxu1 }
 0x17c   : > { %v3970_v54 = vadd.f32 %v3969_v52, %v3968_v33  ;;  %v3971_v55 = vpop.f32.mrb[66].mxu0  ;;  %v4009_v56 = vpop.f32.mrb[65].mxu1 }
 0x17d   : > { %v3972_v58 = vpop.f32.mrb[67].mxu0  ;;  %v4010_v60 = vadd.f32 %v4009_v56, %v4008_v53  ;;  %v4011_v45 = vpop.f32.mrb[66].mxu1 }
 0x17e   : > { %v2942_v42 = vadd.f32 %v3970_v54, %v2877_v44  ;;  %v3973_v62 = vadd.f32 %v3972_v58, %v3971_v55  ;;  %v4012_v0 = vpop.f32.mrb[67].mxu1 }
 0x17f   : > { %v4013_v2 = vadd.f32 %v4012_v0, %v4011_v45 }
 0x180   : > { %v3007_v26 = vadd.f32 %v4010_v60, %v2942_v42  ;;  %v2945_v47 = vadd.f32 %v3973_v62, %v2880_v1 }
 0x182   : > { %v3010_v3 = vadd.f32 %v4013_v2, %v2945_v47  ;;  %v3974_v4 = vpop.f32.mrb[68].mxu0 }
 0x183   : > { %v4014_v49 = vpop.f32.mrb[68].mxu1  ;;  %v3975_v5 = vpop.f32.mrb[69].mxu0 }
 0x184   : > { %v3976_v6 = vadd.f32 %v3975_v5, %v3974_v4  ;;  %v4015_v7 = vpop.f32.mrb[69].mxu1  ;;  %v3977_v8 = vpop.f32.mrb[70].mxu0 }
 0x185   : > { %v4016_v9 = vadd.f32 %v4015_v7, %v4014_v49  ;;  %v4017_v57 = vpop.f32.mrb[70].mxu1  ;;  %v3978_v11 = vpop.f32.mrb[71].mxu0 }
 0x186   : > { %v2950_v15 = vadd.f32 %v3976_v6, %v2885_v61  ;;  %v3979_v59 = vadd.f32 %v3978_v11, %v3977_v8  ;;  %v4018_v44 = vpop.f32.mrb[71].mxu1 }
 0x187   : > { %v4019_v17 = vadd.f32 %v4018_v44, %v4017_v57 }
 0x188   : > { %v3015_v63 = vadd.f32 %v4016_v9, %v2950_v15  ;;  %v2953_v20 = vadd.f32 %v3979_v59, %v5328_v18 }
 0x18a   : > { %v3018_v21 = vadd.f32 %v4019_v17, %v2953_v20  ;;  %v3980_v1 = vpop.f32.mrb[72].mxu0 }
 0x18b   : > { %v4020_v22 = vpop.f32.mrb[72].mxu1  ;;  %v3981_v23 = vpop.f32.mrb[73].mxu0 }
 0x18c   : > { %v4021_v25 = vpop.f32.mrb[73].mxu1  ;;  %v3982_v14 = vadd.f32 %v3981_v23, %v3980_v1  ;;  %v3983_v28 = vpop.f32.mrb[74].mxu0 }
 0x18d   : > { %v4022_v27 = vadd.f32 %v4021_v25, %v4020_v22  ;;  %v4023_v30 = vpop.f32.mrb[74].mxu1  ;;  %v3984_v10 = vpop.f32.mrb[75].mxu0 }
 0x18e   : > { %v4024_v13 = vpop.f32.mrb[75].mxu1  ;;  %v2958_v32 = vadd.f32 %v3982_v14, %v2893_v12  ;;  %v3985_v34 = vadd.f32 %v3984_v10, %v3983_v28 }
 0x18f   : > { %v4025_v61 = vadd.f32 %v4024_v13, %v4023_v30 }
 0x190   : > { %v3023_v16 = vadd.f32 %v4022_v27, %v2958_v32  ;;  %v2961_v36 = vadd.f32 %v3985_v34, %v5331_v35 }
 0x192   : > { %v3026_v37 = vadd.f32 %v4025_v61, %v2961_v36  ;;  %v3986_v38 = vpop.f32.mrb[76].mxu0 }
 0x193   : > { %v4026_v18 = vpop.f32.mrb[76].mxu1  ;;  %v3987_v39 = vpop.f32.mrb[77].mxu0 }
 0x194   : > { %v3988_v40 = vadd.f32 %v3987_v39, %v3986_v38  ;;  %v4027_v41 = vpop.f32.mrb[77].mxu1  ;;  %v3989_v43 = vpop.f32.mrb[78].mxu0 }
 0x195   : > { %v4028_v24 = vadd.f32 %v4027_v41, %v4026_v18  ;;  %v4029_v29 = vpop.f32.mrb[78].mxu1  ;;  %v3990_v46 = vpop.f32.mrb[79].mxu0 }
 0x196   : > { %v2966_v31 = vadd.f32 %v3988_v40, %v2901_v19  ;;  %v3991_v48 = vadd.f32 %v3990_v46, %v3989_v43  ;;  %v4030_v50 = vpop.f32.mrb[79].mxu1 }
 0x197   : > { %v4031_v33 = vadd.f32 %v4030_v50, %v4029_v29 }
 0x198   : > { %v3031_v12 = vadd.f32 %v4028_v24, %v2966_v31  ;;  %v2969_v52 = vadd.f32 %v3991_v48, %v5334_v51 }
 0x19a   : > { %v3034_v53 = vadd.f32 %v4031_v33, %v2969_v52  ;;  %v4048_v54 = vpop.f32.mrb[80].mxu0 }
 0x19b   : > { %v4088_v35 = vpop.f32.mrb[80].mxu1  ;;  %v4049_v55 = vpop.f32.mrb[81].mxu0 }
 0x19c   : > { %v4050_v56 = vadd.f32 %v4049_v55, %v4048_v54  ;;  %v4089_v58 = vpop.f32.mrb[81].mxu1  ;;  %v4051_v42 = vpop.f32.mrb[82].mxu0 }
 0x19d   : > { %v4090_v60 = vadd.f32 %v4089_v58, %v4088_v35  ;;  %v4091_v45 = vpop.f32.mrb[82].mxu1  ;;  %v4052_v62 = vpop.f32.mrb[83].mxu0 }
 0x19e   : > { %v3072_v0 = vadd.f32 %v4050_v56, %v3007_v26  ;;  %v4053_v47 = vadd.f32 %v4052_v62, %v4051_v42  ;;  %v4092_v2 = vpop.f32.mrb[83].mxu1 }
 0x19f   : > { %v4093_v19 = vadd.f32 %v4092_v2, %v4091_v45 }
 0x1a0   : > { %v3075_v4 = vadd.f32 %v4053_v47, %v3010_v3  ;;  %v3137_v49 = vadd.f32 %v4090_v60, %v3072_v0 }
 0x1a2   : > { %v4054_v5 = vpop.f32.mrb[84].mxu0  ;;  %v5339_v6 = vadd.f32 %v4093_v19, %v3075_v4 }
 0x1a3   : > { %v4094_v51 = vpop.f32.mrb[84].mxu1  ;;  %v4055_v7 = vpop.f32.mrb[85].mxu0 }
 0x1a4   : > { %v4056_v8 = vadd.f32 %v4055_v7, %v4054_v5  ;;  %v4095_v9 = vpop.f32.mrb[85].mxu1  ;;  %v4057_v57 = vpop.f32.mrb[86].mxu0 }
 0x1a5   : > { %v4096_v11 = vadd.f32 %v4095_v9, %v4094_v51  ;;  %v4097_v15 = vpop.f32.mrb[86].mxu1  ;;  %v4058_v59 = vpop.f32.mrb[87].mxu0 }
 0x1a6   : > { %v3080_v44 = vadd.f32 %v4056_v8, %v3015_v63  ;;  %v4059_v17 = vadd.f32 %v4058_v59, %v4057_v57  ;;  %v4098_v20 = vpop.f32.mrb[87].mxu1 }
 0x1a7   : > { %v4099_v26 = vadd.f32 %v4098_v20, %v4097_v15 }
 0x1a8   : > { %v3083_v1 = vadd.f32 %v4059_v17, %v3018_v21  ;;  %v3145_v22 = vadd.f32 %v4096_v11, %v3080_v44 }
 0x1aa   : > { %v4060_v23 = vpop.f32.mrb[88].mxu0  ;;  %v3148_v3 = vadd.f32 %v4099_v26, %v3083_v1 }
 0x1ab   : > { %v4100_v25 = vpop.f32.mrb[88].mxu1  ;;  %v4061_v14 = vpop.f32.mrb[89].mxu0 }
 0x1ac   : > { %v4062_v27 = vadd.f32 %v4061_v14, %v4060_v23  ;;  %v4101_v28 = vpop.f32.mrb[89].mxu1  ;;  %v4063_v30 = vpop.f32.mrb[90].mxu0 }
 0x1ad   : > { %v4102_v10 = vadd.f32 %v4101_v28, %v4100_v25  ;;  %v4103_v13 = vpop.f32.mrb[90].mxu1  ;;  %v4064_v32 = vpop.f32.mrb[91].mxu0 }
 0x1ae   : > { %v3088_v34 = vadd.f32 %v4062_v27, %v3023_v16  ;;  %v4065_v61 = vadd.f32 %v4064_v32, %v4063_v30  ;;  %v4104_v36 = vpop.f32.mrb[91].mxu1 }
 0x1af   : > { %v4105_v38 = vadd.f32 %v4104_v36, %v4103_v13 }
 0x1b0   : > { %v3091_v63 = vadd.f32 %v4065_v61, %v3026_v37  ;;  %v3153_v18 = vadd.f32 %v4102_v10, %v3088_v34 }
 0x1b2   : > { %v4066_v39 = vpop.f32.mrb[92].mxu0  ;;  %v3156_v40 = vadd.f32 %v4105_v38, %v3091_v63 }
 0x1b3   : > { %v4106_v21 = vpop.f32.mrb[92].mxu1  ;;  %v4067_v41 = vpop.f32.mrb[93].mxu0 }
 0x1b4   : > { %v4068_v43 = vadd.f32 %v4067_v41, %v4066_v39  ;;  %v4107_v24 = vpop.f32.mrb[93].mxu1  ;;  %v4069_v29 = vpop.f32.mrb[94].mxu0 }
 0x1b5   : > { %v4108_v46 = vadd.f32 %v4107_v24, %v4106_v21  ;;  %v4109_v31 = vpop.f32.mrb[94].mxu1  ;;  %v4070_v48 = vpop.f32.mrb[95].mxu0 }
 0x1b6   : > { %v3096_v50 = vadd.f32 %v4068_v43, %v3031_v12  ;;  %v4071_v33 = vadd.f32 %v4070_v48, %v4069_v29  ;;  %v4110_v52 = vpop.f32.mrb[95].mxu1 }
 0x1b7   : > { %v4111_v54 = vadd.f32 %v4110_v52, %v4109_v31 }
 0x1b8   : > { %v3099_v16 = vadd.f32 %v4071_v33, %v3034_v53  ;;  %v3161_v35 = vadd.f32 %v4108_v46, %v3096_v50 }
 0x1ba   : > { %v3164_v55 = vadd.f32 %v4111_v54, %v3099_v16 }
 0x1d1   : > { %v4142_v56 = vpop.f32.mrb[96].mxu0 }
 0x1d2   : > { %v3210_v37 = vadd.f32 %v4142_v56, %v3145_v22  ;;  %v4146_v58 = vpop.f32.mrb[96].mxu1  ;;  %v3201_v42 = vpop.f32.mrb[97].mxu0 }
 0x1d3   : > { %v3226_v60 = vadd.f32 %v4146_v58, %v3161_v35  ;;  %v3202_v45 = vadd.f32 %v3201_v42, %v3137_v49  ;;  %v3217_v62 = vpop.f32.mrb[97].mxu1  ;;  %v4143_v0 = vpop.f32.mrb[98].mxu0 }
 0x1d4   : > { %v3234_v47 = vmax.f32 %v3210_v37, 0.0  ;;  %v3218_v2 = vadd.f32 %v3217_v62, %v3153_v18  ;;  %v3213_v19 = vadd.f32 %v4143_v0, %v3148_v3  ;;  %v4147_v4 = vpop.f32.mrb[98].mxu1  ;;  %v3204_v5 = vpop.f32.mrb[99].mxu0 }
 0x1d5   : > { %v3238_v12 = vmax.f32 %v3226_v60, 0.0  ;;  %v3232_v51 = vmax.f32 %v3202_v45, 0.0  ;;  %v3229_v7 = vadd.f32 %v4147_v4, %v3164_v55  ;;  %v3205_v53 = vadd.f32 %v3204_v5, %v5339_v6  ;;  %v3220_v8 = vpop.f32.mrb[99].mxu1 }
 0x1d6   : > { %v3236_v9 = vmax.f32 %v3218_v2, 0.0  ;;  %v3235_v57 = vmax.f32 %v3213_v19, 0.0  ;;  %v3221_v11 = vadd.f32 %v3220_v8, %v3156_v40 }
 0x1d7   : > { %v3240_v15 = vmax.f32 %v3232_v51, %v3234_v47  ;;  %v3239_v59 = vmax.f32 %v3229_v7, 0.0  ;;  %v3233_v49 = vmax.f32 %v3205_v53, 0.0 }
 0x1d8   : > { %v3242_v44 = vmax.f32 %v3236_v9, %v3238_v12  ;;  %v3237_v17 = vmax.f32 %v3221_v11, 0.0 }
 0x1d9   : > { %v3241_v20 = vmax.f32 %v3233_v49, %v3235_v57 }
 0x1da   : > { %v3244_v26 = vmax.f32 %v3240_v15, %v3242_v44  ;;  %v3243_v1 = vmax.f32 %v3237_v17, %v3239_v59 }
 0x1dc   : > { %v3245_v22 = vmax.f32 %v3241_v20, %v3243_v1 }
 0x1de   : > { %v3630_v23 = vpack.c.bf16 %v3245_v22, %v3244_v26 }
 0x1e0   : > { %3631 = vst [vmem:[%s170_s9] sm:$0xff] %v3630_v23  }
 0x1e1 PF: > { %s13_s12 = sadd.s32 1, %s4527_s12  }
 0x1e2   : > { %p10_p4 = scmp.ge.s32.totalorder %s13_s12, 7  }
 0x1e4   :  { %12 = sbr.rel (!%p10_p4) target bundleno = 1 (0x1), region = 62 }

// kernel: multi_input_net_forward.5
= control target key start
LH: loop header
LB: loop body
LE: loop exit
PB: predicated region body
PF: predicated region fallthrough
CT: control target
= control target key end

     0   :  { %s6785_s19 = smov 0   ;;  %s8665_s0 = inlined_call_operand.vmem [shape: bf16[2,3,2048], index: 0, kind: input, shape index: {}]   ;;  %s8666_s1 = inlined_call_operand.vmem [shape: f32[2,3,1], index: 1, kind: input, shape index: {}]   ;;  %s8667_s2 = inlined_call_operand.vmem [shape: bf16[2048,512], index: 2, kind: input, shape index: {}]   ;;  %s8668_s3 = inlined_call_operand.vmem [shape: f32[1,512], index: 3, kind: input, shape index: {}]   ;;  %s8669_s4 = inlined_call_operand.vmem [shape: bf16[512,128], index: 4, kind: input, shape index: {}]   ;;  %s8670_s5 = inlined_call_operand.vmem [shape: f32[1,128], index: 5, kind: input, shape index: {}]   ;;  %s8671_s6 = inlined_call_operand.vmem [shape: f32[1,128], index: 6, kind: input, shape index: {}]   ;;  %s8672_s7 = inlined_call_operand.<no memory space> [shape: f32[1,1], index: 7, kind: input, shape index: {}]   ;;  %s8673_s8 = inlined_call_operand.vmem [shape: bf16[512,128], index: 8, kind: input, shape index: {}]   ;;  %s8674_s9 = inlined_call_operand.vmem [shape: f32[1,128], index: 9, kind: input, shape index: {}]   ;;  %s8675_s10 = inlined_call_operand.vmem [shape: f32[2,1,128], index: 10, kind: output, shape index: {0}]   ;;  %s8676_s11 = inlined_call_operand.vmem [shape: f32[2,3,1], index: 11, kind: output, shape index: {1}]  }
   0x1   :  { %v17_v0 = vstv %s8672_s7 }
   0x2   :  { %18 = vst [vmem:[#allocation2] sm:$0x1] %v17_v0 }
   0x3 LB: > { %s5120_s20 = sadd.s32 4294967295, %s6718_s19   ;;  %p5124_p0 = scmp.ge.s32.totalorder %s6718_s19, 1  ;;  %s6718_s19 = sphi %s6785_s19, %s24_s19  }
   0x4   : > { %p351_p1 = scmp.lt.s32.totalorder %s6718_s19, 3 }
   0x6   : > { %p352_p2 = pnand %p5124_p0, %p351_p1 }
   0x7   : > { %v5870_v1 = vld [vmem:[%s8667_s2 + $0x4] ss:$16 sps:$4 sm:$0xff] (!%p352_p2)   ;;  %v5872_v2 = vld [vmem:[%s8667_s2 + $0xc] ss:$16 sps:$4 sm:$0xff] (!%p352_p2)   ;;  %v5874_v3 = vld [vmem:[%s8667_s2] ss:$16 sps:$4 sm:$0xff] (!%p352_p2)   ;;  %v932_v37 = vlaneseq (!%p352_p2) }
   0x8   : > { %355 = sbr.rel (%p352_p2) target bundleno = 1539 (0x603), region = 60  ;;  %3600 = vmatprep.subr.bf16.mxu0 (!%p352_p2), %v5870_v1  ;;  %v5875_v4 = vld [vmem:[%s8667_s2 + $0x8] ss:$16 sps:$4 sm:$0xff] (!%p352_p2)   ;;  %3928 = vmatprep.subr.bf16.mxu1 (!%p352_p2), %v5872_v2  ;;  %v5876_v5 = vld [vmem:[%s8667_s2 + $0x24] ss:$16 sps:$4 sm:$0xff] (!%p352_p2)   ;;  %p397_p3 = scmp.lt.s32.totalorder (!%p352_p2), %s5120_s20, 1 }
   0x9   : > { %3601 = vmatpush1.bf16.msra.mxu0 (!%p352_p2), %v5874_v3  ;;  %3929 = vmatpush1.bf16.msra.mxu1 (!%p352_p2), %v5875_v4  ;;  %v5878_v6 = vld [vmem:[%s8667_s2 + $0x2c] ss:$16 sps:$4 sm:$0xff] (!%p352_p2)   ;;  %v5880_v7 = vld [vmem:[%s8667_s2 + $0x20] ss:$16 sps:$4 sm:$0xff] (!%p352_p2)   ;;  %v5881_v8 = vld [vmem:[%s8667_s2 + $0x28] ss:$16 sps:$4 sm:$0xff] (!%p352_p2)  }
   0xa   : > { %3602 = vmatprep.subr.bf16.mxu0 (!%p352_p2), %v5876_v5  ;;  %3930 = vmatprep.subr.bf16.mxu1 (!%p352_p2), %v5878_v6  ;;  %v5882_v9 = vld [vmem:[%s8667_s2 + $0x44] ss:$16 sps:$4 sm:$0xff] (!%p352_p2)   ;;  %v5884_v10 = vld [vmem:[%s8667_s2 + $0x4c] ss:$16 sps:$4 sm:$0xff] (!%p352_p2)   ;;  %v5886_v11 = vld [vmem:[%s8667_s2 + $0x40] ss:$16 sps:$4 sm:$0xff] (!%p352_p2)  }
   0xb   : > { %v5887_v12 = vld [vmem:[%s8667_s2 + $0x48] ss:$16 sps:$4 sm:$0xff] (!%p352_p2)   ;;  %v5888_v13 = vld [vmem:[%s8667_s2 + $0x64] ss:$16 sps:$4 sm:$0xff] (!%p352_p2)   ;;  %v5890_v14 = vld [vmem:[%s8667_s2 + $0x6c] ss:$16 sps:$4 sm:$0xff] (!%p352_p2)  }
   0xc   : > { %v5892_v15 = vld [vmem:[%s8667_s2 + $0x60] ss:$16 sps:$4 sm:$0xff] (!%p352_p2)   ;;  %v5893_v16 = vld [vmem:[%s8667_s2 + $0x68] ss:$16 sps:$4 sm:$0xff] (!%p352_p2)   ;;  %v5894_v17 = vld [vmem:[%s8667_s2 + $0x84] ss:$16 sps:$4 sm:$0xff] (!%p352_p2)  }
   0xd   : > { %3603 = vmatpush1.bf16.msra.mxu0 (!%p352_p2), %v5880_v7  ;;  %3931 = vmatpush1.bf16.msra.mxu1 (!%p352_p2), %v5881_v8  ;;  %v5896_v18 = vld [vmem:[%s8667_s2 + $0x8c] ss:$16 sps:$4 sm:$0xff] (!%p352_p2)   ;;  %v5898_v19 = vld [vmem:[%s8667_s2 + $0x80] ss:$16 sps:$4 sm:$0xff] (!%p352_p2)   ;;  %v5899_v20 = vld [vmem:[%s8667_s2 + $0x88] ss:$16 sps:$4 sm:$0xff] (!%p352_p2)  }
   0xe   : > { %3604 = vmatprep.subr.bf16.mxu0 (!%p352_p2), %v5882_v9  ;;  %3932 = vmatprep.subr.bf16.mxu1 (!%p352_p2), %v5884_v10  ;;  %v5900_v21 = vld [vmem:[%s8667_s2 + $0xa4] ss:$16 sps:$4 sm:$0xff] (!%p352_p2)   ;;  %v5902_v22 = vld [vmem:[%s8667_s2 + $0xac] ss:$16 sps:$4 sm:$0xff] (!%p352_p2)   ;;  %v5904_v23 = vld [vmem:[%s8667_s2 + $0xa0] ss:$16 sps:$4 sm:$0xff] (!%p352_p2)  }
   0xf   : > { %v5905_v24 = vld [vmem:[%s8667_s2 + $0xa8] ss:$16 sps:$4 sm:$0xff]   ;;  %v5906_v25 = vld [vmem:[%s8667_s2 + $0xc4] ss:$16 sps:$4 sm:$0xff]   ;;  %v5908_v26 = vld [vmem:[%s8667_s2 + $0xcc] ss:$16 sps:$4 sm:$0xff]  }
  0x10   : > { %v5910_v27 = vld [vmem:[%s8667_s2 + $0xc0] ss:$16 sps:$4 sm:$0xff]   ;;  %v5911_v28 = vld [vmem:[%s8667_s2 + $0xc8] ss:$16 sps:$4 sm:$0xff]   ;;  %v5912_v29 = vld [vmem:[%s8667_s2 + $0xe4] ss:$16 sps:$4 sm:$0xff]  }
  0x11   : > { %3605 = vmatpush1.bf16.msra.mxu0 %v5886_v11  ;;  %3933 = vmatpush1.bf16.msra.mxu1 %v5887_v12  ;;  %v5914_v30 = vld [vmem:[%s8667_s2 + $0xec] ss:$16 sps:$4 sm:$0xff]   ;;  %v5916_v31 = vld [vmem:[%s8667_s2 + $0xe0] ss:$16 sps:$4 sm:$0xff]   ;;  %v5917_v32 = vld [vmem:[%s8667_s2 + $0xe8] ss:$16 sps:$4 sm:$0xff]  }
  0x12   : > { %3606 = vmatprep.subr.bf16.mxu0 %v5888_v13  ;;  %3934 = vmatprep.subr.bf16.mxu1 %v5890_v14  ;;  %v5918_v33 = vld [vmem:[%s8667_s2 + $0x104] ss:$16 sps:$4 sm:$0xff]   ;;  %v5920_v34 = vld [vmem:[%s8667_s2 + $0x10c] ss:$16 sps:$4 sm:$0xff]   ;;  %v5922_v35 = vld [vmem:[%s8667_s2 + $0x100] ss:$16 sps:$4 sm:$0xff]  }
  0x13   : > { %v5923_v36 = vld [vmem:[%s8667_s2 + $0x108] ss:$16 sps:$4 sm:$0xff]   ;;  %v6720_v38 = vmov 1983009808   ;;  %v5924_v40 = vld [vmem:[%s8667_s2 + $0x124] ss:$16 sps:$4 sm:$0xff]  }
  0x14   : > { %v958_v39 = vunpack.c.l.s4 %v6720_v38  ;;  %s8678_s20 = smov (!%p397_p3, %s5120_s20), 1  ;;  %v5926_v41 = vld [vmem:[%s8667_s2 + $0x12c] ss:$16 sps:$4 sm:$0xff]   ;;  %v5928_v42 = vld [vmem:[%s8667_s2 + $0x120] ss:$16 sps:$4 sm:$0xff]   ;;  %v6916_v43 = vshrl.u32 %v932_v37, 7 }
  0x15   : > { %3607 = vmatpush1.bf16.msra.mxu0 %v5892_v15  ;;  %3935 = vmatpush1.bf16.msra.mxu1 %v5893_v16  ;;  %v5929_v45 = vld [vmem:[%s8667_s2 + $0x128] ss:$16 sps:$4 sm:$0xff]   ;;  %v5930_v46 = vld [vmem:[%s8667_s2 + $0x144] ss:$16 sps:$4 sm:$0xff]   ;;  %s5710_s30 = sshll.u32 %s8678_s20, 5  ;;  %vm4616_vm0 = vcmask 1042432   ;;  %s408_s26 = scalar_lea.vmem %s8675_s10, %s8678_s20 }
  0x16   : > { %3608 = vmatprep.subr.bf16.mxu0 %v5894_v17  ;;  %3936 = vmatprep.subr.bf16.mxu1 %v5896_v18  ;;  %v959_v44 = vunpack.c.0.s8 %v958_v39  ;;  %v5932_v47 = vld [vmem:[%s8667_s2 + $0x14c] ss:$16 sps:$4 sm:$0xff]   ;;  %v5934_v48 = vld [vmem:[%s8667_s2 + $0x140] ss:$16 sps:$4 sm:$0xff]   ;;  %v5935_v49 = vld [vmem:[%s8667_s2 + $0x148] ss:$16 sps:$4 sm:$0xff]   ;;  %s6937_s22 = scalar_lea.vmem %s8665_s0, %s5710_s30 }
  0x17   : > { %v5936_v51 = vld [vmem:[%s8667_s2 + $0x164] ss:$16 sps:$4 sm:$0xff]   ;;  %v5938_v52 = vld [vmem:[%s8667_s2 + $0x16c] ss:$16 sps:$4 sm:$0xff]   ;;  %v5940_v54 = vld [vmem:[%s8667_s2 + $0x160] ss:$16 sps:$4 sm:$0xff]  }
  0x18   : > { %v6940_v50 = vsub.s32 %v959_v44, %v6916_v43  ;;  %v414_v53 = vld [vmem:[%s6937_s22] sm:$0xff]  ;;  %v5941_v56 = vld [vmem:[%s8667_s2 + $0x168] ss:$16 sps:$4 sm:$0xff]   ;;  %v5944_v58 = vld [vmem:[%s8667_s2 + $0x18c] ss:$16 sps:$4 sm:$0xff]   ;;  %s5127_s18 = sshll.u32 %s8678_s20, 2 }
  0x19   : > { %3609 = vmatpush1.bf16.msra.mxu0 %v5898_v19  ;;  %3937 = vmatpush1.bf16.msra.mxu1 %v5899_v20  ;;  %v5942_v57 = vld [vmem:[%s8667_s2 + $0x184] ss:$16 sps:$4 sm:$0xff]   ;;  %v5946_v60 = vld [vmem:[%s8667_s2 + $0x180] ss:$16 sps:$4 sm:$0xff]   ;;  %v5947_v61 = vld [vmem:[%s8667_s2 + $0x188] ss:$16 sps:$4 sm:$0xff]   ;;  %v956_v8 = vcombine.high %v414_v53, %v414_v53  ;;  %s405_s23 = scalar_lea.vmem %s8666_s1, %s5127_s18 }
  0x1a   : > { %3610 = vmatprep.subr.bf16.mxu0 %v5900_v21  ;;  %3938 = vmatprep.subr.bf16.mxu1 %v5902_v22  ;;  %v963_v55 = vrot.slane %v414_v53, %v6940_v50  ;;  %v5948_v62 = vld [vmem:[%s8667_s2 + $0x1a4] ss:$16 sps:$4 sm:$0xff]   ;;  %v5950_v63 = vld [vmem:[%s8667_s2 + $0x1ac] ss:$16 sps:$4 sm:$0xff]   ;;  %v5952_v0 = vld [vmem:[%s8667_s2 + $0x1a0] ss:$16 sps:$4 sm:$0xff]  }
  0x1b   : > { %v5953_v1 = vld [vmem:[%s8667_s2 + $0x1a8] ss:$16 sps:$4 sm:$0xff]   ;;  %v5954_v2 = vld [vmem:[%s8667_s2 + $0x1c4] ss:$16 sps:$4 sm:$0xff]   ;;  %v5956_v3 = vld [vmem:[%s8667_s2 + $0x1cc] ss:$16 sps:$4 sm:$0xff]   ;;  %v7011_v13 = vrot.slane %v956_v8, %v6940_v50 }
  0x1c   : > { %v971_v59 = vcombine.high %v963_v55, %v963_v55  ;;  %v5958_v4 = vld [vmem:[%s8667_s2 + $0x1c0] ss:$16 sps:$4 sm:$0xff]   ;;  %v5959_v5 = vld [vmem:[%s8667_s2 + $0x1c8] ss:$16 sps:$4 sm:$0xff]   ;;  %v5960_v6 = vld [vmem:[%s8667_s2 + $0x1e4] ss:$16 sps:$4 sm:$0xff]  }
  0x1d   : > { %3611 = vmatpush1.bf16.msra.mxu0 %v5904_v23  ;;  %3939 = vmatpush1.bf16.msra.mxu1 %v5905_v24  ;;  %v5962_v7 = vld [vmem:[%s8667_s2 + $0x1ec] ss:$16 sps:$4 sm:$0xff]   ;;  %v5964_v9 = vld [vmem:[%s8667_s2 + $0x1e0] ss:$16 sps:$4 sm:$0xff]   ;;  %v5965_v10 = vld [vmem:[%s8667_s2 + $0x1e8] ss:$16 sps:$4 sm:$0xff]   ;;  %v972_v18 = vcombine.high %v7011_v13, %v7011_v13 }
  0x1e   : > { %3612 = vmatprep.subr.bf16.mxu0 %v5906_v25  ;;  %3940 = vmatprep.subr.bf16.mxu1 %v5908_v26  ;;  %v5969_v11 = vld [vmem:[%s8667_s2 + $0x204] ss:$16 sps:$4 sm:$0xff]   ;;  %v5972_v12 = vld [vmem:[%s8667_s2 + $0x20c] ss:$16 sps:$4 sm:$0xff]   ;;  %v5967_v14 = vld [vmem:[%s8667_s2 + $0x200] ss:$16 sps:$4 sm:$0xff]  }
  0x1f   : > { %3632 = vmatprep.mubr.bf16.mxu0 %v971_v59  ;;  %3960 = vmatprep.mubr.bf16.mxu1 %v971_v59  ;;  %v5970_v15 = vld [vmem:[%s8667_s2 + $0x208] ss:$16 sps:$4 sm:$0xff]   ;;  %v5975_v16 = vld [vmem:[%s8667_s2 + $0x224] ss:$16 sps:$4 sm:$0xff]   ;;  %v5978_v17 = vld [vmem:[%s8667_s2 + $0x22c] ss:$16 sps:$4 sm:$0xff]  }
  0x20   : > { %v5973_v19 = vld [vmem:[%s8667_s2 + $0x220] ss:$16 sps:$4 sm:$0xff]   ;;  %v5976_v20 = vld [vmem:[%s8667_s2 + $0x228] ss:$16 sps:$4 sm:$0xff]   ;;  %v5981_v21 = vld [vmem:[%s8667_s2 + $0x244] ss:$16 sps:$4 sm:$0xff]  }
  0x21   : > { %3613 = vmatpush1.bf16.msra.mxu0 %v5910_v27  ;;  %3941 = vmatpush1.bf16.msra.mxu1 %v5911_v28  ;;  %v5984_v22 = vld [vmem:[%s8667_s2 + $0x24c] ss:$16 sps:$4 sm:$0xff]   ;;  %v5979_v23 = vld [vmem:[%s8667_s2 + $0x240] ss:$16 sps:$4 sm:$0xff]   ;;  %v5982_v24 = vld [vmem:[%s8667_s2 + $0x248] ss:$16 sps:$4 sm:$0xff]  }
  0x22   : > { %3614 = vmatprep.subr.bf16.mxu0 %v5912_v29  ;;  %3942 = vmatprep.subr.bf16.mxu1 %v5914_v30  ;;  %v5987_v25 = vld [vmem:[%s8667_s2 + $0x264] ss:$16 sps:$4 sm:$0xff]   ;;  %v5990_v26 = vld [vmem:[%s8667_s2 + $0x26c] ss:$16 sps:$4 sm:$0xff]   ;;  %v5985_v27 = vld [vmem:[%s8667_s2 + $0x260] ss:$16 sps:$4 sm:$0xff]  }
  0x23   : > { %v5988_v28 = vld [vmem:[%s8667_s2 + $0x268] ss:$16 sps:$4 sm:$0xff]   ;;  %v5993_v29 = vld [vmem:[%s8667_s2 + $0x284] ss:$16 sps:$4 sm:$0xff]   ;;  %v5996_v30 = vld [vmem:[%s8667_s2 + $0x28c] ss:$16 sps:$4 sm:$0xff]  }
  0x24   : > { %v6005_v37 = vld [vmem:[%s8667_s2 + $0x2c4] ss:$16 sps:$4 sm:$0xff]   ;;  %v6008_v38 = vld [vmem:[%s8667_s2 + $0x2cc] ss:$16 sps:$4 sm:$0xff]   ;;  %v6003_v39 = vld [vmem:[%s8667_s2 + $0x2c0] ss:$16 sps:$4 sm:$0xff]  }
  0x25   : > { %3615 = vmatpush1.bf16.msra.mxu0 %v5916_v31  ;;  %3943 = vmatpush1.bf16.msra.mxu1 %v5917_v32  ;;  %v5991_v31 = vld [vmem:[%s8667_s2 + $0x280] ss:$16 sps:$4 sm:$0xff]   ;;  %v5994_v32 = vld [vmem:[%s8667_s2 + $0x288] ss:$16 sps:$4 sm:$0xff]   ;;  %v6035_v59 = vld [vmem:[%s8667_s2 + $0x364] ss:$16 sps:$4 sm:$0xff]  }
  0x26   : > { %3616 = vmatprep.subr.bf16.mxu0 %v5918_v33  ;;  %3944 = vmatprep.subr.bf16.mxu1 %v5920_v34  ;;  %v5999_v33 = vld [vmem:[%s8667_s2 + $0x2a4] ss:$16 sps:$4 sm:$0xff]   ;;  %v6002_v34 = vld [vmem:[%s8667_s2 + $0x2ac] ss:$16 sps:$4 sm:$0xff]   ;;  %v6009_v44 = vld [vmem:[%s8667_s2 + $0x2e0] ss:$16 sps:$4 sm:$0xff]  }
  0x27   : > { %v6021_v53 = vld [vmem:[%s8667_s2 + $0x320] ss:$16 sps:$4 sm:$0xff]   ;;  %v6056_v8 = vld [vmem:[%s8667_s2 + $0x3cc] ss:$16 sps:$4 sm:$0xff]   ;;  %vm4630_vm1 = vcmask 2048  }
  0x29   : > { %3617 = vmatpush1.bf16.msra.mxu0 %v5922_v35  ;;  %3945 = vmatpush1.bf16.msra.mxu1 %v5923_v36  ;;  %v5997_v35 = vld [vmem:[%s8667_s2 + $0x2a0] ss:$16 sps:$4 sm:$0xff]   ;;  %v6000_v36 = vld [vmem:[%s8667_s2 + $0x2a8] ss:$16 sps:$4 sm:$0xff]  }
  0x2a   : > { %3618 = vmatprep.subr.bf16.mxu0 %v5924_v40  ;;  %3946 = vmatprep.subr.bf16.mxu1 %v5926_v41  ;;  %v6006_v40 = vld [vmem:[%s8667_s2 + $0x2c8] ss:$16 sps:$4 sm:$0xff]   ;;  %v6011_v41 = vld [vmem:[%s8667_s2 + $0x2e4] ss:$16 sps:$4 sm:$0xff]  }
  0x2d   : > { %3619 = vmatpush1.bf16.msra.mxu0 %v5928_v42  ;;  %3947 = vmatpush1.bf16.msra.mxu1 %v5929_v45  ;;  %v6014_v42 = vld [vmem:[%s8667_s2 + $0x2ec] ss:$16 sps:$4 sm:$0xff]   ;;  %v6012_v45 = vld [vmem:[%s8667_s2 + $0x2e8] ss:$16 sps:$4 sm:$0xff]  }
  0x2e   : > { %3620 = vmatprep.subr.bf16.mxu0 %v5930_v46  ;;  %3948 = vmatprep.subr.bf16.mxu1 %v5932_v47  ;;  %v6017_v46 = vld [vmem:[%s8667_s2 + $0x304] ss:$16 sps:$4 sm:$0xff]   ;;  %v6020_v47 = vld [vmem:[%s8667_s2 + $0x30c] ss:$16 sps:$4 sm:$0xff]  }
  0x31   : > { %3621 = vmatpush1.bf16.msra.mxu0 %v5934_v48  ;;  %3949 = vmatpush1.bf16.msra.mxu1 %v5935_v49  ;;  %v6015_v48 = vld [vmem:[%s8667_s2 + $0x300] ss:$16 sps:$4 sm:$0xff]   ;;  %v6018_v49 = vld [vmem:[%s8667_s2 + $0x308] ss:$16 sps:$4 sm:$0xff]  }
  0x32   : > { %3622 = vmatprep.subr.bf16.mxu0 %v5936_v51  ;;  %3950 = vmatprep.subr.bf16.mxu1 %v5938_v52  ;;  %v6023_v51 = vld [vmem:[%s8667_s2 + $0x324] ss:$16 sps:$4 sm:$0xff]   ;;  %v6026_v52 = vld [vmem:[%s8667_s2 + $0x32c] ss:$16 sps:$4 sm:$0xff]  }
  0x35   : > { %3623 = vmatpush1.bf16.msra.mxu0 %v5940_v54  ;;  %3951 = vmatpush1.bf16.msra.mxu1 %v5941_v56  ;;  %v6024_v54 = vld [vmem:[%s8667_s2 + $0x328] ss:$16 sps:$4 sm:$0xff]   ;;  %v6032_v56 = vld [vmem:[%s8667_s2 + $0x34c] ss:$16 sps:$4 sm:$0xff]  }
  0x36   : > { %3624 = vmatprep.subr.bf16.mxu0 %v5942_v57  ;;  %3952 = vmatprep.subr.bf16.mxu1 %v5944_v58  ;;  %v6027_v57 = vld [vmem:[%s8667_s2 + $0x340] ss:$16 sps:$4 sm:$0xff]   ;;  %v6030_v58 = vld [vmem:[%s8667_s2 + $0x348] ss:$16 sps:$4 sm:$0xff]  }
  0x39   : > { %3625 = vmatpush1.bf16.msra.mxu0 %v5946_v60  ;;  %3953 = vmatpush1.bf16.msra.mxu1 %v5947_v61  ;;  %v6038_v60 = vld [vmem:[%s8667_s2 + $0x36c] ss:$16 sps:$4 sm:$0xff]   ;;  %v6033_v61 = vld [vmem:[%s8667_s2 + $0x360] ss:$16 sps:$4 sm:$0xff]  }
  0x3a   : > { %3626 = vmatprep.subr.bf16.mxu0 %v5948_v62  ;;  %3954 = vmatprep.subr.bf16.mxu1 %v5950_v63  ;;  %v6036_v62 = vld [vmem:[%s8667_s2 + $0x368] ss:$16 sps:$4 sm:$0xff]   ;;  %v6041_v63 = vld [vmem:[%s8667_s2 + $0x384] ss:$16 sps:$4 sm:$0xff]  }
  0x3d   : > { %3627 = vmatpush1.bf16.msra.mxu0 %v5952_v0  ;;  %3955 = vmatpush1.bf16.msra.mxu1 %v5953_v1  ;;  %v6044_v0 = vld [vmem:[%s8667_s2 + $0x38c] ss:$16 sps:$4 sm:$0xff]   ;;  %v6039_v1 = vld [vmem:[%s8667_s2 + $0x380] ss:$16 sps:$4 sm:$0xff]  }
  0x3e   : > { %3628 = vmatprep.subr.bf16.mxu0 %v5954_v2  ;;  %3956 = vmatprep.subr.bf16.mxu1 %v5956_v3  ;;  %v6042_v2 = vld [vmem:[%s8667_s2 + $0x388] ss:$16 sps:$4 sm:$0xff]   ;;  %v6047_v3 = vld [vmem:[%s8667_s2 + $0x3a4] ss:$16 sps:$4 sm:$0xff]  }
  0x41   : > { %3629 = vmatpush1.bf16.msra.mxu0 %v5958_v4  ;;  %3957 = vmatpush1.bf16.msra.mxu1 %v5959_v5  ;;  %v6050_v4 = vld [vmem:[%s8667_s2 + $0x3ac] ss:$16 sps:$4 sm:$0xff]   ;;  %v6045_v5 = vld [vmem:[%s8667_s2 + $0x3a0] ss:$16 sps:$4 sm:$0xff]  }
  0x42   : > { %3630 = vmatprep.subr.bf16.mxu0 %v5960_v6  ;;  %3958 = vmatprep.subr.bf16.mxu1 %v5962_v7  ;;  %v6048_v6 = vld [vmem:[%s8667_s2 + $0x3a8] ss:$16 sps:$4 sm:$0xff]   ;;  %v6053_v7 = vld [vmem:[%s8667_s2 + $0x3c4] ss:$16 sps:$4 sm:$0xff]  }
  0x45   : > { %3631 = vmatpush1.bf16.msra.mxu0 %v5964_v9  ;;  %3959 = vmatpush1.bf16.msra.mxu1 %v5965_v10  ;;  %v6051_v9 = vld [vmem:[%s8667_s2 + $0x3c0] ss:$16 sps:$4 sm:$0xff]   ;;  %v6054_v10 = vld [vmem:[%s8667_s2 + $0x3c8] ss:$16 sps:$4 sm:$0xff]  }
  0x46   : > { %3641 = vmatprep.subr.bf16.mxu0 %v5969_v11  ;;  %3969 = vmatprep.subr.bf16.mxu1 %v5972_v12  ;;  %v6059_v11 = vld [vmem:[%s8667_s2 + $0x3e4] ss:$16 sps:$4 sm:$0xff]   ;;  %v6062_v12 = vld [vmem:[%s8667_s2 + $0x3ec] ss:$16 sps:$4 sm:$0xff]  }
  0x48   : > { %3633 = vmatmul.mubr.bf16.vlgmr.msra.gmra.mrb[0].mxu0 %v963_v55  ;;  %3961 = vmatmul.mubr.bf16.vlgmr.msra.gmra.mrb[0].mxu1 %v963_v55  ;;  %v6029_v55 = vld [vmem:[%s8667_s2 + $0x344] ss:$16 sps:$4 sm:$0xff]  }
  0x49   : > { %3642 = vmatpush1.bf16.msra.mxu0 %v5967_v14  ;;  %3970 = vmatpush1.bf16.msra.mxu1 %v5970_v15  ;;  %v6057_v14 = vld [vmem:[%s8667_s2 + $0x3e0] ss:$16 sps:$4 sm:$0xff]   ;;  %v6060_v15 = vld [vmem:[%s8667_s2 + $0x3e8] ss:$16 sps:$4 sm:$0xff]  }
  0x4a   : > { %3643 = vmatprep.subr.bf16.mxu0 %v5975_v16  ;;  %3971 = vmatprep.subr.bf16.mxu1 %v5978_v17  ;;  %v6065_v16 = vld [vmem:[%s8667_s2 + $0x404] ss:$16 sps:$4 sm:$0xff]   ;;  %v6068_v17 = vld [vmem:[%s8667_s2 + $0x40c] ss:$16 sps:$4 sm:$0xff]  }
  0x4b   : > { %3673 = vmatprep.mubr.bf16.mxu0 %v972_v18  ;;  %4001 = vmatprep.mubr.bf16.mxu1 %v972_v18  ;;  %v6063_v18 = vld [vmem:[%s8667_s2 + $0x400] ss:$16 sps:$4 sm:$0xff]  }
  0x4d   : > { %3644 = vmatpush1.bf16.msra.mxu0 %v5973_v19  ;;  %3972 = vmatpush1.bf16.msra.mxu1 %v5976_v20  ;;  %v6066_v19 = vld [vmem:[%s8667_s2 + $0x408] ss:$16 sps:$4 sm:$0xff]  }
  0x4e   : > { %3645 = vmatprep.subr.bf16.mxu0 %v5981_v21  ;;  %3973 = vmatprep.subr.bf16.mxu1 %v5984_v22  ;;  %v7214_v20 = vld [vmem:[%s6937_s22 + $0x8] sm:$0xff]  ;;  %v6071_v21 = vld [vmem:[%s8667_s2 + $0x424] ss:$16 sps:$4 sm:$0xff]  }
  0x4f   : > { %v6074_v22 = vld [vmem:[%s8667_s2 + $0x42c] ss:$16 sps:$4 sm:$0xff]  }
  0x51   : > { %3646 = vmatpush1.bf16.msra.mxu0 %v5979_v23  ;;  %3974 = vmatpush1.bf16.msra.mxu1 %v5982_v24  ;;  %v7224_v23 = vrot.slane %v7214_v20, %v6940_v50 }
  0x52   : > { %3647 = vmatprep.subr.bf16.mxu0 %v5987_v25  ;;  %3975 = vmatprep.subr.bf16.mxu1 %v5990_v26  ;;  %v6069_v25 = vld [vmem:[%s8667_s2 + $0x420] ss:$16 sps:$4 sm:$0xff]   ;;  %v6072_v26 = vld [vmem:[%s8667_s2 + $0x428] ss:$16 sps:$4 sm:$0xff]  }
  0x53   : > { %v988_v24 = vcombine.high %v7224_v23, %v7224_v23 }
  0x55   : > { %3648 = vmatpush1.bf16.msra.mxu0 %v5985_v27  ;;  %3976 = vmatpush1.bf16.msra.mxu1 %v5988_v28  ;;  %v6077_v27 = vld [vmem:[%s8667_s2 + $0x444] ss:$16 sps:$4 sm:$0xff]   ;;  %v6075_v28 = vld [vmem:[%s8667_s2 + $0x440] ss:$16 sps:$4 sm:$0xff]  }
  0x56   : > { %3649 = vmatprep.subr.bf16.mxu0 %v5993_v29  ;;  %3977 = vmatprep.subr.bf16.mxu1 %v5996_v30  ;;  %v6078_v29 = vld [vmem:[%s8667_s2 + $0x448] ss:$16 sps:$4 sm:$0xff]   ;;  %v6083_v30 = vld [vmem:[%s8667_s2 + $0x464] ss:$16 sps:$4 sm:$0xff]  }
  0x59   : > { %3650 = vmatpush1.bf16.msra.mxu0 %v5991_v31  ;;  %3978 = vmatpush1.bf16.msra.mxu1 %v5994_v32  ;;  %v6086_v31 = vld [vmem:[%s8667_s2 + $0x46c] ss:$16 sps:$4 sm:$0xff]   ;;  %v6081_v32 = vld [vmem:[%s8667_s2 + $0x460] ss:$16 sps:$4 sm:$0xff]  }
  0x5a   : > { %3651 = vmatprep.subr.bf16.mxu0 %v5999_v33  ;;  %3979 = vmatprep.subr.bf16.mxu1 %v6002_v34  ;;  %v6084_v33 = vld [vmem:[%s8667_s2 + $0x468] ss:$16 sps:$4 sm:$0xff]   ;;  %v6089_v34 = vld [vmem:[%s8667_s2 + $0x484] ss:$16 sps:$4 sm:$0xff]  }
  0x5d   : > { %3652 = vmatpush1.bf16.msra.mxu0 %v5997_v35  ;;  %3980 = vmatpush1.bf16.msra.mxu1 %v6000_v36  ;;  %v6092_v35 = vld [vmem:[%s8667_s2 + $0x48c] ss:$16 sps:$4 sm:$0xff]   ;;  %v6087_v36 = vld [vmem:[%s8667_s2 + $0x480] ss:$16 sps:$4 sm:$0xff]  }
  0x5e   : > { %3653 = vmatprep.subr.bf16.mxu0 %v6005_v37  ;;  %3981 = vmatprep.subr.bf16.mxu1 %v6008_v38  ;;  %v6090_v37 = vld [vmem:[%s8667_s2 + $0x488] ss:$16 sps:$4 sm:$0xff]   ;;  %v6095_v38 = vld [vmem:[%s8667_s2 + $0x4a4] ss:$16 sps:$4 sm:$0xff]  }
  0x61   : > { %3654 = vmatpush1.bf16.msra.mxu0 %v6003_v39  ;;  %3982 = vmatpush1.bf16.msra.mxu1 %v6006_v40  ;;  %v6098_v39 = vld [vmem:[%s8667_s2 + $0x4ac] ss:$16 sps:$4 sm:$0xff]   ;;  %v6093_v40 = vld [vmem:[%s8667_s2 + $0x4a0] ss:$16 sps:$4 sm:$0xff]  }
  0x62   : > { %3655 = vmatprep.subr.bf16.mxu0 %v6011_v41  ;;  %3983 = vmatprep.subr.bf16.mxu1 %v6014_v42  ;;  %v6096_v41 = vld [vmem:[%s8667_s2 + $0x4a8] ss:$16 sps:$4 sm:$0xff]   ;;  %v6101_v42 = vld [vmem:[%s8667_s2 + $0x4c4] ss:$16 sps:$4 sm:$0xff]  }
  0x65   : > { %3656 = vmatpush1.bf16.msra.mxu0 %v6009_v44  ;;  %3984 = vmatpush1.bf16.msra.mxu1 %v6012_v45  ;;  %v6104_v44 = vld [vmem:[%s8667_s2 + $0x4cc] ss:$16 sps:$4 sm:$0xff]   ;;  %v6099_v45 = vld [vmem:[%s8667_s2 + $0x4c0] ss:$16 sps:$4 sm:$0xff]  }
  0x66   : > { %3657 = vmatprep.subr.bf16.mxu0 %v6017_v46  ;;  %3985 = vmatprep.subr.bf16.mxu1 %v6020_v47  ;;  %v6102_v46 = vld [vmem:[%s8667_s2 + $0x4c8] ss:$16 sps:$4 sm:$0xff]   ;;  %v6107_v47 = vld [vmem:[%s8667_s2 + $0x4e4] ss:$16 sps:$4 sm:$0xff]  }
  0x69   : > { %3658 = vmatpush1.bf16.msra.mxu0 %v6015_v48  ;;  %3986 = vmatpush1.bf16.msra.mxu1 %v6018_v49  ;;  %v6110_v48 = vld [vmem:[%s8667_s2 + $0x4ec] ss:$16 sps:$4 sm:$0xff]   ;;  %v6105_v49 = vld [vmem:[%s8667_s2 + $0x4e0] ss:$16 sps:$4 sm:$0xff]  }
  0x6a   : > { %3659 = vmatprep.subr.bf16.mxu0 %v6023_v51  ;;  %3987 = vmatprep.subr.bf16.mxu1 %v6026_v52  ;;  %v6108_v51 = vld [vmem:[%s8667_s2 + $0x4e8] ss:$16 sps:$4 sm:$0xff]   ;;  %v6113_v52 = vld [vmem:[%s8667_s2 + $0x504] ss:$16 sps:$4 sm:$0xff]  }
  0x6d   : > { %3660 = vmatpush1.bf16.msra.mxu0 %v6021_v53  ;;  %3988 = vmatpush1.bf16.msra.mxu1 %v6024_v54  ;;  %v6116_v53 = vld [vmem:[%s8667_s2 + $0x50c] ss:$16 sps:$4 sm:$0xff]   ;;  %v6111_v54 = vld [vmem:[%s8667_s2 + $0x500] ss:$16 sps:$4 sm:$0xff]  }
  0x6e   : > { %3661 = vmatprep.subr.bf16.mxu0 %v6029_v55  ;;  %3989 = vmatprep.subr.bf16.mxu1 %v6032_v56  ;;  %v6114_v55 = vld [vmem:[%s8667_s2 + $0x508] ss:$16 sps:$4 sm:$0xff]   ;;  %v6119_v56 = vld [vmem:[%s8667_s2 + $0x524] ss:$16 sps:$4 sm:$0xff]  }
  0x71   : > { %3662 = vmatpush1.bf16.msra.mxu0 %v6027_v57  ;;  %3990 = vmatpush1.bf16.msra.mxu1 %v6030_v58  ;;  %v6122_v57 = vld [vmem:[%s8667_s2 + $0x52c] ss:$16 sps:$4 sm:$0xff]   ;;  %v6117_v58 = vld [vmem:[%s8667_s2 + $0x520] ss:$16 sps:$4 sm:$0xff]  }
  0x72   : > { %3663 = vmatprep.subr.bf16.mxu0 %v6035_v59  ;;  %3991 = vmatprep.subr.bf16.mxu1 %v6038_v60  ;;  %v6120_v59 = vld [vmem:[%s8667_s2 + $0x528] ss:$16 sps:$4 sm:$0xff]   ;;  %v6125_v60 = vld [vmem:[%s8667_s2 + $0x544] ss:$16 sps:$4 sm:$0xff]  }
  0x75   : > { %3664 = vmatpush1.bf16.msra.mxu0 %v6033_v61  ;;  %3992 = vmatpush1.bf16.msra.mxu1 %v6036_v62  ;;  %v6128_v61 = vld [vmem:[%s8667_s2 + $0x54c] ss:$16 sps:$4 sm:$0xff]   ;;  %v6123_v62 = vld [vmem:[%s8667_s2 + $0x540] ss:$16 sps:$4 sm:$0xff]  }
  0x76   : > { %3665 = vmatprep.subr.bf16.mxu0 %v6041_v63  ;;  %3993 = vmatprep.subr.bf16.mxu1 %v6044_v0  ;;  %v6126_v63 = vld [vmem:[%s8667_s2 + $0x548] ss:$16 sps:$4 sm:$0xff]   ;;  %v6131_v0 = vld [vmem:[%s8667_s2 + $0x564] ss:$16 sps:$4 sm:$0xff]  }
  0x79   : > { %3666 = vmatpush1.bf16.msra.mxu0 %v6039_v1  ;;  %3994 = vmatpush1.bf16.msra.mxu1 %v6042_v2  ;;  %v6134_v1 = vld [vmem:[%s8667_s2 + $0x56c] ss:$16 sps:$4 sm:$0xff]   ;;  %v6129_v2 = vld [vmem:[%s8667_s2 + $0x560] ss:$16 sps:$4 sm:$0xff]  }
  0x7a   : > { %3667 = vmatprep.subr.bf16.mxu0 %v6047_v3  ;;  %3995 = vmatprep.subr.bf16.mxu1 %v6050_v4  ;;  %v6132_v3 = vld [vmem:[%s8667_s2 + $0x568] ss:$16 sps:$4 sm:$0xff]   ;;  %v6137_v4 = vld [vmem:[%s8667_s2 + $0x584] ss:$16 sps:$4 sm:$0xff]  }
  0x7d   : > { %3668 = vmatpush1.bf16.msra.mxu0 %v6045_v5  ;;  %3996 = vmatpush1.bf16.msra.mxu1 %v6048_v6  ;;  %v6140_v5 = vld [vmem:[%s8667_s2 + $0x58c] ss:$16 sps:$4 sm:$0xff]   ;;  %v6135_v6 = vld [vmem:[%s8667_s2 + $0x580] ss:$16 sps:$4 sm:$0xff]  }
  0x7e   : > { %3669 = vmatprep.subr.bf16.mxu0 %v6053_v7  ;;  %3997 = vmatprep.subr.bf16.mxu1 %v6056_v8  ;;  %v6138_v7 = vld [vmem:[%s8667_s2 + $0x588] ss:$16 sps:$4 sm:$0xff]   ;;  %v6143_v8 = vld [vmem:[%s8667_s2 + $0x5a4] ss:$16 sps:$4 sm:$0xff]  }
  0x81   : > { %3670 = vmatpush1.bf16.msra.mxu0 %v6051_v9  ;;  %3998 = vmatpush1.bf16.msra.mxu1 %v6054_v10  ;;  %v6146_v9 = vld [vmem:[%s8667_s2 + $0x5ac] ss:$16 sps:$4 sm:$0xff]   ;;  %v6141_v10 = vld [vmem:[%s8667_s2 + $0x5a0] ss:$16 sps:$4 sm:$0xff]  }
  0x82   : > { %3671 = vmatprep.subr.bf16.mxu0 %v6059_v11  ;;  %3999 = vmatprep.subr.bf16.mxu1 %v6062_v12  ;;  %v6144_v11 = vld [vmem:[%s8667_s2 + $0x5a8] ss:$16 sps:$4 sm:$0xff]   ;;  %v6149_v12 = vld [vmem:[%s8667_s2 + $0x5c4] ss:$16 sps:$4 sm:$0xff]  }
  0x85   : > { %3672 = vmatpush1.bf16.msra.mxu0 %v6057_v14  ;;  %4000 = vmatpush1.bf16.msra.mxu1 %v6060_v15  ;;  %v6152_v14 = vld [vmem:[%s8667_s2 + $0x5cc] ss:$16 sps:$4 sm:$0xff]   ;;  %v6147_v15 = vld [vmem:[%s8667_s2 + $0x5c0] ss:$16 sps:$4 sm:$0xff]  }
  0x86   : > { %3682 = vmatprep.subr.bf16.mxu0 %v6065_v16  ;;  %4010 = vmatprep.subr.bf16.mxu1 %v6068_v17  ;;  %v6150_v16 = vld [vmem:[%s8667_s2 + $0x5c8] ss:$16 sps:$4 sm:$0xff]   ;;  %v6155_v17 = vld [vmem:[%s8667_s2 + $0x5e4] ss:$16 sps:$4 sm:$0xff]  }
  0x88   : > { %3674 = vmatmul.mubr.bf16.vlgmr.msra.gmra.mrb[0].mxu0 %v7011_v13  ;;  %4002 = vmatmul.mubr.bf16.vlgmr.msra.gmra.mrb[0].mxu1 %v7011_v13  ;;  %v6080_v13 = vld [vmem:[%s8667_s2 + $0x44c] ss:$16 sps:$4 sm:$0xff]  }
  0x89   : > { %3683 = vmatpush1.bf16.msra.mxu0 %v6063_v18  ;;  %4011 = vmatpush1.bf16.msra.mxu1 %v6066_v19  ;;  %v6158_v18 = vld [vmem:[%s8667_s2 + $0x5ec] ss:$16 sps:$4 sm:$0xff]   ;;  %v973_v19 = vcombine.high %v7214_v20, %v7214_v20 }
  0x8a   : > { %3684 = vmatprep.subr.bf16.mxu0 %v6071_v21  ;;  %4012 = vmatprep.subr.bf16.mxu1 %v6074_v22  ;;  %v6153_v21 = vld [vmem:[%s8667_s2 + $0x5e0] ss:$16 sps:$4 sm:$0xff]   ;;  %v6156_v22 = vld [vmem:[%s8667_s2 + $0x5e8] ss:$16 sps:$4 sm:$0xff]   ;;  %v6164_v20 = vld [vmem:[%s8667_s2 + $0x60c] ss:$16 sps:$4 sm:$0xff]  }
  0x8b   : > { %3714 = vmatprep.mubr.bf16.mxu0 %v988_v24  ;;  %4042 = vmatprep.mubr.bf16.mxu1 %v988_v24  ;;  %v6161_v24 = vld [vmem:[%s8667_s2 + $0x604] ss:$16 sps:$4 sm:$0xff]  }
  0x8d   : > { %3685 = vmatpush1.bf16.msra.mxu0 %v6069_v25  ;;  %4013 = vmatpush1.bf16.msra.mxu1 %v6072_v26  ;;  %v7413_v25 = vrot.slane %v973_v19, %v6940_v50  ;;  %v6159_v26 = vld [vmem:[%s8667_s2 + $0x600] ss:$16 sps:$4 sm:$0xff]   ;;  %v6248_v19 = vld [vmem:[%s8667_s2 + $0x7cc] ss:$16 sps:$4 sm:$0xff]  }
  0x8e   : > { %3686 = vmatprep.subr.bf16.mxu0 %v6077_v27  ;;  %4014 = vmatprep.subr.bf16.mxu1 %v6080_v13  ;;  %v6162_v27 = vld [vmem:[%s8667_s2 + $0x608] ss:$16 sps:$4 sm:$0xff]   ;;  %v6167_v13 = vld [vmem:[%s8667_s2 + $0x624] ss:$16 sps:$4 sm:$0xff]  }
  0x91   : > { %3687 = vmatpush1.bf16.msra.mxu0 %v6075_v28  ;;  %4015 = vmatpush1.bf16.msra.mxu1 %v6078_v29  ;;  %v6170_v28 = vld [vmem:[%s8667_s2 + $0x62c] ss:$16 sps:$4 sm:$0xff]   ;;  %v989_v29 = vcombine.high %v7413_v25, %v7413_v25 }
  0x92   : > { %3688 = vmatprep.subr.bf16.mxu0 %v6083_v30  ;;  %4016 = vmatprep.subr.bf16.mxu1 %v6086_v31  ;;  %v6165_v30 = vld [vmem:[%s8667_s2 + $0x620] ss:$16 sps:$4 sm:$0xff]   ;;  %v6168_v31 = vld [vmem:[%s8667_s2 + $0x628] ss:$16 sps:$4 sm:$0xff]  }
  0x95   : > { %3689 = vmatpush1.bf16.msra.mxu0 %v6081_v32  ;;  %4017 = vmatpush1.bf16.msra.mxu1 %v6084_v33  ;;  %v6173_v32 = vld [vmem:[%s8667_s2 + $0x644] ss:$16 sps:$4 sm:$0xff]   ;;  %v6171_v33 = vld [vmem:[%s8667_s2 + $0x640] ss:$16 sps:$4 sm:$0xff]  }
  0x96   : > { %3690 = vmatprep.subr.bf16.mxu0 %v6089_v34  ;;  %4018 = vmatprep.subr.bf16.mxu1 %v6092_v35  ;;  %v6174_v34 = vld [vmem:[%s8667_s2 + $0x648] ss:$16 sps:$4 sm:$0xff]   ;;  %v6179_v35 = vld [vmem:[%s8667_s2 + $0x664] ss:$16 sps:$4 sm:$0xff]  }
  0x99   : > { %3691 = vmatpush1.bf16.msra.mxu0 %v6087_v36  ;;  %4019 = vmatpush1.bf16.msra.mxu1 %v6090_v37  ;;  %v6182_v36 = vld [vmem:[%s8667_s2 + $0x66c] ss:$16 sps:$4 sm:$0xff]   ;;  %v6177_v37 = vld [vmem:[%s8667_s2 + $0x660] ss:$16 sps:$4 sm:$0xff]  }
  0x9a   : > { %3692 = vmatprep.subr.bf16.mxu0 %v6095_v38  ;;  %4020 = vmatprep.subr.bf16.mxu1 %v6098_v39  ;;  %v6180_v38 = vld [vmem:[%s8667_s2 + $0x668] ss:$16 sps:$4 sm:$0xff]   ;;  %v6185_v39 = vld [vmem:[%s8667_s2 + $0x684] ss:$16 sps:$4 sm:$0xff]  }
  0x9d   : > { %3693 = vmatpush1.bf16.msra.mxu0 %v6093_v40  ;;  %4021 = vmatpush1.bf16.msra.mxu1 %v6096_v41  ;;  %v6188_v40 = vld [vmem:[%s8667_s2 + $0x68c] ss:$16 sps:$4 sm:$0xff]   ;;  %v6183_v41 = vld [vmem:[%s8667_s2 + $0x680] ss:$16 sps:$4 sm:$0xff]  }
  0x9e   : > { %3694 = vmatprep.subr.bf16.mxu0 %v6101_v42  ;;  %4022 = vmatprep.subr.bf16.mxu1 %v6104_v44  ;;  %v6186_v42 = vld [vmem:[%s8667_s2 + $0x688] ss:$16 sps:$4 sm:$0xff]   ;;  %v6191_v44 = vld [vmem:[%s8667_s2 + $0x6a4] ss:$16 sps:$4 sm:$0xff]  }
  0xa1   : > { %3695 = vmatpush1.bf16.msra.mxu0 %v6099_v45  ;;  %4023 = vmatpush1.bf16.msra.mxu1 %v6102_v46  ;;  %v6194_v45 = vld [vmem:[%s8667_s2 + $0x6ac] ss:$16 sps:$4 sm:$0xff]   ;;  %v6189_v46 = vld [vmem:[%s8667_s2 + $0x6a0] ss:$16 sps:$4 sm:$0xff]  }
  0xa2   : > { %3696 = vmatprep.subr.bf16.mxu0 %v6107_v47  ;;  %4024 = vmatprep.subr.bf16.mxu1 %v6110_v48  ;;  %v6192_v47 = vld [vmem:[%s8667_s2 + $0x6a8] ss:$16 sps:$4 sm:$0xff]   ;;  %v6197_v48 = vld [vmem:[%s8667_s2 + $0x6c4] ss:$16 sps:$4 sm:$0xff]  }
  0xa5   : > { %3697 = vmatpush1.bf16.msra.mxu0 %v6105_v49  ;;  %4025 = vmatpush1.bf16.msra.mxu1 %v6108_v51  ;;  %v6200_v49 = vld [vmem:[%s8667_s2 + $0x6cc] ss:$16 sps:$4 sm:$0xff]   ;;  %v6195_v51 = vld [vmem:[%s8667_s2 + $0x6c0] ss:$16 sps:$4 sm:$0xff]  }
  0xa6   : > { %3698 = vmatprep.subr.bf16.mxu0 %v6113_v52  ;;  %4026 = vmatprep.subr.bf16.mxu1 %v6116_v53  ;;  %v6198_v52 = vld [vmem:[%s8667_s2 + $0x6c8] ss:$16 sps:$4 sm:$0xff]   ;;  %v6203_v53 = vld [vmem:[%s8667_s2 + $0x6e4] ss:$16 sps:$4 sm:$0xff]  }
  0xa9   : > { %3699 = vmatpush1.bf16.msra.mxu0 %v6111_v54  ;;  %4027 = vmatpush1.bf16.msra.mxu1 %v6114_v55  ;;  %v6206_v54 = vld [vmem:[%s8667_s2 + $0x6ec] ss:$16 sps:$4 sm:$0xff]   ;;  %v6201_v55 = vld [vmem:[%s8667_s2 + $0x6e0] ss:$16 sps:$4 sm:$0xff]  }
  0xaa   : > { %3700 = vmatprep.subr.bf16.mxu0 %v6119_v56  ;;  %4028 = vmatprep.subr.bf16.mxu1 %v6122_v57  ;;  %v6204_v56 = vld [vmem:[%s8667_s2 + $0x6e8] ss:$16 sps:$4 sm:$0xff]   ;;  %v6209_v57 = vld [vmem:[%s8667_s2 + $0x704] ss:$16 sps:$4 sm:$0xff]  }
  0xad   : > { %3701 = vmatpush1.bf16.msra.mxu0 %v6117_v58  ;;  %4029 = vmatpush1.bf16.msra.mxu1 %v6120_v59  ;;  %v6212_v58 = vld [vmem:[%s8667_s2 + $0x70c] ss:$16 sps:$4 sm:$0xff]   ;;  %v6207_v59 = vld [vmem:[%s8667_s2 + $0x700] ss:$16 sps:$4 sm:$0xff]  }
  0xae   : > { %3702 = vmatprep.subr.bf16.mxu0 %v6125_v60  ;;  %4030 = vmatprep.subr.bf16.mxu1 %v6128_v61  ;;  %v6210_v60 = vld [vmem:[%s8667_s2 + $0x708] ss:$16 sps:$4 sm:$0xff]   ;;  %v6215_v61 = vld [vmem:[%s8667_s2 + $0x724] ss:$16 sps:$4 sm:$0xff]  }
  0xb1   : > { %3703 = vmatpush1.bf16.msra.mxu0 %v6123_v62  ;;  %4031 = vmatpush1.bf16.msra.mxu1 %v6126_v63  ;;  %v6218_v62 = vld [vmem:[%s8667_s2 + $0x72c] ss:$16 sps:$4 sm:$0xff]   ;;  %v6213_v63 = vld [vmem:[%s8667_s2 + $0x720] ss:$16 sps:$4 sm:$0xff]  }
  0xb2   : > { %3704 = vmatprep.subr.bf16.mxu0 %v6131_v0  ;;  %4032 = vmatprep.subr.bf16.mxu1 %v6134_v1  ;;  %v6216_v0 = vld [vmem:[%s8667_s2 + $0x728] ss:$16 sps:$4 sm:$0xff]   ;;  %v6221_v1 = vld [vmem:[%s8667_s2 + $0x744] ss:$16 sps:$4 sm:$0xff]  }
  0xb5   : > { %3705 = vmatpush1.bf16.msra.mxu0 %v6129_v2  ;;  %4033 = vmatpush1.bf16.msra.mxu1 %v6132_v3  ;;  %v6224_v2 = vld [vmem:[%s8667_s2 + $0x74c] ss:$16 sps:$4 sm:$0xff]   ;;  %v6219_v3 = vld [vmem:[%s8667_s2 + $0x740] ss:$16 sps:$4 sm:$0xff]  }
  0xb6   : > { %3706 = vmatprep.subr.bf16.mxu0 %v6137_v4  ;;  %4034 = vmatprep.subr.bf16.mxu1 %v6140_v5  ;;  %v6222_v4 = vld [vmem:[%s8667_s2 + $0x748] ss:$16 sps:$4 sm:$0xff]   ;;  %v6227_v5 = vld [vmem:[%s8667_s2 + $0x764] ss:$16 sps:$4 sm:$0xff]  }
  0xb9   : > { %3707 = vmatpush1.bf16.msra.mxu0 %v6135_v6  ;;  %4035 = vmatpush1.bf16.msra.mxu1 %v6138_v7  ;;  %v6230_v6 = vld [vmem:[%s8667_s2 + $0x76c] ss:$16 sps:$4 sm:$0xff]   ;;  %v6225_v7 = vld [vmem:[%s8667_s2 + $0x760] ss:$16 sps:$4 sm:$0xff]  }
  0xba   : > { %3708 = vmatprep.subr.bf16.mxu0 %v6143_v8  ;;  %4036 = vmatprep.subr.bf16.mxu1 %v6146_v9  ;;  %v6228_v8 = vld [vmem:[%s8667_s2 + $0x768] ss:$16 sps:$4 sm:$0xff]   ;;  %v6233_v9 = vld [vmem:[%s8667_s2 + $0x784] ss:$16 sps:$4 sm:$0xff]  }
  0xbd   : > { %3709 = vmatpush1.bf16.msra.mxu0 %v6141_v10  ;;  %4037 = vmatpush1.bf16.msra.mxu1 %v6144_v11  ;;  %v6236_v10 = vld [vmem:[%s8667_s2 + $0x78c] ss:$16 sps:$4 sm:$0xff]   ;;  %v6231_v11 = vld [vmem:[%s8667_s2 + $0x780] ss:$16 sps:$4 sm:$0xff]  }
  0xbe   : > { %3710 = vmatprep.subr.bf16.mxu0 %v6149_v12  ;;  %4038 = vmatprep.subr.bf16.mxu1 %v6152_v14  ;;  %v6234_v12 = vld [vmem:[%s8667_s2 + $0x788] ss:$16 sps:$4 sm:$0xff]   ;;  %v6239_v14 = vld [vmem:[%s8667_s2 + $0x7a4] ss:$16 sps:$4 sm:$0xff]  }
  0xc1   : > { %3711 = vmatpush1.bf16.msra.mxu0 %v6147_v15  ;;  %4039 = vmatpush1.bf16.msra.mxu1 %v6150_v16  ;;  %v6242_v15 = vld [vmem:[%s8667_s2 + $0x7ac] ss:$16 sps:$4 sm:$0xff]   ;;  %v6237_v16 = vld [vmem:[%s8667_s2 + $0x7a0] ss:$16 sps:$4 sm:$0xff]  }
  0xc2   : > { %3712 = vmatprep.subr.bf16.mxu0 %v6155_v17  ;;  %4040 = vmatprep.subr.bf16.mxu1 %v6158_v18  ;;  %v6240_v17 = vld [vmem:[%s8667_s2 + $0x7a8] ss:$16 sps:$4 sm:$0xff]   ;;  %v6245_v18 = vld [vmem:[%s8667_s2 + $0x7c4] ss:$16 sps:$4 sm:$0xff]  }
  0xc5   : > { %3713 = vmatpush1.bf16.msra.mxu0 %v6153_v21  ;;  %4041 = vmatpush1.bf16.msra.mxu1 %v6156_v22  ;;  %v6243_v21 = vld [vmem:[%s8667_s2 + $0x7c0] ss:$16 sps:$4 sm:$0xff]   ;;  %v6246_v22 = vld [vmem:[%s8667_s2 + $0x7c8] ss:$16 sps:$4 sm:$0xff]  }
  0xc6   : > { %3723 = vmatprep.subr.bf16.mxu0 %v6161_v24  ;;  %4051 = vmatprep.subr.bf16.mxu1 %v6164_v20  ;;  %v6251_v24 = vld [vmem:[%s8667_s2 + $0x7e4] ss:$16 sps:$4 sm:$0xff]   ;;  %v6254_v20 = vld [vmem:[%s8667_s2 + $0x7ec] ss:$16 sps:$4 sm:$0xff]  }
  0xc8   : > { %3715 = vmatmul.mubr.bf16.vlgmr.msra.gmra.mrb[0].mxu0 %v7224_v23  ;;  %4043 = vmatmul.mubr.bf16.vlgmr.msra.gmra.mrb[0].mxu1 %v7224_v23  ;;  %v6176_v23 = vld [vmem:[%s8667_s2 + $0x64c] ss:$16 sps:$4 sm:$0xff]  }
  0xc9   : > { %3724 = vmatpush1.bf16.msra.mxu0 %v6159_v26  ;;  %4052 = vmatpush1.bf16.msra.mxu1 %v6162_v27  ;;  %v6249_v26 = vld [vmem:[%s8667_s2 + $0x7e0] ss:$16 sps:$4 sm:$0xff]  }
  0xca   : > { %3725 = vmatprep.subr.bf16.mxu0 %v6167_v13  ;;  %4053 = vmatprep.subr.bf16.mxu1 %v6170_v28  ;;  %v7603_v27 = vld [vmem:[%s6937_s22 + $0x10] sm:$0xff]  ;;  %v6252_v13 = vld [vmem:[%s8667_s2 + $0x7e8] ss:$16 sps:$4 sm:$0xff]  }
  0xcb   : > { %3755 = vmatprep.mubr.bf16.mxu0 %v989_v29  ;;  %4083 = vmatprep.mubr.bf16.mxu1 %v989_v29  ;;  %v6258_v28 = vld [vmem:[%s8667_s2 + $0x804] ss:$16 sps:$4 sm:$0xff]   ;;  %v6261_v29 = vld [vmem:[%s8667_s2 + $0x80c] ss:$16 sps:$4 sm:$0xff]  }
  0xcd   : > { %3726 = vmatpush1.bf16.msra.mxu0 %v6165_v30  ;;  %4054 = vmatpush1.bf16.msra.mxu1 %v6168_v31  ;;  %v7616_v30 = vrot.slane %v7603_v27, %v6940_v50  ;;  %v6256_v31 = vld [vmem:[%s8667_s2 + $0x800] ss:$16 sps:$4 sm:$0xff]  }
  0xce   : > { %3727 = vmatprep.subr.bf16.mxu0 %v6173_v32  ;;  %4055 = vmatprep.subr.bf16.mxu1 %v6176_v23  ;;  %v6259_v32 = vld [vmem:[%s8667_s2 + $0x808] ss:$16 sps:$4 sm:$0xff]   ;;  %v6264_v23 = vld [vmem:[%s8667_s2 + $0x824] ss:$16 sps:$4 sm:$0xff]  }
  0xd1   : > { %3728 = vmatpush1.bf16.msra.mxu0 %v6171_v33  ;;  %4056 = vmatpush1.bf16.msra.mxu1 %v6174_v34  ;;  %v6267_v33 = vld [vmem:[%s8667_s2 + $0x82c] ss:$16 sps:$4 sm:$0xff]   ;;  %v1005_v34 = vcombine.high %v7616_v30, %v7616_v30 }
  0xd2   : > { %3729 = vmatprep.subr.bf16.mxu0 %v6179_v35  ;;  %4057 = vmatprep.subr.bf16.mxu1 %v6182_v36  ;;  %v6262_v35 = vld [vmem:[%s8667_s2 + $0x820] ss:$16 sps:$4 sm:$0xff]   ;;  %v6265_v36 = vld [vmem:[%s8667_s2 + $0x828] ss:$16 sps:$4 sm:$0xff]  }
  0xd5   : > { %3730 = vmatpush1.bf16.msra.mxu0 %v6177_v37  ;;  %4058 = vmatpush1.bf16.msra.mxu1 %v6180_v38  ;;  %v6270_v37 = vld [vmem:[%s8667_s2 + $0x844] ss:$16 sps:$4 sm:$0xff]   ;;  %v6268_v38 = vld [vmem:[%s8667_s2 + $0x840] ss:$16 sps:$4 sm:$0xff]  }
  0xd6   : > { %3731 = vmatprep.subr.bf16.mxu0 %v6185_v39  ;;  %4059 = vmatprep.subr.bf16.mxu1 %v6188_v40  ;;  %v6271_v39 = vld [vmem:[%s8667_s2 + $0x848] ss:$16 sps:$4 sm:$0xff]   ;;  %v6276_v40 = vld [vmem:[%s8667_s2 + $0x864] ss:$16 sps:$4 sm:$0xff]  }
  0xd9   : > { %3732 = vmatpush1.bf16.msra.mxu0 %v6183_v41  ;;  %4060 = vmatpush1.bf16.msra.mxu1 %v6186_v42  ;;  %v6279_v41 = vld [vmem:[%s8667_s2 + $0x86c] ss:$16 sps:$4 sm:$0xff]   ;;  %v6274_v42 = vld [vmem:[%s8667_s2 + $0x860] ss:$16 sps:$4 sm:$0xff]  }
  0xda   : > { %3733 = vmatprep.subr.bf16.mxu0 %v6191_v44  ;;  %4061 = vmatprep.subr.bf16.mxu1 %v6194_v45  ;;  %v6277_v44 = vld [vmem:[%s8667_s2 + $0x868] ss:$16 sps:$4 sm:$0xff]   ;;  %v6282_v45 = vld [vmem:[%s8667_s2 + $0x884] ss:$16 sps:$4 sm:$0xff]  }
  0xdd   : > { %3734 = vmatpush1.bf16.msra.mxu0 %v6189_v46  ;;  %4062 = vmatpush1.bf16.msra.mxu1 %v6192_v47  ;;  %v6285_v46 = vld [vmem:[%s8667_s2 + $0x88c] ss:$16 sps:$4 sm:$0xff]   ;;  %v6280_v47 = vld [vmem:[%s8667_s2 + $0x880] ss:$16 sps:$4 sm:$0xff]  }
  0xde   : > { %3735 = vmatprep.subr.bf16.mxu0 %v6197_v48  ;;  %4063 = vmatprep.subr.bf16.mxu1 %v6200_v49  ;;  %v6283_v48 = vld [vmem:[%s8667_s2 + $0x888] ss:$16 sps:$4 sm:$0xff]   ;;  %v6288_v49 = vld [vmem:[%s8667_s2 + $0x8a4] ss:$16 sps:$4 sm:$0xff]  }
  0xe1   : > { %3736 = vmatpush1.bf16.msra.mxu0 %v6195_v51  ;;  %4064 = vmatpush1.bf16.msra.mxu1 %v6198_v52  ;;  %v6291_v51 = vld [vmem:[%s8667_s2 + $0x8ac] ss:$16 sps:$4 sm:$0xff]   ;;  %v6286_v52 = vld [vmem:[%s8667_s2 + $0x8a0] ss:$16 sps:$4 sm:$0xff]  }
  0xe2   : > { %3737 = vmatprep.subr.bf16.mxu0 %v6203_v53  ;;  %4065 = vmatprep.subr.bf16.mxu1 %v6206_v54  ;;  %v6289_v53 = vld [vmem:[%s8667_s2 + $0x8a8] ss:$16 sps:$4 sm:$0xff]   ;;  %v6294_v54 = vld [vmem:[%s8667_s2 + $0x8c4] ss:$16 sps:$4 sm:$0xff]  }
  0xe5   : > { %3738 = vmatpush1.bf16.msra.mxu0 %v6201_v55  ;;  %4066 = vmatpush1.bf16.msra.mxu1 %v6204_v56  ;;  %v6297_v55 = vld [vmem:[%s8667_s2 + $0x8cc] ss:$16 sps:$4 sm:$0xff]   ;;  %v6292_v56 = vld [vmem:[%s8667_s2 + $0x8c0] ss:$16 sps:$4 sm:$0xff]  }
  0xe6   : > { %3739 = vmatprep.subr.bf16.mxu0 %v6209_v57  ;;  %4067 = vmatprep.subr.bf16.mxu1 %v6212_v58  ;;  %v6295_v57 = vld [vmem:[%s8667_s2 + $0x8c8] ss:$16 sps:$4 sm:$0xff]   ;;  %v6300_v58 = vld [vmem:[%s8667_s2 + $0x8e4] ss:$16 sps:$4 sm:$0xff]  }
  0xe9   : > { %3740 = vmatpush1.bf16.msra.mxu0 %v6207_v59  ;;  %4068 = vmatpush1.bf16.msra.mxu1 %v6210_v60  ;;  %v6303_v59 = vld [vmem:[%s8667_s2 + $0x8ec] ss:$16 sps:$4 sm:$0xff]   ;;  %v6298_v60 = vld [vmem:[%s8667_s2 + $0x8e0] ss:$16 sps:$4 sm:$0xff]  }
  0xea   : > { %3741 = vmatprep.subr.bf16.mxu0 %v6215_v61  ;;  %4069 = vmatprep.subr.bf16.mxu1 %v6218_v62  ;;  %v6301_v61 = vld [vmem:[%s8667_s2 + $0x8e8] ss:$16 sps:$4 sm:$0xff]   ;;  %v6306_v62 = vld [vmem:[%s8667_s2 + $0x904] ss:$16 sps:$4 sm:$0xff]  }
  0xed   : > { %3742 = vmatpush1.bf16.msra.mxu0 %v6213_v63  ;;  %4070 = vmatpush1.bf16.msra.mxu1 %v6216_v0  ;;  %v6309_v63 = vld [vmem:[%s8667_s2 + $0x90c] ss:$16 sps:$4 sm:$0xff]   ;;  %v6304_v0 = vld [vmem:[%s8667_s2 + $0x900] ss:$16 sps:$4 sm:$0xff]  }
  0xee   : > { %3743 = vmatprep.subr.bf16.mxu0 %v6221_v1  ;;  %4071 = vmatprep.subr.bf16.mxu1 %v6224_v2  ;;  %v6307_v1 = vld [vmem:[%s8667_s2 + $0x908] ss:$16 sps:$4 sm:$0xff]   ;;  %v6312_v2 = vld [vmem:[%s8667_s2 + $0x924] ss:$16 sps:$4 sm:$0xff]  }
  0xf1   : > { %3744 = vmatpush1.bf16.msra.mxu0 %v6219_v3  ;;  %4072 = vmatpush1.bf16.msra.mxu1 %v6222_v4  ;;  %v6315_v3 = vld [vmem:[%s8667_s2 + $0x92c] ss:$16 sps:$4 sm:$0xff]   ;;  %v6310_v4 = vld [vmem:[%s8667_s2 + $0x920] ss:$16 sps:$4 sm:$0xff]  }
  0xf2   : > { %3745 = vmatprep.subr.bf16.mxu0 %v6227_v5  ;;  %4073 = vmatprep.subr.bf16.mxu1 %v6230_v6  ;;  %v6313_v5 = vld [vmem:[%s8667_s2 + $0x928] ss:$16 sps:$4 sm:$0xff]   ;;  %v6318_v6 = vld [vmem:[%s8667_s2 + $0x944] ss:$16 sps:$4 sm:$0xff]  }
  0xf5   : > { %3746 = vmatpush1.bf16.msra.mxu0 %v6225_v7  ;;  %4074 = vmatpush1.bf16.msra.mxu1 %v6228_v8  ;;  %v6321_v7 = vld [vmem:[%s8667_s2 + $0x94c] ss:$16 sps:$4 sm:$0xff]   ;;  %v6316_v8 = vld [vmem:[%s8667_s2 + $0x940] ss:$16 sps:$4 sm:$0xff]  }
  0xf6   : > { %3747 = vmatprep.subr.bf16.mxu0 %v6233_v9  ;;  %4075 = vmatprep.subr.bf16.mxu1 %v6236_v10  ;;  %v6319_v9 = vld [vmem:[%s8667_s2 + $0x948] ss:$16 sps:$4 sm:$0xff]   ;;  %v6324_v10 = vld [vmem:[%s8667_s2 + $0x964] ss:$16 sps:$4 sm:$0xff]  }
  0xf9   : > { %3748 = vmatpush1.bf16.msra.mxu0 %v6231_v11  ;;  %4076 = vmatpush1.bf16.msra.mxu1 %v6234_v12  ;;  %v6327_v11 = vld [vmem:[%s8667_s2 + $0x96c] ss:$16 sps:$4 sm:$0xff]   ;;  %v6322_v12 = vld [vmem:[%s8667_s2 + $0x960] ss:$16 sps:$4 sm:$0xff]  }
  0xfa   : > { %3749 = vmatprep.subr.bf16.mxu0 %v6239_v14  ;;  %4077 = vmatprep.subr.bf16.mxu1 %v6242_v15  ;;  %v6325_v14 = vld [vmem:[%s8667_s2 + $0x968] ss:$16 sps:$4 sm:$0xff]   ;;  %v6330_v15 = vld [vmem:[%s8667_s2 + $0x984] ss:$16 sps:$4 sm:$0xff]  }
  0xfd   : > { %3750 = vmatpush1.bf16.msra.mxu0 %v6237_v16  ;;  %4078 = vmatpush1.bf16.msra.mxu1 %v6240_v17  ;;  %v6333_v16 = vld [vmem:[%s8667_s2 + $0x98c] ss:$16 sps:$4 sm:$0xff]   ;;  %v6328_v17 = vld [vmem:[%s8667_s2 + $0x980] ss:$16 sps:$4 sm:$0xff]  }
  0xfe   : > { %3751 = vmatprep.subr.bf16.mxu0 %v6245_v18  ;;  %4079 = vmatprep.subr.bf16.mxu1 %v6248_v19  ;;  %v6331_v18 = vld [vmem:[%s8667_s2 + $0x988] ss:$16 sps:$4 sm:$0xff]   ;;  %v6336_v19 = vld [vmem:[%s8667_s2 + $0x9a4] ss:$16 sps:$4 sm:$0xff]  }
 0x101   : > { %3752 = vmatpush1.bf16.msra.mxu0 %v6243_v21  ;;  %4080 = vmatpush1.bf16.msra.mxu1 %v6246_v22  ;;  %v6339_v21 = vld [vmem:[%s8667_s2 + $0x9ac] ss:$16 sps:$4 sm:$0xff]   ;;  %v6334_v22 = vld [vmem:[%s8667_s2 + $0x9a0] ss:$16 sps:$4 sm:$0xff]  }
 0x102   : > { %3753 = vmatprep.subr.bf16.mxu0 %v6251_v24  ;;  %4081 = vmatprep.subr.bf16.mxu1 %v6254_v20  ;;  %v6337_v24 = vld [vmem:[%s8667_s2 + $0x9a8] ss:$16 sps:$4 sm:$0xff]   ;;  %v6342_v20 = vld [vmem:[%s8667_s2 + $0x9c4] ss:$16 sps:$4 sm:$0xff]  }
 0x105   : > { %3754 = vmatpush1.bf16.msra.mxu0 %v6249_v26  ;;  %4082 = vmatpush1.bf16.msra.mxu1 %v6252_v13  ;;  %v6345_v26 = vld [vmem:[%s8667_s2 + $0x9cc] ss:$16 sps:$4 sm:$0xff]   ;;  %v6340_v13 = vld [vmem:[%s8667_s2 + $0x9c0] ss:$16 sps:$4 sm:$0xff]  }
 0x106   : > { %3764 = vmatprep.subr.bf16.mxu0 %v6258_v28  ;;  %4092 = vmatprep.subr.bf16.mxu1 %v6261_v29  ;;  %v6343_v28 = vld [vmem:[%s8667_s2 + $0x9c8] ss:$16 sps:$4 sm:$0xff]   ;;  %v6348_v29 = vld [vmem:[%s8667_s2 + $0x9e4] ss:$16 sps:$4 sm:$0xff]  }
 0x108   : > { %3756 = vmatmul.mubr.bf16.vlgmr.msra.gmra.mrb[0].mxu0 %v7413_v25  ;;  %4084 = vmatmul.mubr.bf16.vlgmr.msra.gmra.mrb[0].mxu1 %v7413_v25  ;;  %v6273_v25 = vld [vmem:[%s8667_s2 + $0x84c] ss:$16 sps:$4 sm:$0xff]  }
 0x109   : > { %3765 = vmatpush1.bf16.msra.mxu0 %v6256_v31  ;;  %4093 = vmatpush1.bf16.msra.mxu1 %v6259_v32  ;;  %v6351_v31 = vld [vmem:[%s8667_s2 + $0x9ec] ss:$16 sps:$4 sm:$0xff]   ;;  %v990_v32 = vcombine.high %v7603_v27, %v7603_v27 }
 0x10a   : > { %3766 = vmatprep.subr.bf16.mxu0 %v6264_v23  ;;  %4094 = vmatprep.subr.bf16.mxu1 %v6267_v33  ;;  %v6346_v23 = vld [vmem:[%s8667_s2 + $0x9e0] ss:$16 sps:$4 sm:$0xff]   ;;  %v6349_v33 = vld [vmem:[%s8667_s2 + $0x9e8] ss:$16 sps:$4 sm:$0xff]   ;;  %v6357_v27 = vld [vmem:[%s8667_s2 + $0xa0c] ss:$16 sps:$4 sm:$0xff]  }
 0x10b   : > { %3796 = vmatprep.mubr.bf16.mxu0 %v1005_v34  ;;  %4124 = vmatprep.mubr.bf16.mxu1 %v1005_v34  ;;  %v6354_v34 = vld [vmem:[%s8667_s2 + $0xa04] ss:$16 sps:$4 sm:$0xff]  }
 0x10d   : > { %3767 = vmatpush1.bf16.msra.mxu0 %v6262_v35  ;;  %4095 = vmatpush1.bf16.msra.mxu1 %v6265_v36  ;;  %v7817_v35 = vrot.slane %v990_v32, %v6940_v50  ;;  %v6352_v36 = vld [vmem:[%s8667_s2 + $0xa00] ss:$16 sps:$4 sm:$0xff]   ;;  %v6441_v32 = vld [vmem:[%s8667_s2 + $0xbcc] ss:$16 sps:$4 sm:$0xff]  }
 0x10e   : > { %3768 = vmatprep.subr.bf16.mxu0 %v6270_v37  ;;  %4096 = vmatprep.subr.bf16.mxu1 %v6273_v25  ;;  %v6355_v37 = vld [vmem:[%s8667_s2 + $0xa08] ss:$16 sps:$4 sm:$0xff]   ;;  %v6360_v25 = vld [vmem:[%s8667_s2 + $0xa24] ss:$16 sps:$4 sm:$0xff]  }
 0x111   : > { %3769 = vmatpush1.bf16.msra.mxu0 %v6268_v38  ;;  %4097 = vmatpush1.bf16.msra.mxu1 %v6271_v39  ;;  %v6363_v38 = vld [vmem:[%s8667_s2 + $0xa2c] ss:$16 sps:$4 sm:$0xff]   ;;  %v1006_v39 = vcombine.high %v7817_v35, %v7817_v35 }
 0x112   : > { %3770 = vmatprep.subr.bf16.mxu0 %v6276_v40  ;;  %4098 = vmatprep.subr.bf16.mxu1 %v6279_v41  ;;  %v6358_v40 = vld [vmem:[%s8667_s2 + $0xa20] ss:$16 sps:$4 sm:$0xff]   ;;  %v6361_v41 = vld [vmem:[%s8667_s2 + $0xa28] ss:$16 sps:$4 sm:$0xff]  }
 0x115   : > { %3771 = vmatpush1.bf16.msra.mxu0 %v6274_v42  ;;  %4099 = vmatpush1.bf16.msra.mxu1 %v6277_v44  ;;  %v6366_v42 = vld [vmem:[%s8667_s2 + $0xa44] ss:$16 sps:$4 sm:$0xff]   ;;  %v6364_v44 = vld [vmem:[%s8667_s2 + $0xa40] ss:$16 sps:$4 sm:$0xff]  }
 0x116   : > { %3772 = vmatprep.subr.bf16.mxu0 %v6282_v45  ;;  %4100 = vmatprep.subr.bf16.mxu1 %v6285_v46  ;;  %v6367_v45 = vld [vmem:[%s8667_s2 + $0xa48] ss:$16 sps:$4 sm:$0xff]   ;;  %v6372_v46 = vld [vmem:[%s8667_s2 + $0xa64] ss:$16 sps:$4 sm:$0xff]  }
 0x119   : > { %3773 = vmatpush1.bf16.msra.mxu0 %v6280_v47  ;;  %4101 = vmatpush1.bf16.msra.mxu1 %v6283_v48  ;;  %v6375_v47 = vld [vmem:[%s8667_s2 + $0xa6c] ss:$16 sps:$4 sm:$0xff]   ;;  %v6370_v48 = vld [vmem:[%s8667_s2 + $0xa60] ss:$16 sps:$4 sm:$0xff]  }
 0x11a   : > { %3774 = vmatprep.subr.bf16.mxu0 %v6288_v49  ;;  %4102 = vmatprep.subr.bf16.mxu1 %v6291_v51  ;;  %v6373_v49 = vld [vmem:[%s8667_s2 + $0xa68] ss:$16 sps:$4 sm:$0xff]   ;;  %v6378_v51 = vld [vmem:[%s8667_s2 + $0xa84] ss:$16 sps:$4 sm:$0xff]  }
 0x11d   : > { %3775 = vmatpush1.bf16.msra.mxu0 %v6286_v52  ;;  %4103 = vmatpush1.bf16.msra.mxu1 %v6289_v53  ;;  %v6381_v52 = vld [vmem:[%s8667_s2 + $0xa8c] ss:$16 sps:$4 sm:$0xff]   ;;  %v6376_v53 = vld [vmem:[%s8667_s2 + $0xa80] ss:$16 sps:$4 sm:$0xff]  }
 0x11e   : > { %3776 = vmatprep.subr.bf16.mxu0 %v6294_v54  ;;  %4104 = vmatprep.subr.bf16.mxu1 %v6297_v55  ;;  %v6379_v54 = vld [vmem:[%s8667_s2 + $0xa88] ss:$16 sps:$4 sm:$0xff]   ;;  %v6384_v55 = vld [vmem:[%s8667_s2 + $0xaa4] ss:$16 sps:$4 sm:$0xff]  }
 0x121   : > { %3777 = vmatpush1.bf16.msra.mxu0 %v6292_v56  ;;  %4105 = vmatpush1.bf16.msra.mxu1 %v6295_v57  ;;  %v6387_v56 = vld [vmem:[%s8667_s2 + $0xaac] ss:$16 sps:$4 sm:$0xff]   ;;  %v6382_v57 = vld [vmem:[%s8667_s2 + $0xaa0] ss:$16 sps:$4 sm:$0xff]  }
 0x122   : > { %3778 = vmatprep.subr.bf16.mxu0 %v6300_v58  ;;  %4106 = vmatprep.subr.bf16.mxu1 %v6303_v59  ;;  %v6385_v58 = vld [vmem:[%s8667_s2 + $0xaa8] ss:$16 sps:$4 sm:$0xff]   ;;  %v6390_v59 = vld [vmem:[%s8667_s2 + $0xac4] ss:$16 sps:$4 sm:$0xff]  }
 0x125   : > { %3779 = vmatpush1.bf16.msra.mxu0 %v6298_v60  ;;  %4107 = vmatpush1.bf16.msra.mxu1 %v6301_v61  ;;  %v6393_v60 = vld [vmem:[%s8667_s2 + $0xacc] ss:$16 sps:$4 sm:$0xff]   ;;  %v6388_v61 = vld [vmem:[%s8667_s2 + $0xac0] ss:$16 sps:$4 sm:$0xff]  }
 0x126   : > { %3780 = vmatprep.subr.bf16.mxu0 %v6306_v62  ;;  %4108 = vmatprep.subr.bf16.mxu1 %v6309_v63  ;;  %v6391_v62 = vld [vmem:[%s8667_s2 + $0xac8] ss:$16 sps:$4 sm:$0xff]   ;;  %v6396_v63 = vld [vmem:[%s8667_s2 + $0xae4] ss:$16 sps:$4 sm:$0xff]  }
 0x129   : > { %3781 = vmatpush1.bf16.msra.mxu0 %v6304_v0  ;;  %4109 = vmatpush1.bf16.msra.mxu1 %v6307_v1  ;;  %v6399_v0 = vld [vmem:[%s8667_s2 + $0xaec] ss:$16 sps:$4 sm:$0xff]   ;;  %v6394_v1 = vld [vmem:[%s8667_s2 + $0xae0] ss:$16 sps:$4 sm:$0xff]  }
 0x12a   : > { %3782 = vmatprep.subr.bf16.mxu0 %v6312_v2  ;;  %4110 = vmatprep.subr.bf16.mxu1 %v6315_v3  ;;  %v6397_v2 = vld [vmem:[%s8667_s2 + $0xae8] ss:$16 sps:$4 sm:$0xff]   ;;  %v6402_v3 = vld [vmem:[%s8667_s2 + $0xb04] ss:$16 sps:$4 sm:$0xff]  }
 0x12d   : > { %3783 = vmatpush1.bf16.msra.mxu0 %v6310_v4  ;;  %4111 = vmatpush1.bf16.msra.mxu1 %v6313_v5  ;;  %v6405_v4 = vld [vmem:[%s8667_s2 + $0xb0c] ss:$16 sps:$4 sm:$0xff]   ;;  %v6400_v5 = vld [vmem:[%s8667_s2 + $0xb00] ss:$16 sps:$4 sm:$0xff]  }
 0x12e   : > { %3784 = vmatprep.subr.bf16.mxu0 %v6318_v6  ;;  %4112 = vmatprep.subr.bf16.mxu1 %v6321_v7  ;;  %v6403_v6 = vld [vmem:[%s8667_s2 + $0xb08] ss:$16 sps:$4 sm:$0xff]   ;;  %v6408_v7 = vld [vmem:[%s8667_s2 + $0xb24] ss:$16 sps:$4 sm:$0xff]  }
 0x131   : > { %3785 = vmatpush1.bf16.msra.mxu0 %v6316_v8  ;;  %4113 = vmatpush1.bf16.msra.mxu1 %v6319_v9  ;;  %v6411_v8 = vld [vmem:[%s8667_s2 + $0xb2c] ss:$16 sps:$4 sm:$0xff]   ;;  %v6406_v9 = vld [vmem:[%s8667_s2 + $0xb20] ss:$16 sps:$4 sm:$0xff]  }
 0x132   : > { %3786 = vmatprep.subr.bf16.mxu0 %v6324_v10  ;;  %4114 = vmatprep.subr.bf16.mxu1 %v6327_v11  ;;  %v6409_v10 = vld [vmem:[%s8667_s2 + $0xb28] ss:$16 sps:$4 sm:$0xff]   ;;  %v6414_v11 = vld [vmem:[%s8667_s2 + $0xb44] ss:$16 sps:$4 sm:$0xff]  }
 0x135   : > { %3787 = vmatpush1.bf16.msra.mxu0 %v6322_v12  ;;  %4115 = vmatpush1.bf16.msra.mxu1 %v6325_v14  ;;  %v6417_v12 = vld [vmem:[%s8667_s2 + $0xb4c] ss:$16 sps:$4 sm:$0xff]   ;;  %v6412_v14 = vld [vmem:[%s8667_s2 + $0xb40] ss:$16 sps:$4 sm:$0xff]  }
 0x136   : > { %3788 = vmatprep.subr.bf16.mxu0 %v6330_v15  ;;  %4116 = vmatprep.subr.bf16.mxu1 %v6333_v16  ;;  %v6415_v15 = vld [vmem:[%s8667_s2 + $0xb48] ss:$16 sps:$4 sm:$0xff]   ;;  %v6420_v16 = vld [vmem:[%s8667_s2 + $0xb64] ss:$16 sps:$4 sm:$0xff]  }
 0x139   : > { %3789 = vmatpush1.bf16.msra.mxu0 %v6328_v17  ;;  %4117 = vmatpush1.bf16.msra.mxu1 %v6331_v18  ;;  %v6423_v17 = vld [vmem:[%s8667_s2 + $0xb6c] ss:$16 sps:$4 sm:$0xff]   ;;  %v6418_v18 = vld [vmem:[%s8667_s2 + $0xb60] ss:$16 sps:$4 sm:$0xff]  }
 0x13a   : > { %3790 = vmatprep.subr.bf16.mxu0 %v6336_v19  ;;  %4118 = vmatprep.subr.bf16.mxu1 %v6339_v21  ;;  %v6421_v19 = vld [vmem:[%s8667_s2 + $0xb68] ss:$16 sps:$4 sm:$0xff]   ;;  %v6426_v21 = vld [vmem:[%s8667_s2 + $0xb84] ss:$16 sps:$4 sm:$0xff]  }
 0x13d   : > { %3791 = vmatpush1.bf16.msra.mxu0 %v6334_v22  ;;  %4119 = vmatpush1.bf16.msra.mxu1 %v6337_v24  ;;  %v6429_v22 = vld [vmem:[%s8667_s2 + $0xb8c] ss:$16 sps:$4 sm:$0xff]   ;;  %v6424_v24 = vld [vmem:[%s8667_s2 + $0xb80] ss:$16 sps:$4 sm:$0xff]  }
 0x13e   : > { %3792 = vmatprep.subr.bf16.mxu0 %v6342_v20  ;;  %4120 = vmatprep.subr.bf16.mxu1 %v6345_v26  ;;  %v6427_v20 = vld [vmem:[%s8667_s2 + $0xb88] ss:$16 sps:$4 sm:$0xff]   ;;  %v6432_v26 = vld [vmem:[%s8667_s2 + $0xba4] ss:$16 sps:$4 sm:$0xff]  }
 0x141   : > { %3793 = vmatpush1.bf16.msra.mxu0 %v6340_v13  ;;  %4121 = vmatpush1.bf16.msra.mxu1 %v6343_v28  ;;  %v6435_v13 = vld [vmem:[%s8667_s2 + $0xbac] ss:$16 sps:$4 sm:$0xff]   ;;  %v6430_v28 = vld [vmem:[%s8667_s2 + $0xba0] ss:$16 sps:$4 sm:$0xff]  }
 0x142   : > { %3794 = vmatprep.subr.bf16.mxu0 %v6348_v29  ;;  %4122 = vmatprep.subr.bf16.mxu1 %v6351_v31  ;;  %v6433_v29 = vld [vmem:[%s8667_s2 + $0xba8] ss:$16 sps:$4 sm:$0xff]   ;;  %v6438_v31 = vld [vmem:[%s8667_s2 + $0xbc4] ss:$16 sps:$4 sm:$0xff]  }
 0x145   : > { %3795 = vmatpush1.bf16.msra.mxu0 %v6346_v23  ;;  %4123 = vmatpush1.bf16.msra.mxu1 %v6349_v33  ;;  %v6436_v23 = vld [vmem:[%s8667_s2 + $0xbc0] ss:$16 sps:$4 sm:$0xff]   ;;  %v6439_v33 = vld [vmem:[%s8667_s2 + $0xbc8] ss:$16 sps:$4 sm:$0xff]  }
 0x146   : > { %3805 = vmatprep.subr.bf16.mxu0 %v6354_v34  ;;  %4133 = vmatprep.subr.bf16.mxu1 %v6357_v27  ;;  %v6444_v34 = vld [vmem:[%s8667_s2 + $0xbe4] ss:$16 sps:$4 sm:$0xff]   ;;  %v6447_v27 = vld [vmem:[%s8667_s2 + $0xbec] ss:$16 sps:$4 sm:$0xff]  }
 0x148   : > { %3797 = vmatmul.mubr.bf16.vlgmr.msra.gmra.mrb[0].mxu0 %v7616_v30  ;;  %4125 = vmatmul.mubr.bf16.vlgmr.msra.gmra.mrb[0].mxu1 %v7616_v30  ;;  %v6369_v30 = vld [vmem:[%s8667_s2 + $0xa4c] ss:$16 sps:$4 sm:$0xff]  }
 0x149   : > { %3806 = vmatpush1.bf16.msra.mxu0 %v6352_v36  ;;  %4134 = vmatpush1.bf16.msra.mxu1 %v6355_v37  ;;  %v8004_v36 = vld [vmem:[%s6937_s22 + $0x18] sm:$0xff]  ;;  %v6442_v37 = vld [vmem:[%s8667_s2 + $0xbe0] ss:$16 sps:$4 sm:$0xff]   ;;  %s412_s22 = scalar_lea.vmem %s8676_s11, %s5127_s18 }
 0x14a   : > { %3807 = vmatprep.subr.bf16.mxu0 %v6360_v25  ;;  %4135 = vmatprep.subr.bf16.mxu1 %v6363_v38  ;;  %v6445_v25 = vld [vmem:[%s8667_s2 + $0xbe8] ss:$16 sps:$4 sm:$0xff]   ;;  %v6451_v38 = vld [vmem:[%s8667_s2 + $0xc04] ss:$16 sps:$4 sm:$0xff]  }
 0x14b   : > { %3837 = vmatprep.mubr.bf16.mxu0 %v1006_v39  ;;  %4165 = vmatprep.mubr.bf16.mxu1 %v1006_v39  ;;  %v6454_v39 = vld [vmem:[%s8667_s2 + $0xc0c] ss:$16 sps:$4 sm:$0xff]  }
 0x14d   : > { %3808 = vmatpush1.bf16.msra.mxu0 %v6358_v40  ;;  %4136 = vmatpush1.bf16.msra.mxu1 %v6361_v41  ;;  %v6449_v40 = vld [vmem:[%s8667_s2 + $0xc00] ss:$16 sps:$4 sm:$0xff]   ;;  %v6452_v41 = vld [vmem:[%s8667_s2 + $0xc08] ss:$16 sps:$4 sm:$0xff]  }
 0x14e   : > { %3809 = vmatprep.subr.bf16.mxu0 %v6366_v42  ;;  %4137 = vmatprep.subr.bf16.mxu1 %v6369_v30  ;;  %v8026_v42 = vrot.slane %v8004_v36, %v6940_v50  ;;  %v6457_v30 = vld [vmem:[%s8667_s2 + $0xc24] ss:$16 sps:$4 sm:$0xff]  }
 0x151   : > { %3810 = vmatpush1.bf16.msra.mxu0 %v6364_v44  ;;  %4138 = vmatpush1.bf16.msra.mxu1 %v6367_v45  ;;  %v6460_v44 = vld [vmem:[%s8667_s2 + $0xc2c] ss:$16 sps:$4 sm:$0xff]   ;;  %v1022_v45 = vcombine.high %v8026_v42, %v8026_v42 }
 0x152   : > { %3811 = vmatprep.subr.bf16.mxu0 %v6372_v46  ;;  %4139 = vmatprep.subr.bf16.mxu1 %v6375_v47  ;;  %v6455_v46 = vld [vmem:[%s8667_s2 + $0xc20] ss:$16 sps:$4 sm:$0xff]   ;;  %v6458_v47 = vld [vmem:[%s8667_s2 + $0xc28] ss:$16 sps:$4 sm:$0xff]  }
 0x155   : > { %3812 = vmatpush1.bf16.msra.mxu0 %v6370_v48  ;;  %4140 = vmatpush1.bf16.msra.mxu1 %v6373_v49  ;;  %v6463_v48 = vld [vmem:[%s8667_s2 + $0xc44] ss:$16 sps:$4 sm:$0xff]   ;;  %v6461_v49 = vld [vmem:[%s8667_s2 + $0xc40] ss:$16 sps:$4 sm:$0xff]  }
 0x156   : > { %3813 = vmatprep.subr.bf16.mxu0 %v6378_v51  ;;  %4141 = vmatprep.subr.bf16.mxu1 %v6381_v52  ;;  %v6464_v51 = vld [vmem:[%s8667_s2 + $0xc48] ss:$16 sps:$4 sm:$0xff]   ;;  %v6469_v52 = vld [vmem:[%s8667_s2 + $0xc64] ss:$16 sps:$4 sm:$0xff]  }
 0x159   : > { %3814 = vmatpush1.bf16.msra.mxu0 %v6376_v53  ;;  %4142 = vmatpush1.bf16.msra.mxu1 %v6379_v54  ;;  %v6472_v53 = vld [vmem:[%s8667_s2 + $0xc6c] ss:$16 sps:$4 sm:$0xff]   ;;  %v6467_v54 = vld [vmem:[%s8667_s2 + $0xc60] ss:$16 sps:$4 sm:$0xff]  }
 0x15a   : > { %3815 = vmatprep.subr.bf16.mxu0 %v6384_v55  ;;  %4143 = vmatprep.subr.bf16.mxu1 %v6387_v56  ;;  %v6470_v55 = vld [vmem:[%s8667_s2 + $0xc68] ss:$16 sps:$4 sm:$0xff]   ;;  %v6475_v56 = vld [vmem:[%s8667_s2 + $0xc84] ss:$16 sps:$4 sm:$0xff]  }
 0x15d   : > { %3816 = vmatpush1.bf16.msra.mxu0 %v6382_v57  ;;  %4144 = vmatpush1.bf16.msra.mxu1 %v6385_v58  ;;  %v6478_v57 = vld [vmem:[%s8667_s2 + $0xc8c] ss:$16 sps:$4 sm:$0xff]   ;;  %v6473_v58 = vld [vmem:[%s8667_s2 + $0xc80] ss:$16 sps:$4 sm:$0xff]  }
 0x15e   : > { %3817 = vmatprep.subr.bf16.mxu0 %v6390_v59  ;;  %4145 = vmatprep.subr.bf16.mxu1 %v6393_v60  ;;  %v6476_v59 = vld [vmem:[%s8667_s2 + $0xc88] ss:$16 sps:$4 sm:$0xff]   ;;  %v6481_v60 = vld [vmem:[%s8667_s2 + $0xca4] ss:$16 sps:$4 sm:$0xff]  }
 0x161   : > { %3818 = vmatpush1.bf16.msra.mxu0 %v6388_v61  ;;  %4146 = vmatpush1.bf16.msra.mxu1 %v6391_v62  ;;  %v6484_v61 = vld [vmem:[%s8667_s2 + $0xcac] ss:$16 sps:$4 sm:$0xff]   ;;  %v6479_v62 = vld [vmem:[%s8667_s2 + $0xca0] ss:$16 sps:$4 sm:$0xff]  }
 0x162   : > { %3819 = vmatprep.subr.bf16.mxu0 %v6396_v63  ;;  %4147 = vmatprep.subr.bf16.mxu1 %v6399_v0  ;;  %v6482_v63 = vld [vmem:[%s8667_s2 + $0xca8] ss:$16 sps:$4 sm:$0xff]   ;;  %v6487_v0 = vld [vmem:[%s8667_s2 + $0xcc4] ss:$16 sps:$4 sm:$0xff]  }
 0x165   : > { %3820 = vmatpush1.bf16.msra.mxu0 %v6394_v1  ;;  %4148 = vmatpush1.bf16.msra.mxu1 %v6397_v2  ;;  %v6490_v1 = vld [vmem:[%s8667_s2 + $0xccc] ss:$16 sps:$4 sm:$0xff]   ;;  %v6485_v2 = vld [vmem:[%s8667_s2 + $0xcc0] ss:$16 sps:$4 sm:$0xff]  }
 0x166   : > { %3821 = vmatprep.subr.bf16.mxu0 %v6402_v3  ;;  %4149 = vmatprep.subr.bf16.mxu1 %v6405_v4  ;;  %v6488_v3 = vld [vmem:[%s8667_s2 + $0xcc8] ss:$16 sps:$4 sm:$0xff]   ;;  %v6493_v4 = vld [vmem:[%s8667_s2 + $0xce4] ss:$16 sps:$4 sm:$0xff]  }
 0x169   : > { %3822 = vmatpush1.bf16.msra.mxu0 %v6400_v5  ;;  %4150 = vmatpush1.bf16.msra.mxu1 %v6403_v6  ;;  %v6496_v5 = vld [vmem:[%s8667_s2 + $0xcec] ss:$16 sps:$4 sm:$0xff]   ;;  %v6491_v6 = vld [vmem:[%s8667_s2 + $0xce0] ss:$16 sps:$4 sm:$0xff]  }
 0x16a   : > { %3823 = vmatprep.subr.bf16.mxu0 %v6408_v7  ;;  %4151 = vmatprep.subr.bf16.mxu1 %v6411_v8  ;;  %v6494_v7 = vld [vmem:[%s8667_s2 + $0xce8] ss:$16 sps:$4 sm:$0xff]   ;;  %v6499_v8 = vld [vmem:[%s8667_s2 + $0xd04] ss:$16 sps:$4 sm:$0xff]  }
 0x16d   : > { %3824 = vmatpush1.bf16.msra.mxu0 %v6406_v9  ;;  %4152 = vmatpush1.bf16.msra.mxu1 %v6409_v10  ;;  %v6502_v9 = vld [vmem:[%s8667_s2 + $0xd0c] ss:$16 sps:$4 sm:$0xff]   ;;  %v6497_v10 = vld [vmem:[%s8667_s2 + $0xd00] ss:$16 sps:$4 sm:$0xff]  }
 0x16e   : > { %3825 = vmatprep.subr.bf16.mxu0 %v6414_v11  ;;  %4153 = vmatprep.subr.bf16.mxu1 %v6417_v12  ;;  %v6500_v11 = vld [vmem:[%s8667_s2 + $0xd08] ss:$16 sps:$4 sm:$0xff]   ;;  %v6505_v12 = vld [vmem:[%s8667_s2 + $0xd24] ss:$16 sps:$4 sm:$0xff]  }
 0x171   : > { %3826 = vmatpush1.bf16.msra.mxu0 %v6412_v14  ;;  %4154 = vmatpush1.bf16.msra.mxu1 %v6415_v15  ;;  %v6508_v14 = vld [vmem:[%s8667_s2 + $0xd2c] ss:$16 sps:$4 sm:$0xff]   ;;  %v6503_v15 = vld [vmem:[%s8667_s2 + $0xd20] ss:$16 sps:$4 sm:$0xff]  }
 0x172   : > { %3827 = vmatprep.subr.bf16.mxu0 %v6420_v16  ;;  %4155 = vmatprep.subr.bf16.mxu1 %v6423_v17  ;;  %v6506_v16 = vld [vmem:[%s8667_s2 + $0xd28] ss:$16 sps:$4 sm:$0xff]   ;;  %v6511_v17 = vld [vmem:[%s8667_s2 + $0xd44] ss:$16 sps:$4 sm:$0xff]  }
 0x175   : > { %3828 = vmatpush1.bf16.msra.mxu0 %v6418_v18  ;;  %4156 = vmatpush1.bf16.msra.mxu1 %v6421_v19  ;;  %v6514_v18 = vld [vmem:[%s8667_s2 + $0xd4c] ss:$16 sps:$4 sm:$0xff]   ;;  %v6509_v19 = vld [vmem:[%s8667_s2 + $0xd40] ss:$16 sps:$4 sm:$0xff]  }
 0x176   : > { %3829 = vmatprep.subr.bf16.mxu0 %v6426_v21  ;;  %4157 = vmatprep.subr.bf16.mxu1 %v6429_v22  ;;  %v6512_v21 = vld [vmem:[%s8667_s2 + $0xd48] ss:$16 sps:$4 sm:$0xff]   ;;  %v6517_v22 = vld [vmem:[%s8667_s2 + $0xd64] ss:$16 sps:$4 sm:$0xff]  }
 0x179   : > { %3830 = vmatpush1.bf16.msra.mxu0 %v6424_v24  ;;  %4158 = vmatpush1.bf16.msra.mxu1 %v6427_v20  ;;  %v6520_v24 = vld [vmem:[%s8667_s2 + $0xd6c] ss:$16 sps:$4 sm:$0xff]   ;;  %v6515_v20 = vld [vmem:[%s8667_s2 + $0xd60] ss:$16 sps:$4 sm:$0xff]  }
 0x17a   : > { %3831 = vmatprep.subr.bf16.mxu0 %v6432_v26  ;;  %4159 = vmatprep.subr.bf16.mxu1 %v6435_v13  ;;  %v6518_v26 = vld [vmem:[%s8667_s2 + $0xd68] ss:$16 sps:$4 sm:$0xff]   ;;  %v6523_v13 = vld [vmem:[%s8667_s2 + $0xd84] ss:$16 sps:$4 sm:$0xff]  }
 0x17d   : > { %3832 = vmatpush1.bf16.msra.mxu0 %v6430_v28  ;;  %4160 = vmatpush1.bf16.msra.mxu1 %v6433_v29  ;;  %v6526_v28 = vld [vmem:[%s8667_s2 + $0xd8c] ss:$16 sps:$4 sm:$0xff]   ;;  %v6521_v29 = vld [vmem:[%s8667_s2 + $0xd80] ss:$16 sps:$4 sm:$0xff]  }
 0x17e   : > { %3833 = vmatprep.subr.bf16.mxu0 %v6438_v31  ;;  %4161 = vmatprep.subr.bf16.mxu1 %v6441_v32  ;;  %v6524_v31 = vld [vmem:[%s8667_s2 + $0xd88] ss:$16 sps:$4 sm:$0xff]   ;;  %v6529_v32 = vld [vmem:[%s8667_s2 + $0xda4] ss:$16 sps:$4 sm:$0xff]  }
 0x181   : > { %3834 = vmatpush1.bf16.msra.mxu0 %v6436_v23  ;;  %4162 = vmatpush1.bf16.msra.mxu1 %v6439_v33  ;;  %v6532_v23 = vld [vmem:[%s8667_s2 + $0xdac] ss:$16 sps:$4 sm:$0xff]   ;;  %v6527_v33 = vld [vmem:[%s8667_s2 + $0xda0] ss:$16 sps:$4 sm:$0xff]  }
 0x182   : > { %3835 = vmatprep.subr.bf16.mxu0 %v6444_v34  ;;  %4163 = vmatprep.subr.bf16.mxu1 %v6447_v27  ;;  %v6530_v34 = vld [vmem:[%s8667_s2 + $0xda8] ss:$16 sps:$4 sm:$0xff]   ;;  %v6535_v27 = vld [vmem:[%s8667_s2 + $0xdc4] ss:$16 sps:$4 sm:$0xff]  }
 0x185   : > { %3836 = vmatpush1.bf16.msra.mxu0 %v6442_v37  ;;  %4164 = vmatpush1.bf16.msra.mxu1 %v6445_v25  ;;  %v6538_v37 = vld [vmem:[%s8667_s2 + $0xdcc] ss:$16 sps:$4 sm:$0xff]   ;;  %v6533_v25 = vld [vmem:[%s8667_s2 + $0xdc0] ss:$16 sps:$4 sm:$0xff]  }
 0x186   : > { %3846 = vmatprep.subr.bf16.mxu0 %v6451_v38  ;;  %4174 = vmatprep.subr.bf16.mxu1 %v6454_v39  ;;  %v6536_v38 = vld [vmem:[%s8667_s2 + $0xdc8] ss:$16 sps:$4 sm:$0xff]   ;;  %v6541_v39 = vld [vmem:[%s8667_s2 + $0xde4] ss:$16 sps:$4 sm:$0xff]  }
 0x188   : > { %3838 = vmatmul.mubr.bf16.vlgmr.msra.gmra.mrb[0].mxu0 %v7817_v35  ;;  %4166 = vmatmul.mubr.bf16.vlgmr.msra.gmra.mrb[0].mxu1 %v7817_v35  ;;  %v6466_v35 = vld [vmem:[%s8667_s2 + $0xc4c] ss:$16 sps:$4 sm:$0xff]  }
 0x189   : > { %3847 = vmatpush1.bf16.msra.mxu0 %v6449_v40  ;;  %4175 = vmatpush1.bf16.msra.mxu1 %v6452_v41  ;;  %v6544_v40 = vld [vmem:[%s8667_s2 + $0xdec] ss:$16 sps:$4 sm:$0xff]   ;;  %v1007_v41 = vcombine.high %v8004_v36, %v8004_v36 }
 0x18a   : > { %3848 = vmatprep.subr.bf16.mxu0 %v6457_v30  ;;  %4176 = vmatprep.subr.bf16.mxu1 %v6460_v44  ;;  %v6539_v30 = vld [vmem:[%s8667_s2 + $0xde0] ss:$16 sps:$4 sm:$0xff]   ;;  %v6542_v44 = vld [vmem:[%s8667_s2 + $0xde8] ss:$16 sps:$4 sm:$0xff]   ;;  %v6550_v36 = vld [vmem:[%s8667_s2 + $0xe0c] ss:$16 sps:$4 sm:$0xff]  }
 0x18b   : > { %3878 = vmatprep.mubr.bf16.mxu0 %v1022_v45  ;;  %4206 = vmatprep.mubr.bf16.mxu1 %v1022_v45  ;;  %v6547_v45 = vld [vmem:[%s8667_s2 + $0xe04] ss:$16 sps:$4 sm:$0xff]  }
 0x18d   : > { %3849 = vmatpush1.bf16.msra.mxu0 %v6455_v46  ;;  %4177 = vmatpush1.bf16.msra.mxu1 %v6458_v47  ;;  %v8221_v46 = vrot.slane %v1007_v41, %v6940_v50  ;;  %v6545_v47 = vld [vmem:[%s8667_s2 + $0xe00] ss:$16 sps:$4 sm:$0xff]   ;;  %v6556_v50 = vld [vmem:[%s8667_s2 + $0xe2c] ss:$16 sps:$4 sm:$0xff]  }
 0x18e   : > { %3850 = vmatprep.subr.bf16.mxu0 %v6463_v48  ;;  %4178 = vmatprep.subr.bf16.mxu1 %v6466_v35  ;;  %v6548_v48 = vld [vmem:[%s8667_s2 + $0xe08] ss:$16 sps:$4 sm:$0xff]   ;;  %v6553_v35 = vld [vmem:[%s8667_s2 + $0xe24] ss:$16 sps:$4 sm:$0xff]   ;;  %v6629_v41 = vld [vmem:[%s8667_s2 + $0xfc0] ss:$16 sps:$4 sm:$0xff]  }
 0x191   : > { %3851 = vmatpush1.bf16.msra.mxu0 %v6461_v49  ;;  %4179 = vmatpush1.bf16.msra.mxu1 %v6464_v51  ;;  %v1023_v49 = vcombine.high %v8221_v46, %v8221_v46  ;;  %v6551_v51 = vld [vmem:[%s8667_s2 + $0xe20] ss:$16 sps:$4 sm:$0xff]  }
 0x192   : > { %3852 = vmatprep.subr.bf16.mxu0 %v6469_v52  ;;  %4180 = vmatprep.subr.bf16.mxu1 %v6472_v53  ;;  %v6554_v52 = vld [vmem:[%s8667_s2 + $0xe28] ss:$16 sps:$4 sm:$0xff]   ;;  %v6559_v53 = vld [vmem:[%s8667_s2 + $0xe44] ss:$16 sps:$4 sm:$0xff]  }
 0x195   : > { %3853 = vmatpush1.bf16.msra.mxu0 %v6467_v54  ;;  %4181 = vmatpush1.bf16.msra.mxu1 %v6470_v55  ;;  %v6557_v54 = vld [vmem:[%s8667_s2 + $0xe40] ss:$16 sps:$4 sm:$0xff]   ;;  %v6560_v55 = vld [vmem:[%s8667_s2 + $0xe48] ss:$16 sps:$4 sm:$0xff]  }
 0x196   : > { %3854 = vmatprep.subr.bf16.mxu0 %v6475_v56  ;;  %4182 = vmatprep.subr.bf16.mxu1 %v6478_v57  ;;  %v6565_v56 = vld [vmem:[%s8667_s2 + $0xe64] ss:$16 sps:$4 sm:$0xff]   ;;  %v6568_v57 = vld [vmem:[%s8667_s2 + $0xe6c] ss:$16 sps:$4 sm:$0xff]  }
 0x199   : > { %3855 = vmatpush1.bf16.msra.mxu0 %v6473_v58  ;;  %4183 = vmatpush1.bf16.msra.mxu1 %v6476_v59  ;;  %v6563_v58 = vld [vmem:[%s8667_s2 + $0xe60] ss:$16 sps:$4 sm:$0xff]   ;;  %v6566_v59 = vld [vmem:[%s8667_s2 + $0xe68] ss:$16 sps:$4 sm:$0xff]  }
 0x19a   : > { %3856 = vmatprep.subr.bf16.mxu0 %v6481_v60  ;;  %4184 = vmatprep.subr.bf16.mxu1 %v6484_v61  ;;  %v6571_v60 = vld [vmem:[%s8667_s2 + $0xe84] ss:$16 sps:$4 sm:$0xff]   ;;  %v6574_v61 = vld [vmem:[%s8667_s2 + $0xe8c] ss:$16 sps:$4 sm:$0xff]  }
 0x19d   : > { %3857 = vmatpush1.bf16.msra.mxu0 %v6479_v62  ;;  %4185 = vmatpush1.bf16.msra.mxu1 %v6482_v63  ;;  %v6569_v62 = vld [vmem:[%s8667_s2 + $0xe80] ss:$16 sps:$4 sm:$0xff]   ;;  %v6572_v63 = vld [vmem:[%s8667_s2 + $0xe88] ss:$16 sps:$4 sm:$0xff]  }
 0x19e   : > { %3858 = vmatprep.subr.bf16.mxu0 %v6487_v0  ;;  %4186 = vmatprep.subr.bf16.mxu1 %v6490_v1  ;;  %v6577_v0 = vld [vmem:[%s8667_s2 + $0xea4] ss:$16 sps:$4 sm:$0xff]   ;;  %v6580_v1 = vld [vmem:[%s8667_s2 + $0xeac] ss:$16 sps:$4 sm:$0xff]  }
 0x1a1   : > { %3859 = vmatpush1.bf16.msra.mxu0 %v6485_v2  ;;  %4187 = vmatpush1.bf16.msra.mxu1 %v6488_v3  ;;  %v6575_v2 = vld [vmem:[%s8667_s2 + $0xea0] ss:$16 sps:$4 sm:$0xff]   ;;  %v6578_v3 = vld [vmem:[%s8667_s2 + $0xea8] ss:$16 sps:$4 sm:$0xff]  }
 0x1a2   : > { %3860 = vmatprep.subr.bf16.mxu0 %v6493_v4  ;;  %4188 = vmatprep.subr.bf16.mxu1 %v6496_v5  ;;  %v6583_v4 = vld [vmem:[%s8667_s2 + $0xec4] ss:$16 sps:$4 sm:$0xff]   ;;  %v6586_v5 = vld [vmem:[%s8667_s2 + $0xecc] ss:$16 sps:$4 sm:$0xff]  }
 0x1a5   : > { %3861 = vmatpush1.bf16.msra.mxu0 %v6491_v6  ;;  %4189 = vmatpush1.bf16.msra.mxu1 %v6494_v7  ;;  %v6581_v6 = vld [vmem:[%s8667_s2 + $0xec0] ss:$16 sps:$4 sm:$0xff]   ;;  %v6584_v7 = vld [vmem:[%s8667_s2 + $0xec8] ss:$16 sps:$4 sm:$0xff]  }
 0x1a6   : > { %3862 = vmatprep.subr.bf16.mxu0 %v6499_v8  ;;  %4190 = vmatprep.subr.bf16.mxu1 %v6502_v9  ;;  %v6589_v8 = vld [vmem:[%s8667_s2 + $0xee4] ss:$16 sps:$4 sm:$0xff]   ;;  %v6592_v9 = vld [vmem:[%s8667_s2 + $0xeec] ss:$16 sps:$4 sm:$0xff]  }
 0x1a9   : > { %3863 = vmatpush1.bf16.msra.mxu0 %v6497_v10  ;;  %4191 = vmatpush1.bf16.msra.mxu1 %v6500_v11  ;;  %v6587_v10 = vld [vmem:[%s8667_s2 + $0xee0] ss:$16 sps:$4 sm:$0xff]   ;;  %v6590_v11 = vld [vmem:[%s8667_s2 + $0xee8] ss:$16 sps:$4 sm:$0xff]  }
 0x1aa   : > { %3864 = vmatprep.subr.bf16.mxu0 %v6505_v12  ;;  %4192 = vmatprep.subr.bf16.mxu1 %v6508_v14  ;;  %v6595_v12 = vld [vmem:[%s8667_s2 + $0xf04] ss:$16 sps:$4 sm:$0xff]   ;;  %v6598_v14 = vld [vmem:[%s8667_s2 + $0xf0c] ss:$16 sps:$4 sm:$0xff]  }
 0x1ad   : > { %3865 = vmatpush1.bf16.msra.mxu0 %v6503_v15  ;;  %4193 = vmatpush1.bf16.msra.mxu1 %v6506_v16  ;;  %v6593_v15 = vld [vmem:[%s8667_s2 + $0xf00] ss:$16 sps:$4 sm:$0xff]   ;;  %v6596_v16 = vld [vmem:[%s8667_s2 + $0xf08] ss:$16 sps:$4 sm:$0xff]  }
 0x1ae   : > { %3866 = vmatprep.subr.bf16.mxu0 %v6511_v17  ;;  %4194 = vmatprep.subr.bf16.mxu1 %v6514_v18  ;;  %v6601_v17 = vld [vmem:[%s8667_s2 + $0xf24] ss:$16 sps:$4 sm:$0xff]   ;;  %v6604_v18 = vld [vmem:[%s8667_s2 + $0xf2c] ss:$16 sps:$4 sm:$0xff]  }
 0x1b1   : > { %3867 = vmatpush1.bf16.msra.mxu0 %v6509_v19  ;;  %4195 = vmatpush1.bf16.msra.mxu1 %v6512_v21  ;;  %v6599_v19 = vld [vmem:[%s8667_s2 + $0xf20] ss:$16 sps:$4 sm:$0xff]   ;;  %v6602_v21 = vld [vmem:[%s8667_s2 + $0xf28] ss:$16 sps:$4 sm:$0xff]  }
 0x1b2   : > { %3868 = vmatprep.subr.bf16.mxu0 %v6517_v22  ;;  %4196 = vmatprep.subr.bf16.mxu1 %v6520_v24  ;;  %v6607_v22 = vld [vmem:[%s8667_s2 + $0xf44] ss:$16 sps:$4 sm:$0xff]   ;;  %v6610_v24 = vld [vmem:[%s8667_s2 + $0xf4c] ss:$16 sps:$4 sm:$0xff]  }
 0x1b5   : > { %3869 = vmatpush1.bf16.msra.mxu0 %v6515_v20  ;;  %4197 = vmatpush1.bf16.msra.mxu1 %v6518_v26  ;;  %v6605_v20 = vld [vmem:[%s8667_s2 + $0xf40] ss:$16 sps:$4 sm:$0xff]   ;;  %v6608_v26 = vld [vmem:[%s8667_s2 + $0xf48] ss:$16 sps:$4 sm:$0xff]  }
 0x1b6   : > { %3870 = vmatprep.subr.bf16.mxu0 %v6523_v13  ;;  %4198 = vmatprep.subr.bf16.mxu1 %v6526_v28  ;;  %v6613_v13 = vld [vmem:[%s8667_s2 + $0xf64] ss:$16 sps:$4 sm:$0xff]   ;;  %v6616_v28 = vld [vmem:[%s8667_s2 + $0xf6c] ss:$16 sps:$4 sm:$0xff]  }
 0x1b9   : > { %3871 = vmatpush1.bf16.msra.mxu0 %v6521_v29  ;;  %4199 = vmatpush1.bf16.msra.mxu1 %v6524_v31  ;;  %v6611_v29 = vld [vmem:[%s8667_s2 + $0xf60] ss:$16 sps:$4 sm:$0xff]   ;;  %v6614_v31 = vld [vmem:[%s8667_s2 + $0xf68] ss:$16 sps:$4 sm:$0xff]  }
 0x1ba   : > { %3872 = vmatprep.subr.bf16.mxu0 %v6529_v32  ;;  %4200 = vmatprep.subr.bf16.mxu1 %v6532_v23  ;;  %v6619_v32 = vld [vmem:[%s8667_s2 + $0xf84] ss:$16 sps:$4 sm:$0xff]   ;;  %v6622_v23 = vld [vmem:[%s8667_s2 + $0xf8c] ss:$16 sps:$4 sm:$0xff]  }
 0x1bd   : > { %3873 = vmatpush1.bf16.msra.mxu0 %v6527_v33  ;;  %4201 = vmatpush1.bf16.msra.mxu1 %v6530_v34  ;;  %v6617_v33 = vld [vmem:[%s8667_s2 + $0xf80] ss:$16 sps:$4 sm:$0xff]   ;;  %v6620_v34 = vld [vmem:[%s8667_s2 + $0xf88] ss:$16 sps:$4 sm:$0xff]  }
 0x1be   : > { %3874 = vmatprep.subr.bf16.mxu0 %v6535_v27  ;;  %4202 = vmatprep.subr.bf16.mxu1 %v6538_v37  ;;  %v6625_v27 = vld [vmem:[%s8667_s2 + $0xfa4] ss:$16 sps:$4 sm:$0xff]   ;;  %v6628_v37 = vld [vmem:[%s8667_s2 + $0xfac] ss:$16 sps:$4 sm:$0xff]  }
 0x1c1   : > { %3875 = vmatpush1.bf16.msra.mxu0 %v6533_v25  ;;  %4203 = vmatpush1.bf16.msra.mxu1 %v6536_v38  ;;  %v6623_v25 = vld [vmem:[%s8667_s2 + $0xfa0] ss:$16 sps:$4 sm:$0xff]   ;;  %v6626_v38 = vld [vmem:[%s8667_s2 + $0xfa8] ss:$16 sps:$4 sm:$0xff]  }
 0x1c2   : > { %3876 = vmatprep.subr.bf16.mxu0 %v6541_v39  ;;  %4204 = vmatprep.subr.bf16.mxu1 %v6544_v40  ;;  %v6631_v39 = vld [vmem:[%s8667_s2 + $0xfc4] ss:$16 sps:$4 sm:$0xff]   ;;  %v6634_v40 = vld [vmem:[%s8667_s2 + $0xfcc] ss:$16 sps:$4 sm:$0xff]  }
 0x1c5   : > { %3877 = vmatpush1.bf16.msra.mxu0 %v6539_v30  ;;  %4205 = vmatpush1.bf16.msra.mxu1 %v6542_v44  ;;  %v6632_v30 = vld [vmem:[%s8667_s2 + $0xfc8] ss:$16 sps:$4 sm:$0xff]   ;;  %v6637_v44 = vld [vmem:[%s8667_s2 + $0xfe4] ss:$16 sps:$4 sm:$0xff]  }
 0x1c6   : > { %3887 = vmatprep.subr.bf16.mxu0 %v6547_v45  ;;  %4215 = vmatprep.subr.bf16.mxu1 %v6550_v36  ;;  %v6640_v45 = vld [vmem:[%s8667_s2 + $0xfec] ss:$16 sps:$4 sm:$0xff]   ;;  %v6635_v36 = vld [vmem:[%s8667_s2 + $0xfe0] ss:$16 sps:$4 sm:$0xff]  }
 0x1c8   : > { %3879 = vmatmul.mubr.bf16.vlgmr.msra.gmra.mrb[0].mxu0 %v8026_v42  ;;  %4207 = vmatmul.mubr.bf16.vlgmr.msra.gmra.mrb[0].mxu1 %v8026_v42  ;;  %v6562_v42 = vld [vmem:[%s8667_s2 + $0xe4c] ss:$16 sps:$4 sm:$0xff]  }
 0x1c9   : > { %3888 = vmatpush1.bf16.msra.mxu0 %v6545_v47  ;;  %4216 = vmatpush1.bf16.msra.mxu1 %v6548_v48  ;;  %v6638_v47 = vld [vmem:[%s8667_s2 + $0xfe8] ss:$16 sps:$4 sm:$0xff]   ;;  %v6642_v48 = vld [vmem:[%s8669_s4 + $0x40] sm:$0xff]  }
 0x1ca   : > { %3889 = vmatprep.subr.bf16.mxu0 %v6553_v35  ;;  %4217 = vmatprep.subr.bf16.mxu1 %v6556_v50  ;;  %v6643_v35 = vld [vmem:[%s8669_s4 + $0xc0] sm:$0xff]  }
 0x1cb   : > { %3919 = vmatprep.mubr.bf16.mxu0 %v1023_v49  ;;  %4247 = vmatprep.mubr.bf16.mxu1 %v1023_v49  ;;  %v6644_v50 = vld [vmem:[%s8669_s4] sm:$0xff]  }
 0x1cc   : > { %v6645_v49 = vld [vmem:[%s8669_s4 + $0x80] sm:$0xff]  }
 0x1cd   : > { %3890 = vmatpush1.bf16.msra.mxu0 %v6551_v51  ;;  %4218 = vmatpush1.bf16.msra.mxu1 %v6554_v52  ;;  %v6646_v51 = vld [vmem:[%s8669_s4 + $0x48] sm:$0xff]  }
 0x1ce   : > { %3891 = vmatprep.subr.bf16.mxu0 %v6559_v53  ;;  %4219 = vmatprep.subr.bf16.mxu1 %v6562_v42  ;;  %v6647_v52 = vld [vmem:[%s8669_s4 + $0xc8] sm:$0xff]  }
 0x1cf   : > { %v6648_v53 = vld [vmem:[%s8669_s4 + $0x8] sm:$0xff]  }
 0x1d0   : > { %v6649_v42 = vld [vmem:[%s8669_s4 + $0x88] sm:$0xff]  }
 0x1d1   : > { %3892 = vmatpush1.bf16.msra.mxu0 %v6557_v54  ;;  %4220 = vmatpush1.bf16.msra.mxu1 %v6560_v55  ;;  %v6650_v54 = vld [vmem:[%s8669_s4 + $0x50] sm:$0xff]  }
 0x1d2   : > { %3893 = vmatprep.subr.bf16.mxu0 %v6565_v56  ;;  %4221 = vmatprep.subr.bf16.mxu1 %v6568_v57  ;;  %v6652_v55 = vld [vmem:[%s8669_s4 + $0x10] sm:$0xff]   ;;  %v6654_v57 = vld [vmem:[%s8669_s4 + $0x58] sm:$0xff]  }
 0x1d3   : > { %v6653_v56 = vld [vmem:[%s8669_s4 + $0x90] sm:$0xff]  }
 0x1d5   : > { %3894 = vmatpush1.bf16.msra.mxu0 %v6563_v58  ;;  %4222 = vmatpush1.bf16.msra.mxu1 %v6566_v59  ;;  %v6655_v58 = vld [vmem:[%s8669_s4 + $0xd8] sm:$0xff]  }
 0x1d6   : > { %3895 = vmatprep.subr.bf16.mxu0 %v6571_v60  ;;  %4223 = vmatprep.subr.bf16.mxu1 %v6574_v61  ;;  %v6656_v59 = vld [vmem:[%s8669_s4 + $0x18] sm:$0xff]   ;;  %v6658_v61 = vld [vmem:[%s8669_s4 + $0x60] sm:$0xff]  }
 0x1d7   : > { %v6657_v60 = vld [vmem:[%s8669_s4 + $0x98] sm:$0xff]  }
 0x1d9   : > { %3896 = vmatpush1.bf16.msra.mxu0 %v6569_v62  ;;  %4224 = vmatpush1.bf16.msra.mxu1 %v6572_v63  ;;  %v6659_v62 = vld [vmem:[%s8669_s4 + $0xe0] sm:$0xff]  }
 0x1da   : > { %3897 = vmatprep.subr.bf16.mxu0 %v6577_v0  ;;  %4225 = vmatprep.subr.bf16.mxu1 %v6580_v1  ;;  %v6660_v63 = vld [vmem:[%s8669_s4 + $0x20] sm:$0xff]   ;;  %v6662_v1 = vld [vmem:[%s8669_s4 + $0x68] sm:$0xff]  }
 0x1db   : > { %v6661_v0 = vld [vmem:[%s8669_s4 + $0xa0] sm:$0xff]  }
 0x1dd   : > { %3898 = vmatpush1.bf16.msra.mxu0 %v6575_v2  ;;  %4226 = vmatpush1.bf16.msra.mxu1 %v6578_v3  ;;  %v6663_v2 = vld [vmem:[%s8669_s4 + $0xe8] sm:$0xff]  }
 0x1de   : > { %3899 = vmatprep.subr.bf16.mxu0 %v6583_v4  ;;  %4227 = vmatprep.subr.bf16.mxu1 %v6586_v5  ;;  %v6664_v3 = vld [vmem:[%s8669_s4 + $0x28] sm:$0xff]   ;;  %v6666_v5 = vld [vmem:[%s8669_s4 + $0x70] sm:$0xff]  }
 0x1df   : > { %v6665_v4 = vld [vmem:[%s8669_s4 + $0xa8] sm:$0xff]  }
 0x1e1   : > { %3900 = vmatpush1.bf16.msra.mxu0 %v6581_v6  ;;  %4228 = vmatpush1.bf16.msra.mxu1 %v6584_v7  ;;  %v6667_v6 = vld [vmem:[%s8669_s4 + $0xf0] sm:$0xff]  }
 0x1e2   : > { %3901 = vmatprep.subr.bf16.mxu0 %v6589_v8  ;;  %4229 = vmatprep.subr.bf16.mxu1 %v6592_v9  ;;  %v6668_v7 = vld [vmem:[%s8669_s4 + $0x30] sm:$0xff]   ;;  %v6670_v9 = vld [vmem:[%s8669_s4 + $0x78] sm:$0xff]  }
 0x1e3   : > { %v6669_v8 = vld [vmem:[%s8669_s4 + $0xb0] sm:$0xff]  }
 0x1e5   : > { %3902 = vmatpush1.bf16.msra.mxu0 %v6587_v10  ;;  %4230 = vmatpush1.bf16.msra.mxu1 %v6590_v11  ;;  %v6671_v10 = vld [vmem:[%s8669_s4 + $0xf8] sm:$0xff]  }
 0x1e6   : > { %3903 = vmatprep.subr.bf16.mxu0 %v6595_v12  ;;  %4231 = vmatprep.subr.bf16.mxu1 %v6598_v14  ;;  %v6672_v11 = vld [vmem:[%s8669_s4 + $0x38] sm:$0xff]   ;;  %v934_v14 = vsub.s32 0, %v6916_v43 }
 0x1e7   : > { %v6673_v12 = vld [vmem:[%s8669_s4 + $0xb8] sm:$0xff]  }
 0x1e9   : > { %3904 = vmatpush1.bf16.msra.mxu0 %v6593_v15  ;;  %4232 = vmatpush1.bf16.msra.mxu1 %v6596_v16  ;;  %v942_v15 = vsub.s32 2, %v6916_v43  ;;  %v930_v16 = vld [vmem:[%s8668_s3] sm:$0xf] }
 0x1ea   : > { %3905 = vmatprep.subr.bf16.mxu0 %v6601_v17  ;;  %4233 = vmatprep.subr.bf16.mxu1 %v6604_v18  ;;  %v938_v17 = vsub.s32 1, %v6916_v43  ;;  %v946_v18 = vsub.s32 3, %v6916_v43 }
 0x1ed   : > { %3906 = vmatpush1.bf16.msra.mxu0 %v6599_v19  ;;  %4234 = vmatpush1.bf16.msra.mxu1 %v6602_v21  ;;  %v935_v19 = vrot.slane %v930_v16, %v934_v14  ;;  %v943_v21 = vrot.slane %v930_v16, %v942_v15  ;;  %v4628_v14 = vld [vmem:[%s405_s23] sm:$0x7] }
 0x1ee   : > { %3907 = vmatprep.subr.bf16.mxu0 %v6607_v22  ;;  %4235 = vmatprep.subr.bf16.mxu1 %v6610_v24  ;;  %v939_v22 = vrot.slane %v930_v16, %v938_v17  ;;  %v947_v24 = vrot.slane %v930_v16, %v946_v18 }
 0x1f1   : > { %3908 = vmatpush1.bf16.msra.mxu0 %v6605_v20  ;;  %4236 = vmatpush1.bf16.msra.mxu1 %v6608_v26 }
 0x1f2   : > { %3909 = vmatprep.subr.bf16.mxu0 %v6613_v13  ;;  %4237 = vmatprep.subr.bf16.mxu1 %v6616_v28 }
 0x1f5   : > { %3910 = vmatpush1.bf16.msra.mxu0 %v6611_v29  ;;  %4238 = vmatpush1.bf16.msra.mxu1 %v6614_v31 }
 0x1f6   : > { %3911 = vmatprep.subr.bf16.mxu0 %v6619_v32  ;;  %4239 = vmatprep.subr.bf16.mxu1 %v6622_v23 }
 0x1f9   : > { %3912 = vmatpush1.bf16.msra.mxu0 %v6617_v33  ;;  %4240 = vmatpush1.bf16.msra.mxu1 %v6620_v34 }
 0x1fa   : > { %3913 = vmatprep.subr.bf16.mxu0 %v6625_v27  ;;  %4241 = vmatprep.subr.bf16.mxu1 %v6628_v37 }
 0x1fd   : > { %3914 = vmatpush1.bf16.msra.mxu0 %v6623_v25  ;;  %4242 = vmatpush1.bf16.msra.mxu1 %v6626_v38 }
 0x1fe   : > { %3915 = vmatprep.subr.bf16.mxu0 %v6631_v39  ;;  %4243 = vmatprep.subr.bf16.mxu1 %v6634_v40 }
 0x201   : > { %3916 = vmatpush1.bf16.msra.mxu0 %v6629_v41  ;;  %4244 = vmatpush1.bf16.msra.mxu1 %v6632_v30 }
 0x202   : > { %3917 = vmatprep.subr.bf16.mxu0 %v6637_v44  ;;  %4245 = vmatprep.subr.bf16.mxu1 %v6640_v45 }
 0x205   : > { %3918 = vmatpush1.bf16.msra.mxu0 %v6635_v36  ;;  %4246 = vmatpush1.bf16.msra.mxu1 %v6638_v47  ;;  %v5641_v47 = vld [vmem:[%s8670_s5] ss:$0 sm:$0xff] }
 0x206   : > { %5711 = vmatprep.subr.bf16.mxu0 %v6642_v48  ;;  %5733 = vmatprep.subr.bf16.mxu1 %v6643_v35 }
 0x208   : > { %3920 = vmatmul.mubr.bf16.vlgmr.msra.gmra.mrb[0].mxu0 %v8221_v46  ;;  %4248 = vmatmul.mubr.bf16.vlgmr.msra.gmra.mrb[0].mxu1 %v8221_v46  ;;  %v6651_v46 = vld [vmem:[%s8669_s4 + $0xd0] sm:$0xff]  }
 0x209   : > { %5712 = vmatpush3.bf16.msra.mxu0 %v6644_v50  ;;  %5734 = vmatpush3.bf16.msra.mxu1 %v6645_v49 }
 0x20a   : > { %5713 = vmatprep.subr.bf16.mxu0 %v6646_v51  ;;  %5735 = vmatprep.subr.bf16.mxu1 %v6647_v52 }
 0x20d   : > { %5714 = vmatpush3.bf16.msra.mxu0 %v6648_v53  ;;  %5736 = vmatpush3.bf16.msra.mxu1 %v6649_v42 }
 0x20e   : > { %5715 = vmatprep.subr.bf16.mxu0 %v6650_v54  ;;  %5737 = vmatprep.subr.bf16.mxu1 %v6651_v46 }
 0x211   : > { %5716 = vmatpush3.bf16.msra.mxu0 %v6652_v55  ;;  %5738 = vmatpush3.bf16.msra.mxu1 %v6653_v56  ;;  %v5674_v55 = vld [vmem:[%s8671_s6] ss:$0 sm:$0xff] }
 0x212   : > { %5717 = vmatprep.subr.bf16.mxu0 %v6654_v57  ;;  %5739 = vmatprep.subr.bf16.mxu1 %v6655_v58 }
 0x215   : > { %5718 = vmatpush3.bf16.msra.mxu0 %v6656_v59  ;;  %5740 = vmatpush3.bf16.msra.mxu1 %v6657_v60  ;;  %v6721_v59 = vmov 0   ;;  %v6674_v60 = vld [vmem:[%s8673_s8 + $0x40] sm:$0xff]  }
 0x216   : > { %5719 = vmatprep.subr.bf16.mxu0 %v6658_v61  ;;  %5741 = vmatprep.subr.bf16.mxu1 %v6659_v62  ;;  %v6675_v61 = vld [vmem:[%s8673_s8 + $0xc0] sm:$0xff]  }
 0x217   : > { %5869 = vset.pattern.permute.xlu0 %v6721_v59  ;;  %v6676_v62 = vld [vmem:[%s8673_s8] sm:$0xff]  }
 0x219   : > { %5720 = vmatpush3.bf16.msra.mxu0 %v6660_v63  ;;  %5742 = vmatpush3.bf16.msra.mxu1 %v6661_v0  ;;  %v6677_v63 = vld [vmem:[%s8673_s8 + $0x80] sm:$0xff]   ;;  %v6678_v0 = vld [vmem:[%s8673_s8 + $0x48] sm:$0xff]  }
 0x21a   : > { %5721 = vmatprep.subr.bf16.mxu0 %v6662_v1  ;;  %5743 = vmatprep.subr.bf16.mxu1 %v6663_v2  ;;  %v6679_v1 = vld [vmem:[%s8673_s8 + $0xc8] sm:$0xff]  }
 0x21b   : > { %v6680_v2 = vld [vmem:[%s8673_s8 + $0x8] sm:$0xff]  }
 0x21d   : > { %5722 = vmatpush3.bf16.msra.mxu0 %v6664_v3  ;;  %5744 = vmatpush3.bf16.msra.mxu1 %v6665_v4  ;;  %v6681_v3 = vld [vmem:[%s8673_s8 + $0x88] sm:$0xff]   ;;  %v6682_v4 = vld [vmem:[%s8673_s8 + $0x50] sm:$0xff]  }
 0x21e   : > { %5723 = vmatprep.subr.bf16.mxu0 %v6666_v5  ;;  %5745 = vmatprep.subr.bf16.mxu1 %v6667_v6  ;;  %v6683_v5 = vld [vmem:[%s8673_s8 + $0xd0] sm:$0xff]  }
 0x21f   : > { %v6684_v6 = vld [vmem:[%s8673_s8 + $0x10] sm:$0xff]  }
 0x221   : > { %5724 = vmatpush3.bf16.msra.mxu0 %v6668_v7  ;;  %5746 = vmatpush3.bf16.msra.mxu1 %v6669_v8  ;;  %v6685_v7 = vld [vmem:[%s8673_s8 + $0x90] sm:$0xff]   ;;  %v6686_v8 = vld [vmem:[%s8673_s8 + $0x58] sm:$0xff]  }
 0x222   : > { %5725 = vmatprep.subr.bf16.mxu0 %v6670_v9  ;;  %5747 = vmatprep.subr.bf16.mxu1 %v6671_v10  ;;  %v6687_v9 = vld [vmem:[%s8673_s8 + $0xd8] sm:$0xff]  }
 0x223   : > { %v6688_v10 = vld [vmem:[%s8673_s8 + $0x18] sm:$0xff]  }
 0x225   : > { %5726 = vmatpush3.bf16.msra.mxu0 %v6672_v11  ;;  %5748 = vmatpush3.bf16.msra.mxu1 %v6673_v12  ;;  %v6689_v11 = vld [vmem:[%s8673_s8 + $0x98] sm:$0xff]   ;;  %v5675_v12 = vld [vmem:[#allocation2] ss:$0 sm:$0xff] }
 0x226   : > { %5755 = vmatprep.subr.bf16.mxu0 %v6674_v60  ;;  %5777 = vmatprep.subr.bf16.mxu1 %v6675_v61 }
 0x2db   : > { %v3921_v20 = vpop.f32.mrb[0].mxu0  ;;  %v4249_v26 = vpop.f32.mrb[0].mxu1 }
 0x2dc   : > { %v5799_v13 = vadd.f32 %v3921_v20, %v935_v19  ;;  %v5801_v28 = vadd.f32 %v4249_v26, %v943_v21  ;;  %v3923_v29 = vpop.f32.mrb[1].mxu0  ;;  %v4251_v31 = vpop.f32.mrb[1].mxu1 }
 0x2dd   : > { %v5800_v32 = vadd.f32 %v3923_v29, %v939_v22  ;;  %v5802_v23 = vadd.f32 %v4251_v31, %v947_v24  ;;  %v3925_v33 = vpop.f32.mrb[2].mxu0  ;;  %v4253_v34 = vpop.f32.mrb[2].mxu1 }
 0x2de   : > { %v8518_v27 = vmax.f32 %v5799_v13, 0.0  ;;  %v8520_v37 = vmax.f32 %v5801_v28, 0.0  ;;  %v3926_v25 = vpop.f32.mrb[3].mxu0  ;;  %v4254_v43 = vpop.f32.mrb[3].mxu1 }
 0x2df   : > { %v8522_v38 = vmax.f32 %v5800_v32, 0.0  ;;  %v8524_v39 = vmax.f32 %v5802_v23, 0.0 }
 0x2e0   : > { %v4260_v30 = vpack.c.bf16 %v8518_v27, %v8518_v27  ;;  %v4262_v44 = vpack.c.bf16 %v8520_v37, %v8520_v37 }
 0x2e1   : > { %v4261_v40 = vpack.c.bf16 %v8522_v38, %v8522_v38  ;;  %v4263_v41 = vpack.c.bf16 %v8524_v39, %v8524_v39 }
 0x2e3   : > { %4559 = vmatprep.mubr.bf16.mxu0 %v4261_v40  ;;  %4599 = vmatprep.mubr.bf16.mxu1 %v4263_v41 }
 0x2e4   : > { %4560 = vmatmul.mubr.bf16.vlgmr.msra.gmra.mrb[4].mxu0 %v4260_v30  ;;  %4600 = vmatmul.mubr.bf16.vlgmr.msra.gmra.mrb[4].mxu1 %v4262_v44  ;;  %v6690_v30 = vld [vmem:[%s8673_s8 + $0x60] sm:$0xff]  }
 0x2e5   : > { %5756 = vmatpush3.bf16.msra.mxu0 %v6676_v62  ;;  %5778 = vmatpush3.bf16.msra.mxu1 %v6677_v63  ;;  %v6691_v44 = vld [vmem:[%s8673_s8 + $0xe0] sm:$0xff]  }
 0x2e6   : > { %5757 = vmatprep.subr.bf16.mxu0 %v6678_v0  ;;  %5779 = vmatprep.subr.bf16.mxu1 %v6679_v1 }
 0x2e9   : > { %5758 = vmatpush3.bf16.msra.mxu0 %v6680_v2  ;;  %5780 = vmatpush3.bf16.msra.mxu1 %v6681_v3 }
 0x2ea   : > { %5759 = vmatprep.subr.bf16.mxu0 %v6682_v4  ;;  %5781 = vmatprep.subr.bf16.mxu1 %v6683_v5 }
 0x2ed   : > { %5760 = vmatpush3.bf16.msra.mxu0 %v6684_v6  ;;  %5782 = vmatpush3.bf16.msra.mxu1 %v6685_v7 }
 0x2ee   : > { %5761 = vmatprep.subr.bf16.mxu0 %v6686_v8  ;;  %5783 = vmatprep.subr.bf16.mxu1 %v6687_v9 }
 0x2f1   : > { %5762 = vmatpush3.bf16.msra.mxu0 %v6688_v10  ;;  %5784 = vmatpush3.bf16.msra.mxu1 %v6689_v11 }
 0x2f2   : > { %5763 = vmatprep.subr.bf16.mxu0 %v6690_v30  ;;  %5785 = vmatprep.subr.bf16.mxu1 %v6691_v44 }
 0x3b7   : > { %v5727_v45 = vpop.f32.mrb[4].mxu0  ;;  %v5749_v36 = vpop.f32.mrb[4].mxu1 }
 0x3b8   : > { %v5728_v48 = vpop.f32.mrb[5].mxu0  ;;  %v5750_v35 = vpop.f32.mrb[5].mxu1 }
 0x3b9   : > { %v5729_v50 = vadd.f32 %v5728_v48, %v5727_v45  ;;  %v5751_v49 = vadd.f32 %v5750_v35, %v5749_v36  ;;  %v5730_v51 = vpop.f32.mrb[6].mxu0  ;;  %v5752_v52 = vpop.f32.mrb[6].mxu1  ;;  %v6692_v45 = vld [vmem:[%s8673_s8 + $0x20] sm:$0xff]   ;;  %v6695_v48 = vld [vmem:[%s8673_s8 + $0xe8] sm:$0xff]  }
 0x3ba   : > { %v5731_v53 = vpop.f32.mrb[7].mxu0  ;;  %v5753_v42 = vpop.f32.mrb[7].mxu1  ;;  %v6693_v36 = vld [vmem:[%s8673_s8 + $0xa0] sm:$0xff]   ;;  %5764 = vmatpush3.bf16.msra.mxu0 %v6692_v45  ;;  %v6696_v35 = vld [vmem:[%s8673_s8 + $0x28] sm:$0xff]   ;;  %v6699_v51 = vld [vmem:[%s8673_s8 + $0xf0] sm:$0xff]  }
 0x3bb   : > { %v4562_v54 = vadd.f32 %v5729_v50, %v5641_v47  ;;  %5786 = vmatpush3.bf16.msra.mxu1 %v6693_v36  ;;  %v6694_v47 = vld [vmem:[%s8673_s8 + $0x68] sm:$0xff]   ;;  %v6700_v52 = vld [vmem:[%s8673_s8 + $0x30] sm:$0xff]   ;;  %v6702_v42 = vld [vmem:[%s8673_s8 + $0x78] sm:$0xff]  }
 0x3bc   : > { %v6697_v50 = vld [vmem:[%s8673_s8 + $0xa8] sm:$0xff]   ;;  %5765 = vmatprep.subr.bf16.mxu0 %v6694_v47  ;;  %5787 = vmatprep.subr.bf16.mxu1 %v6695_v48  ;;  %v6701_v53 = vld [vmem:[%s8673_s8 + $0xb0] sm:$0xff]  }
 0x3bd   : > { %v4602_v46 = vadd.f32 %v5751_v49, %v4562_v54  ;;  %v6698_v49 = vld [vmem:[%s8673_s8 + $0x70] sm:$0xff]   ;;  %v6703_v54 = vld [vmem:[%s8673_s8 + $0xf8] sm:$0xff]  }
 0x3be   : > { %5766 = vmatpush3.bf16.msra.mxu0 %v6696_v35 }
 0x3bf   : > { %6706 = vtanh.f32 %v4602_v46  ;;  %5788 = vmatpush3.bf16.msra.mxu1 %v6697_v50  ;;  %5767 = vmatprep.subr.bf16.mxu0 %v6698_v49  ;;  %v6704_v46 = vld [vmem:[%s8673_s8 + $0x38] sm:$0xff]  }
 0x3c0   : > { %5789 = vmatprep.subr.bf16.mxu1 %v6699_v51 }
 0x3c2   : > { %5768 = vmatpush3.bf16.msra.mxu0 %v6700_v52 }
 0x3c3   : > { %5790 = vmatpush3.bf16.msra.mxu1 %v6701_v53  ;;  %5769 = vmatprep.subr.bf16.mxu0 %v6702_v42 }
 0x3c4   : > { %5791 = vmatprep.subr.bf16.mxu1 %v6703_v54 }
 0x3c6   : > { %5770 = vmatpush3.bf16.msra.mxu0 %v6704_v46 }
 0x3c9   : > { %v6707_v56 = vpop.eup %6706 }
 0x3ca   : > { %v4615_v57 = vmul.f32 %v6707_v56, %v5674_v55  ;;  %v6705_v55 = vld [vmem:[%s8673_s8 + $0xb8] sm:$0xff]  }
 0x3cb   : > { %5792 = vmatpush3.bf16.msra.mxu1 %v6705_v55 }
 0x3cc   : > { %v4617_v58 = vsel %vm4616_vm0, %v4615_v57, 0.0 }
 0x3cd   : > { %4618 = vadd.xlane.f32.xlu0 %v4617_v58 }
 0x45a   : > { %v4619_v15 = vpop.xlane.xlu0 %4618 }
 0x45b   : > { %v4627_v16 = vadd.f32 %v5675_v12, %v4619_v15 }
 0x45d   : > { %v4629_v17 = vadd.f32 %v4628_v14, %v4627_v16 }
 0x45f   : > { %v4631_v18 = vsel %vm4630_vm1, %v4629_v17, -inf }
 0x460   : > { %v4632_v19 = vrot.slane %v4631_v18, 4 }
 0x462   : > { %v4633_v21 = vmax.f32 %v4631_v18, %v4632_v19 }
 0x464   : > { %v4634_v22 = vrot.slane %v4633_v21, 2 }
 0x466   : > { %v4635_v24 = vmax.f32 %v4633_v21, %v4634_v22 }
 0x468   : > { %v4636_v20 = vrot.slane %v4635_v24, 1 }
 0x46a   : > { %v4637_v26 = vmax.f32 %v4635_v24, %v4636_v20 }
 0x46c   : > { %v4638_v13 = vsub.f32 %v4629_v17, %v4637_v26 }
 0x46e   : > { %v4639_v28 = vmul.f32 1.442695, %v4638_v13 }
 0x470   : > { %6708 = vpow2.f32 %v4639_v28 }
 0x47a   : > { %v6709_v29 = vpop.eup %6708 }
 0x47b   : > { %v4641_v31 = vsel %vm4630_vm1, %v6709_v29, 0.0 }
 0x47c   : > { %v4642_v32 = vrot.slane %v4641_v31, 4 }
 0x47e   : > { %v4643_v23 = vadd.f32 %v4642_v32, %v4641_v31  ;;  %v4756_v31 = vld [vmem:[%s8674_s9] sm:$0x1] }
 0x480   : > { %v4644_v33 = vrot.slane %v4643_v23, 2 }
 0x482   : > { %v4645_v34 = vadd.f32 %v4644_v33, %v4643_v23 }
 0x484   : > { %v4646_v25 = vrot.slane %v4645_v34, 1 }
 0x486   : > { %v4647_v43 = vadd.f32 %v4646_v25, %v4645_v34 }
 0x488   : > { %6710 = vrcp.f32 %v4647_v43 }
 0x492   : > { %v6711_v40 = vpop.eup %6710 }
 0x493   : > { %v4649_v41 = vmul.f32 %v6711_v40, %v6709_v29 }
 0x495   : > { %4653 = vperm.xlu0 %5869, %v4649_v41   ;;  %4650 = vst.msk [vmem:[%s412_s22] sm:$0x7] %vm4630_vm1, %v4649_v41 }
 0x514   : > { %v4654_v56 = vpop.permute.xlu0 %4653 }
 0x515   : > { %v4656_v57 = vmul.f32 %v4654_v56, %v8518_v27  ;;  %v4657_v58 = vmul.f32 %v4654_v56, %v8522_v38  ;;  %v4658_v59 = vmul.f32 %v4654_v56, %v8520_v37  ;;  %v4659_v60 = vmul.f32 %v4654_v56, %v8524_v39 }
 0x517   : > { %v4660_v61 = vsel %vm4616_vm0, %v4656_v57, 0.0  ;;  %v4667_v62 = vsel %vm4616_vm0, %v4657_v58, 0.0  ;;  %v4674_v63 = vsel %vm4616_vm0, %v4658_v59, 0.0  ;;  %v4681_v0 = vsel %vm4616_vm0, %v4659_v60, 0.0 }
 0x518   : > { %v4661_v1 = vrot.slane %v4660_v61, 4  ;;  %v4668_v2 = vrot.slane %v4667_v62, 4  ;;  %v4675_v3 = vrot.slane %v4674_v63, 4  ;;  %v4682_v4 = vrot.slane %v4681_v0, 4 }
 0x51a   : > { %v4662_v5 = vadd.f32 %v4661_v1, %v4660_v61  ;;  %v4669_v27 = vadd.f32 %v4668_v2, %v4667_v62  ;;  %v4676_v6 = vadd.f32 %v4675_v3, %v4674_v63  ;;  %v4683_v38 = vadd.f32 %v4682_v4, %v4681_v0 }
 0x51c   : > { %v4663_v7 = vrot.slane %v4662_v5, 2  ;;  %v4677_v37 = vrot.slane %v4676_v6, 2  ;;  %v4670_v8 = vrot.slane %v4669_v27, 2  ;;  %v4684_v39 = vrot.slane %v4683_v38, 2 }
 0x51e   : > { %v4664_v9 = vadd.f32 %v4663_v7, %v4662_v5  ;;  %v4678_v10 = vadd.f32 %v4677_v37, %v4676_v6  ;;  %v4671_v11 = vadd.f32 %v4670_v8, %v4669_v27  ;;  %v4685_v12 = vadd.f32 %v4684_v39, %v4683_v38 }
 0x520   : > { %v4672_v14 = vrot.slane %v4671_v11, 1  ;;  %v4686_v15 = vrot.slane %v4685_v12, 1  ;;  %v4665_v16 = vrot.slane %v4664_v9, 1  ;;  %v4679_v17 = vrot.slane %v4678_v10, 1 }
 0x522   : > { %v4673_v18 = vadd.f32 %v4672_v14, %v4671_v11  ;;  %v4687_v19 = vadd.f32 %v4686_v15, %v4685_v12  ;;  %v4666_v21 = vadd.f32 %v4665_v16, %v4664_v9  ;;  %v4680_v22 = vadd.f32 %v4679_v17, %v4678_v10 }
 0x524   : > { %v4689_v24 = vpack.c.bf16 %v4673_v18, %v4673_v18  ;;  %v4691_v20 = vpack.c.bf16 %v4687_v19, %v4687_v19  ;;  %v4688_v26 = vpack.c.bf16 %v4666_v21, %v4666_v21  ;;  %v4690_v13 = vpack.c.bf16 %v4680_v22, %v4680_v22 }
 0x526   : > { %4981 = vmatprep.mubr.bf16.mxu0 %v4689_v24  ;;  %5021 = vmatprep.mubr.bf16.mxu1 %v4691_v20 }
 0x527   : > { %4982 = vmatmul.mubr.bf16.vlgmr.msra.gmra.mrb[8].mxu0 %v4688_v26  ;;  %5022 = vmatmul.mubr.bf16.vlgmr.msra.gmra.mrb[8].mxu1 %v4690_v13 }
 0x5fa   : > { %v5771_v28 = vpop.f32.mrb[8].mxu0  ;;  %v5793_v29 = vpop.f32.mrb[8].mxu1 }
 0x5fb   : > { %v5772_v32 = vpop.f32.mrb[9].mxu0  ;;  %v5794_v23 = vpop.f32.mrb[9].mxu1 }
 0x5fc   : > { %v5773_v33 = vadd.f32 %v5772_v32, %v5771_v28  ;;  %v5795_v34 = vadd.f32 %v5794_v23, %v5793_v29  ;;  %v5774_v25 = vpop.f32.mrb[10].mxu0  ;;  %v5796_v43 = vpop.f32.mrb[10].mxu1 }
 0x5fd   : > { %v5775_v40 = vpop.f32.mrb[11].mxu0  ;;  %v5797_v41 = vpop.f32.mrb[11].mxu1 }
 0x5fe   : > { %v4984_v30 = vadd.f32 %v5773_v33, %v4756_v31 }
 0x600   : > { %v5024_v44 = vadd.f32 %v5795_v34, %v4984_v30 }
 0x602   : > { %5029 = vst [vmem:[%s408_s26] sm:$0x1] %v5024_v44 }
 0x603 PF: > { %s24_s19 = sadd.s32 1, %s6718_s19  }
 0x604   : > { %p21_p4 = scmp.ge.s32.totalorder %s24_s19, 4  }
 0x606   :  { %23 = sbr.rel (!%p21_p4) target bundleno = 3 (0x3), region = 105 }

</bundles_post_ra>
